<compile_context>
chip_gen: v5e
topology: v5e:2x2
jax: 0.10.0
libtpu: 0.0.40
codegen_flags: <defaults>
</compile_context>

<pallas_src>
import numpy as np
import jax
import jax.numpy as jnp
from jax.experimental import pallas as pl
from jax.experimental.pallas import tpu as pltpu


def _round_up(n, m):
    return ((n + m - 1) // m) * m


def _pad_to(a, shape):
    pads = [(0, t - s) for s, t in zip(a.shape, shape)]
    return jnp.pad(a, pads)


def _make_kernel(coupling, hidden, prior):
    def kernel(ldj_ref, x_ref, w_in_ref, b_in_ref, w_h_ref, b_h_ref,
               w_out_ref, b_out_ref, exp_scale_ref, out_ref):
        x = x_ref[...]                                    # (TB, Dp) f32, carried in f32
        # Coupling masks are baked into the bf16 weights, so each block is a
        # plain MLP + additive update.  Statically unrolled; for very deep
        # configs (coupling*hidden large) switch the inner loop to
        # lax.fori_loop(..., unroll=True) to bound activation live ranges.
        for i in range(coupling):
            h = jnp.dot(x.astype(jnp.bfloat16), w_in_ref[i],
                        preferred_element_type=jnp.float32) + b_in_ref[i]
            h = jnp.maximum(h, 0.0)
            for k in range(hidden):
                h = jnp.dot(h.astype(jnp.bfloat16), w_h_ref[i, k],
                            preferred_element_type=jnp.float32) + b_h_ref[i, k]
                h = jnp.maximum(h, 0.0)
            s = jnp.dot(h.astype(jnp.bfloat16), w_out_ref[i],
                        preferred_element_type=jnp.float32) + b_out_ref[i]
            x = x + s                                     # additive: log|det J| = 0

        z = x * exp_scale_ref[...]                        # scaling (exp precomputed)
        if prior == 'logistic':
            a = jnp.abs(z)
            log_pz = -(a + 2.0 * jnp.log1p(jnp.exp(-a)))  # == -softplus(z)-softplus(-z)
        else:  # gaussian
            log_pz = -0.5 * z * z - 0.5 * float(np.log(2.0 * np.pi))
        out_ref[...] = jnp.sum(log_pz, axis=1, keepdims=True) + ldj_ref[0, 0]

    return kernel


class VeryNICEPallas:
    """Pallas implementation of VeryNICE.forward (== log_prob)."""

    def __init__(self, prior, coupling, in_out_dim, partitions, hidden,
                 mid_dim=500, tile_batch=128, key=None):
        assert in_out_dim % partitions == 0
        assert hidden >= 1
        assert prior in ('logistic', 'gaussian')
        if key is None:
            key = jax.random.PRNGKey(0)
        self.prior = prior
        self.coupling = coupling
        self.in_out_dim = in_out_dim
        self.partitions = partitions
        self.hidden = hidden
        self.mid_dim = mid_dim
        self.mask_configs = tuple((i + 1) % partitions for i in range(coupling))
        self.tile_batch = _round_up(max(8, tile_batch), 8)

        D, M, C, H = in_out_dim, mid_dim, coupling, hidden
        self.Dp = _round_up(D, 128)       # lane-aligned feature dim
        self.Mp = _round_up(M, 128)       # lane-aligned hidden dim
        chunk = D // partitions

        ks = jax.random.split(key, 7)

        def init(k, shape, fan_in):
            bound = 1.0 / float(fan_in) ** 0.5
            return jax.random.uniform(k, shape, jnp.float32, -bound, bound)

        # Raw f32 parameters (reference semantics).  Input-major: y = x @ W + b.
        self.w_in = init(ks[0], (C, D, M), D)
        self.b_in = init(ks[1], (C, 1, M), D)
        self.w_h = init(ks[2], (C, H, M, M), M)
        self.b_h = init(ks[3], (C, H, 1, M), M)
        self.w_out = init(ks[4], (C, M, D), M)
        self.b_out = init(ks[5], (C, 1, D), M)
        self.scale = 0.01 * jax.random.normal(ks[6], (1, D), jnp.float32)

        # ---- bake the static coupling masks into the weights ----------------
        cols = jnp.arange(D)
        w_in_b, w_out_b, b_out_b = [], [], []
        for i in range(C):
            m = self.mask_configs[i]
            in_chunk = (cols >= m * chunk) & (cols < (m + 1) * chunk)
            # conditioning: masked chunk of x must not feed the MLP
            w_in_b.append(jnp.where(in_chunk[:, None], 0.0, self.w_in[i]))
            # additive update touches only the masked chunk
            w_out_b.append(jnp.where(in_chunk[None, :], self.w_out[i], 0.0))
            b_out_b.append(jnp.where(in_chunk[None, :], self.b_out[i], 0.0))
        w_in_b = jnp.stack(w_in_b)
        w_out_b = jnp.stack(w_out_b)
        b_out_b = jnp.stack(b_out_b)

        # ---- zero-pad to 128-aligned dims, cast matmul weights to bf16 ------
        Dp, Mp = self.Dp, self.Mp
        self.w_in_k = _pad_to(w_in_b, (C, Dp, Mp)).astype(jnp.bfloat16)
        self.b_in_k = _pad_to(self.b_in, (C, 1, Mp)).astype(jnp.float32)
        self.w_h_k = _pad_to(self.w_h, (C, H, Mp, Mp)).astype(jnp.bfloat16)
        self.b_h_k = _pad_to(self.b_h, (C, H, 1, Mp)).astype(jnp.float32)
        self.w_out_k = _pad_to(w_out_b, (C, Mp, Dp)).astype(jnp.bfloat16)
        self.b_out_k = _pad_to(b_out_b, (C, 1, Dp)).astype(jnp.float32)
        self.exp_scale_k = _pad_to(jnp.exp(self.scale), (1, Dp)).astype(jnp.float32)

        # Hoisted log_det_J constant.  Padded feature columns carry z == 0
        # exactly; their constant prior contribution is cancelled here.
        c0 = 2.0 * np.log(2.0) if prior == 'logistic' else 0.5 * np.log(2.0 * np.pi)
        ldj = jnp.sum(self.scale) - np.log(256.0) * D + (Dp - D) * c0
        self.ldj_k = jnp.reshape(ldj, (1, 1)).astype(jnp.float32)

    # ------------------------------------------------------------------ #
    def _vmem_limit_bytes(self, TB):
        wbytes = (self.w_in_k.size + self.w_h_k.size + self.w_out_k.size) * 2
        bbytes = (self.b_in_k.size + self.b_h_k.size + self.b_out_k.size
                  + self.exp_scale_k.size) * 4
        tile = TB * self.Dp * 4 + TB * 4
        # Weights may be pipeline double-buffered even though grid-invariant;
        # x/out tiles are double-buffered; keep headroom for compiler scratch.
        need = 2 * (wbytes + bbytes) + 4 * tile + (4 << 20)
        return int(min(max(need, 32 << 20), 112 << 20))

    def log_prob(self, x):
        B, D = x.shape
        assert D == self.in_out_dim
        TB = min(self.tile_batch, _round_up(B, 8))
        Bp = _round_up(B, TB)
        nb = Bp // TB
        Dp, Mp = self.Dp, self.Mp

        xpad = jnp.zeros((Bp, Dp), jnp.float32).at[:B, :D].set(
            x.astype(jnp.float32))

        kernel = _make_kernel(self.coupling, self.hidden, self.prior)

        def full_spec(shape):
            rank = len(shape)
            return pl.BlockSpec(shape, lambda i, _r=rank: (0,) * _r)

        flops = 2 * Bp * self.coupling * (Dp * Mp + self.hidden * Mp * Mp + Mp * Dp)
        transcendentals = 2 * Bp * Dp
        bytes_accessed = int(
            xpad.size * 4 + Bp * 4
            + (self.w_in_k.size + self.w_h_k.size + self.w_out_k.size) * 2
            + (self.b_in_k.size + self.b_h_k.size + self.b_out_k.size
               + self.exp_scale_k.size) * 4)

        out = pl.pallas_call(
            kernel,
            out_shape=jax.ShapeDtypeStruct((Bp, 1), jnp.float32),
            grid=(nb,),
            in_specs=[
                pl.BlockSpec(memory_space=pltpu.MemorySpace.SMEM),   # log_det_J
                pl.BlockSpec((TB, Dp), lambda i: (i, 0)),            # x tile
                full_spec(self.w_in_k.shape),                        # resident weights
                full_spec(self.b_in_k.shape),
                full_spec(self.w_h_k.shape),
                full_spec(self.b_h_k.shape),
                full_spec(self.w_out_k.shape),
                full_spec(self.b_out_k.shape),
                full_spec(self.exp_scale_k.shape),
            ],
            out_specs=pl.BlockSpec((TB, 1), lambda i: (i, 0)),
            compiler_params=pltpu.CompilerParams(
                dimension_semantics=("parallel",),
                vmem_limit_bytes=self._vmem_limit_bytes(TB)),
            cost_estimate=pl.CostEstimate(
                flops=int(flops), transcendentals=int(transcendentals),
                bytes_accessed=bytes_accessed),
        )(self.ldj_k, xpad, self.w_in_k, self.b_in_k, self.w_h_k, self.b_h_k,
          self.w_out_k, self.b_out_k, self.exp_scale_k)
        return out[:B, 0]

    def __call__(self, x):      # forward == log_prob
        return self.log_prob(x)


# ---------------------------------------------------------------------- #
# References for correctness checking
# ---------------------------------------------------------------------- #
def reference_log_prob_f32(model, x):
    """Pure-JAX f32 reference with explicit coupling masks (module semantics)."""
    D = model.in_out_dim
    chunk = D // model.partitions
    cols = jnp.arange(D)
    xx = x.astype(jnp.float32)
    for i in range(model.coupling):
        m = model.mask_configs[i]
        in_chunk = ((cols >= m * chunk) & (cols < (m + 1) * chunk))[None, :]
        off = jnp.where(in_chunk, 0.0, xx)
        h = jax.nn.relu(off @ model.w_in[i] + model.b_in[i])
        for k in range(model.hidden):
            h = jax.nn.relu(h @ model.w_h[i, k] + model.b_h[i, k])
        s = h @ model.w_out[i] + model.b_out[i]
        xx = xx + jnp.where(in_chunk, s, 0.0)
    z = xx * jnp.exp(model.scale)
    ldj = jnp.sum(model.scale) - jnp.log(256.0) * D
    if model.prior == 'logistic':
        log_pz = -(jax.nn.softplus(z) + jax.nn.softplus(-z))
    else:
        log_pz = -0.5 * z ** 2 - 0.5 * jnp.log(2.0 * jnp.pi)
    return jnp.sum(log_pz, axis=1) + ldj


def reference_log_prob_matched(model, x):
    """Pure-JAX reference mirroring the kernel's bf16 / padded arithmetic."""
    B, D = x.shape
    xx = jnp.pad(x.astype(jnp.float32), ((0, 0), (0, model.Dp - D)))
    for i in range(model.coupling):
        h = jnp.maximum(
            jnp.dot(xx.astype(jnp.bfloat16), model.w_in_k[i],
                    preferred_element_type=jnp.float32) + model.b_in_k[i], 0.0)
        for k in range(model.hidden):
            h = jnp.maximum(
                jnp.dot(h.astype(jnp.bfloat16), model.w_h_k[i, k],
                        preferred_element_type=jnp.float32) + model.b_h_k[i, k], 0.0)
        s = jnp.dot(h.astype(jnp.bfloat16), model.w_out_k[i],
                    preferred_element_type=jnp.float32) + model.b_out_k[i]
        xx = xx + s
    z = xx * model.exp_scale_k
    if model.prior == 'logistic':
        a = jnp.abs(z)
        log_pz = -(a + 2.0 * jnp.log1p(jnp.exp(-a)))
    else:
        log_pz = -0.5 * z * z - 0.5 * jnp.log(2.0 * jnp.pi)
    return jnp.sum(log_pz, axis=1) + model.ldj_k[0, 0]


if __name__ == "__main__":
    key = jax.random.PRNGKey(0)
    k_param, k_x = jax.random.split(key)

    # Small shapes consistent with the module (flat feature vectors, a few
    # coupling blocks).  mid_dim / in_out_dim are deliberately not multiples of
    # 128 and B is not a multiple of the batch tile, so all padding paths run.
    B, D, P, C, H, MID = 200, 96, 4, 4, 2, 100   # module hardcodes mid_dim=500

    model = VeryNICEPallas('logistic', coupling=C, in_out_dim=D, partitions=P,
                           hidden=H, mid_dim=MID, tile_batch=128, key=k_param)
    x = jax.random.uniform(k_x, (B, D), jnp.float32)

    out = jax.block_until_ready(model(x))
    assert out.shape == (B,)

    # Exact-structure check: same bf16/padded arithmetic in plain JAX.
    ref_m = reference_log_prob_matched(model, x)
    assert jnp.allclose(out, ref_m, atol=5e-2, rtol=1e-4), (
        float(jnp.max(jnp.abs(out - ref_m))))

    # Semantics check against the f32 masked reference (loose tol: bf16 matmuls).
    ref_f = reference_log_prob_f32(model, x)
    assert jnp.allclose(out, ref_f, atol=0.0, rtol=2e-2), (
        float(jnp.max(jnp.abs(out - ref_f))))

    print("KERNEL_OK")
</pallas_src>

<mosaic_0001>
module attributes {stable_mosaic.version = 11 : i64} {
  func.func @kernel(%arg0: i32, %arg1: memref<1x1xf32, #tpu.memory_space<smem>>, %arg2: memref<128x128xf32, #tpu.memory_space<vmem>>, %arg3: memref<4x128x128xbf16, #tpu.memory_space<vmem>>, %arg4: memref<4x1x128xf32, #tpu.memory_space<vmem>>, %arg5: memref<4x2x128x128xbf16, #tpu.memory_space<vmem>>, %arg6: memref<4x2x1x128xf32, #tpu.memory_space<vmem>>, %arg7: memref<4x128x128xbf16, #tpu.memory_space<vmem>>, %arg8: memref<4x1x128xf32, #tpu.memory_space<vmem>>, %arg9: memref<1x128xf32, #tpu.memory_space<vmem>>, %arg10: memref<128x1xf32, #tpu.memory_space<vmem>>) attributes {dimension_semantics = [#tpu.dimension_semantics<parallel>], iteration_bounds = array<i64: 2>, scalar_prefetch = 0 : i64, scratch_operands = 0 : i64, tpu.core_type = #tpu.core_type<tc>, window_params = [{transform_indices = @transform_0, window_bounds = array<i64: 1, 1>}, {transform_indices = @transform_1, window_bounds = array<i64: 128, 128>}, {pipeline_mode = #tpu.pipeline_mode<synchronous>, transform_indices = @transform_2, window_bounds = array<i64: 4, 128, 128>}, {pipeline_mode = #tpu.pipeline_mode<synchronous>, transform_indices = @transform_3, window_bounds = array<i64: 4, 1, 128>}, {pipeline_mode = #tpu.pipeline_mode<synchronous>, transform_indices = @transform_4, window_bounds = array<i64: 4, 2, 128, 128>}, {pipeline_mode = #tpu.pipeline_mode<synchronous>, transform_indices = @transform_5, window_bounds = array<i64: 4, 2, 1, 128>}, {pipeline_mode = #tpu.pipeline_mode<synchronous>, transform_indices = @transform_6, window_bounds = array<i64: 4, 128, 128>}, {pipeline_mode = #tpu.pipeline_mode<synchronous>, transform_indices = @transform_7, window_bounds = array<i64: 4, 1, 128>}, {pipeline_mode = #tpu.pipeline_mode<synchronous>, transform_indices = @transform_8, window_bounds = array<i64: 1, 128>}, {transform_indices = @transform_9, window_bounds = array<i64: 128, 1>}]} {
    %c0 = arith.constant 0 : index
    %c0_0 = arith.constant 0 : index
    %0 = vector.load %arg2[%c0, %c0_0] : memref<128x128xf32, #tpu.memory_space<vmem>>, vector<128x128xf32>
    %1 = arith.truncf %0 : vector<128x128xf32> to vector<128x128xbf16>
    %c0_1 = arith.constant 0 : index
    %c0_2 = arith.constant 0 : index
    %c0_3 = arith.constant 0 : index
    %2 = vector.load %arg3[%c0_1, %c0_2, %c0_3] : memref<4x128x128xbf16, #tpu.memory_space<vmem>>, vector<1x128x128xbf16>
    %3 = vector.shape_cast %2 : vector<1x128x128xbf16> to vector<128x128xbf16>
    %cst = arith.constant dense<0.000000e+00> : vector<128x128xf32>
    %4 = tpu.matmul %1, %3, %cst {dimension_numbers = #tpu.dot_dimension_numbers<[1], [0], [0], [1], [0, 0, 1, 1], [], []>} : vector<128x128xbf16>, vector<128x128xbf16>, vector<128x128xf32> -> vector<128x128xf32>
    %c0_4 = arith.constant 0 : index
    %c0_5 = arith.constant 0 : index
    %c0_6 = arith.constant 0 : index
    %5 = vector.load %arg4[%c0_4, %c0_5, %c0_6] : memref<4x1x128xf32, #tpu.memory_space<vmem>>, vector<1x1x128xf32>
    %6 = vector.shape_cast %5 : vector<1x1x128xf32> to vector<1x128xf32>
    %7 = vector.broadcast %6 : vector<1x128xf32> to vector<128x128xf32>
    %8 = arith.addf %4, %7 : vector<128x128xf32>
    %cst_7 = arith.constant 0.000000e+00 : f32
    %9 = vector.broadcast %cst_7 : f32 to vector<128x128xf32>
    %10 = arith.maximumf %8, %9 : vector<128x128xf32>
    %11 = arith.truncf %10 : vector<128x128xf32> to vector<128x128xbf16>
    %c0_8 = arith.constant 0 : index
    %c0_9 = arith.constant 0 : index
    %c0_10 = arith.constant 0 : index
    %c0_11 = arith.constant 0 : index
    %12 = vector.load %arg5[%c0_8, %c0_9, %c0_10, %c0_11] : memref<4x2x128x128xbf16, #tpu.memory_space<vmem>>, vector<1x1x128x128xbf16>
    %13 = vector.shape_cast %12 : vector<1x1x128x128xbf16> to vector<128x128xbf16>
    %cst_12 = arith.constant dense<0.000000e+00> : vector<128x128xf32>
    %14 = tpu.matmul %11, %13, %cst_12 {dimension_numbers = #tpu.dot_dimension_numbers<[1], [0], [0], [1], [0, 0, 1, 1], [], []>} : vector<128x128xbf16>, vector<128x128xbf16>, vector<128x128xf32> -> vector<128x128xf32>
    %c0_13 = arith.constant 0 : index
    %c0_14 = arith.constant 0 : index
    %c0_15 = arith.constant 0 : index
    %c0_16 = arith.constant 0 : index
    %15 = vector.load %arg6[%c0_13, %c0_14, %c0_15, %c0_16] : memref<4x2x1x128xf32, #tpu.memory_space<vmem>>, vector<1x1x1x128xf32>
    %16 = vector.shape_cast %15 : vector<1x1x1x128xf32> to vector<1x128xf32>
    %17 = vector.broadcast %16 : vector<1x128xf32> to vector<128x128xf32>
    %18 = arith.addf %14, %17 : vector<128x128xf32>
    %cst_17 = arith.constant 0.000000e+00 : f32
    %19 = vector.broadcast %cst_17 : f32 to vector<128x128xf32>
    %20 = arith.maximumf %18, %19 : vector<128x128xf32>
    %21 = arith.truncf %20 : vector<128x128xf32> to vector<128x128xbf16>
    %c0_18 = arith.constant 0 : index
    %c1 = arith.constant 1 : index
    %c0_19 = arith.constant 0 : index
    %c0_20 = arith.constant 0 : index
    %22 = vector.load %arg5[%c0_18, %c1, %c0_19, %c0_20] : memref<4x2x128x128xbf16, #tpu.memory_space<vmem>>, vector<1x1x128x128xbf16>
    %23 = vector.shape_cast %22 : vector<1x1x128x128xbf16> to vector<128x128xbf16>
    %cst_21 = arith.constant dense<0.000000e+00> : vector<128x128xf32>
    %24 = tpu.matmul %21, %23, %cst_21 {dimension_numbers = #tpu.dot_dimension_numbers<[1], [0], [0], [1], [0, 0, 1, 1], [], []>} : vector<128x128xbf16>, vector<128x128xbf16>, vector<128x128xf32> -> vector<128x128xf32>
    %c0_22 = arith.constant 0 : index
    %c1_23 = arith.constant 1 : index
    %c0_24 = arith.constant 0 : index
    %c0_25 = arith.constant 0 : index
    %25 = vector.load %arg6[%c0_22, %c1_23, %c0_24, %c0_25] : memref<4x2x1x128xf32, #tpu.memory_space<vmem>>, vector<1x1x1x128xf32>
    %26 = vector.shape_cast %25 : vector<1x1x1x128xf32> to vector<1x128xf32>
    %27 = vector.broadcast %26 : vector<1x128xf32> to vector<128x128xf32>
    %28 = arith.addf %24, %27 : vector<128x128xf32>
    %cst_26 = arith.constant 0.000000e+00 : f32
    %29 = vector.broadcast %cst_26 : f32 to vector<128x128xf32>
    %30 = arith.maximumf %28, %29 : vector<128x128xf32>
    %31 = arith.truncf %30 : vector<128x128xf32> to vector<128x128xbf16>
    %c0_27 = arith.constant 0 : index
    %c0_28 = arith.constant 0 : index
    %c0_29 = arith.constant 0 : index
    %32 = vector.load %arg7[%c0_27, %c0_28, %c0_29] : memref<4x128x128xbf16, #tpu.memory_space<vmem>>, vector<1x128x128xbf16>
    %33 = vector.shape_cast %32 : vector<1x128x128xbf16> to vector<128x128xbf16>
    %cst_30 = arith.constant dense<0.000000e+00> : vector<128x128xf32>
    %34 = tpu.matmul %31, %33, %cst_30 {dimension_numbers = #tpu.dot_dimension_numbers<[1], [0], [0], [1], [0, 0, 1, 1], [], []>} : vector<128x128xbf16>, vector<128x128xbf16>, vector<128x128xf32> -> vector<128x128xf32>
    %c0_31 = arith.constant 0 : index
    %c0_32 = arith.constant 0 : index
    %c0_33 = arith.constant 0 : index
    %35 = vector.load %arg8[%c0_31, %c0_32, %c0_33] : memref<4x1x128xf32, #tpu.memory_space<vmem>>, vector<1x1x128xf32>
    %36 = vector.shape_cast %35 : vector<1x1x128xf32> to vector<1x128xf32>
    %37 = vector.broadcast %36 : vector<1x128xf32> to vector<128x128xf32>
    %38 = arith.addf %34, %37 : vector<128x128xf32>
    %39 = arith.addf %0, %38 : vector<128x128xf32>
    %40 = arith.truncf %39 : vector<128x128xf32> to vector<128x128xbf16>
    %c1_34 = arith.constant 1 : index
    %c0_35 = arith.constant 0 : index
    %c0_36 = arith.constant 0 : index
    %41 = vector.load %arg3[%c1_34, %c0_35, %c0_36] : memref<4x128x128xbf16, #tpu.memory_space<vmem>>, vector<1x128x128xbf16>
    %42 = vector.shape_cast %41 : vector<1x128x128xbf16> to vector<128x128xbf16>
    %cst_37 = arith.constant dense<0.000000e+00> : vector<128x128xf32>
    %43 = tpu.matmul %40, %42, %cst_37 {dimension_numbers = #tpu.dot_dimension_numbers<[1], [0], [0], [1], [0, 0, 1, 1], [], []>} : vector<128x128xbf16>, vector<128x128xbf16>, vector<128x128xf32> -> vector<128x128xf32>
    %c1_38 = arith.constant 1 : index
    %c0_39 = arith.constant 0 : index
    %c0_40 = arith.constant 0 : index
    %44 = vector.load %arg4[%c1_38, %c0_39, %c0_40] : memref<4x1x128xf32, #tpu.memory_space<vmem>>, vector<1x1x128xf32>
    %45 = vector.shape_cast %44 : vector<1x1x128xf32> to vector<1x128xf32>
    %46 = vector.broadcast %45 : vector<1x128xf32> to vector<128x128xf32>
    %47 = arith.addf %43, %46 : vector<128x128xf32>
    %cst_41 = arith.constant 0.000000e+00 : f32
    %48 = vector.broadcast %cst_41 : f32 to vector<128x128xf32>
    %49 = arith.maximumf %47, %48 : vector<128x128xf32>
    %50 = arith.truncf %49 : vector<128x128xf32> to vector<128x128xbf16>
    %c1_42 = arith.constant 1 : index
    %c0_43 = arith.constant 0 : index
    %c0_44 = arith.constant 0 : index
    %c0_45 = arith.constant 0 : index
    %51 = vector.load %arg5[%c1_42, %c0_43, %c0_44, %c0_45] : memref<4x2x128x128xbf16, #tpu.memory_space<vmem>>, vector<1x1x128x128xbf16>
    %52 = vector.shape_cast %51 : vector<1x1x128x128xbf16> to vector<128x128xbf16>
    %cst_46 = arith.constant dense<0.000000e+00> : vector<128x128xf32>
    %53 = tpu.matmul %50, %52, %cst_46 {dimension_numbers = #tpu.dot_dimension_numbers<[1], [0], [0], [1], [0, 0, 1, 1], [], []>} : vector<128x128xbf16>, vector<128x128xbf16>, vector<128x128xf32> -> vector<128x128xf32>
    %c1_47 = arith.constant 1 : index
    %c0_48 = arith.constant 0 : index
    %c0_49 = arith.constant 0 : index
    %c0_50 = arith.constant 0 : index
    %54 = vector.load %arg6[%c1_47, %c0_48, %c0_49, %c0_50] : memref<4x2x1x128xf32, #tpu.memory_space<vmem>>, vector<1x1x1x128xf32>
    %55 = vector.shape_cast %54 : vector<1x1x1x128xf32> to vector<1x128xf32>
    %56 = vector.broadcast %55 : vector<1x128xf32> to vector<128x128xf32>
    %57 = arith.addf %53, %56 : vector<128x128xf32>
    %cst_51 = arith.constant 0.000000e+00 : f32
    %58 = vector.broadcast %cst_51 : f32 to vector<128x128xf32>
    %59 = arith.maximumf %57, %58 : vector<128x128xf32>
    %60 = arith.truncf %59 : vector<128x128xf32> to vector<128x128xbf16>
    %c1_52 = arith.constant 1 : index
    %c1_53 = arith.constant 1 : index
    %c0_54 = arith.constant 0 : index
    %c0_55 = arith.constant 0 : index
    %61 = vector.load %arg5[%c1_52, %c1_53, %c0_54, %c0_55] : memref<4x2x128x128xbf16, #tpu.memory_space<vmem>>, vector<1x1x128x128xbf16>
    %62 = vector.shape_cast %61 : vector<1x1x128x128xbf16> to vector<128x128xbf16>
    %cst_56 = arith.constant dense<0.000000e+00> : vector<128x128xf32>
    %63 = tpu.matmul %60, %62, %cst_56 {dimension_numbers = #tpu.dot_dimension_numbers<[1], [0], [0], [1], [0, 0, 1, 1], [], []>} : vector<128x128xbf16>, vector<128x128xbf16>, vector<128x128xf32> -> vector<128x128xf32>
    %c1_57 = arith.constant 1 : index
    %c1_58 = arith.constant 1 : index
    %c0_59 = arith.constant 0 : index
    %c0_60 = arith.constant 0 : index
    %64 = vector.load %arg6[%c1_57, %c1_58, %c0_59, %c0_60] : memref<4x2x1x128xf32, #tpu.memory_space<vmem>>, vector<1x1x1x128xf32>
    %65 = vector.shape_cast %64 : vector<1x1x1x128xf32> to vector<1x128xf32>
    %66 = vector.broadcast %65 : vector<1x128xf32> to vector<128x128xf32>
    %67 = arith.addf %63, %66 : vector<128x128xf32>
    %cst_61 = arith.constant 0.000000e+00 : f32
    %68 = vector.broadcast %cst_61 : f32 to vector<128x128xf32>
    %69 = arith.maximumf %67, %68 : vector<128x128xf32>
    %70 = arith.truncf %69 : vector<128x128xf32> to vector<128x128xbf16>
    %c1_62 = arith.constant 1 : index
    %c0_63 = arith.constant 0 : index
    %c0_64 = arith.constant 0 : index
    %71 = vector.load %arg7[%c1_62, %c0_63, %c0_64] : memref<4x128x128xbf16, #tpu.memory_space<vmem>>, vector<1x128x128xbf16>
    %72 = vector.shape_cast %71 : vector<1x128x128xbf16> to vector<128x128xbf16>
    %cst_65 = arith.constant dense<0.000000e+00> : vector<128x128xf32>
    %73 = tpu.matmul %70, %72, %cst_65 {dimension_numbers = #tpu.dot_dimension_numbers<[1], [0], [0], [1], [0, 0, 1, 1], [], []>} : vector<128x128xbf16>, vector<128x128xbf16>, vector<128x128xf32> -> vector<128x128xf32>
    %c1_66 = arith.constant 1 : index
    %c0_67 = arith.constant 0 : index
    %c0_68 = arith.constant 0 : index
    %74 = vector.load %arg8[%c1_66, %c0_67, %c0_68] : memref<4x1x128xf32, #tpu.memory_space<vmem>>, vector<1x1x128xf32>
    %75 = vector.shape_cast %74 : vector<1x1x128xf32> to vector<1x128xf32>
    %76 = vector.broadcast %75 : vector<1x128xf32> to vector<128x128xf32>
    %77 = arith.addf %73, %76 : vector<128x128xf32>
    %78 = arith.addf %39, %77 : vector<128x128xf32>
    %79 = arith.truncf %78 : vector<128x128xf32> to vector<128x128xbf16>
    %c2 = arith.constant 2 : index
    %c0_69 = arith.constant 0 : index
    %c0_70 = arith.constant 0 : index
    %80 = vector.load %arg3[%c2, %c0_69, %c0_70] : memref<4x128x128xbf16, #tpu.memory_space<vmem>>, vector<1x128x128xbf16>
    %81 = vector.shape_cast %80 : vector<1x128x128xbf16> to vector<128x128xbf16>
    %cst_71 = arith.constant dense<0.000000e+00> : vector<128x128xf32>
    %82 = tpu.matmul %79, %81, %cst_71 {dimension_numbers = #tpu.dot_dimension_numbers<[1], [0], [0], [1], [0, 0, 1, 1], [], []>} : vector<128x128xbf16>, vector<128x128xbf16>, vector<128x128xf32> -> vector<128x128xf32>
    %c2_72 = arith.constant 2 : index
    %c0_73 = arith.constant 0 : index
    %c0_74 = arith.constant 0 : index
    %83 = vector.load %arg4[%c2_72, %c0_73, %c0_74] : memref<4x1x128xf32, #tpu.memory_space<vmem>>, vector<1x1x128xf32>
    %84 = vector.shape_cast %83 : vector<1x1x128xf32> to vector<1x128xf32>
    %85 = vector.broadcast %84 : vector<1x128xf32> to vector<128x128xf32>
    %86 = arith.addf %82, %85 : vector<128x128xf32>
    %cst_75 = arith.constant 0.000000e+00 : f32
    %87 = vector.broadcast %cst_75 : f32 to vector<128x128xf32>
    %88 = arith.maximumf %86, %87 : vector<128x128xf32>
    %89 = arith.truncf %88 : vector<128x128xf32> to vector<128x128xbf16>
    %c2_76 = arith.constant 2 : index
    %c0_77 = arith.constant 0 : index
    %c0_78 = arith.constant 0 : index
    %c0_79 = arith.constant 0 : index
    %90 = vector.load %arg5[%c2_76, %c0_77, %c0_78, %c0_79] : memref<4x2x128x128xbf16, #tpu.memory_space<vmem>>, vector<1x1x128x128xbf16>
    %91 = vector.shape_cast %90 : vector<1x1x128x128xbf16> to vector<128x128xbf16>
    %cst_80 = arith.constant dense<0.000000e+00> : vector<128x128xf32>
    %92 = tpu.matmul %89, %91, %cst_80 {dimension_numbers = #tpu.dot_dimension_numbers<[1], [0], [0], [1], [0, 0, 1, 1], [], []>} : vector<128x128xbf16>, vector<128x128xbf16>, vector<128x128xf32> -> vector<128x128xf32>
    %c2_81 = arith.constant 2 : index
    %c0_82 = arith.constant 0 : index
    %c0_83 = arith.constant 0 : index
    %c0_84 = arith.constant 0 : index
    %93 = vector.load %arg6[%c2_81, %c0_82, %c0_83, %c0_84] : memref<4x2x1x128xf32, #tpu.memory_space<vmem>>, vector<1x1x1x128xf32>
    %94 = vector.shape_cast %93 : vector<1x1x1x128xf32> to vector<1x128xf32>
    %95 = vector.broadcast %94 : vector<1x128xf32> to vector<128x128xf32>
    %96 = arith.addf %92, %95 : vector<128x128xf32>
    %cst_85 = arith.constant 0.000000e+00 : f32
    %97 = vector.broadcast %cst_85 : f32 to vector<128x128xf32>
    %98 = arith.maximumf %96, %97 : vector<128x128xf32>
    %99 = arith.truncf %98 : vector<128x128xf32> to vector<128x128xbf16>
    %c2_86 = arith.constant 2 : index
    %c1_87 = arith.constant 1 : index
    %c0_88 = arith.constant 0 : index
    %c0_89 = arith.constant 0 : index
    %100 = vector.load %arg5[%c2_86, %c1_87, %c0_88, %c0_89] : memref<4x2x128x128xbf16, #tpu.memory_space<vmem>>, vector<1x1x128x128xbf16>
    %101 = vector.shape_cast %100 : vector<1x1x128x128xbf16> to vector<128x128xbf16>
    %cst_90 = arith.constant dense<0.000000e+00> : vector<128x128xf32>
    %102 = tpu.matmul %99, %101, %cst_90 {dimension_numbers = #tpu.dot_dimension_numbers<[1], [0], [0], [1], [0, 0, 1, 1], [], []>} : vector<128x128xbf16>, vector<128x128xbf16>, vector<128x128xf32> -> vector<128x128xf32>
    %c2_91 = arith.constant 2 : index
    %c1_92 = arith.constant 1 : index
    %c0_93 = arith.constant 0 : index
    %c0_94 = arith.constant 0 : index
    %103 = vector.load %arg6[%c2_91, %c1_92, %c0_93, %c0_94] : memref<4x2x1x128xf32, #tpu.memory_space<vmem>>, vector<1x1x1x128xf32>
    %104 = vector.shape_cast %103 : vector<1x1x1x128xf32> to vector<1x128xf32>
    %105 = vector.broadcast %104 : vector<1x128xf32> to vector<128x128xf32>
    %106 = arith.addf %102, %105 : vector<128x128xf32>
    %cst_95 = arith.constant 0.000000e+00 : f32
    %107 = vector.broadcast %cst_95 : f32 to vector<128x128xf32>
    %108 = arith.maximumf %106, %107 : vector<128x128xf32>
    %109 = arith.truncf %108 : vector<128x128xf32> to vector<128x128xbf16>
    %c2_96 = arith.constant 2 : index
    %c0_97 = arith.constant 0 : index
    %c0_98 = arith.constant 0 : index
    %110 = vector.load %arg7[%c2_96, %c0_97, %c0_98] : memref<4x128x128xbf16, #tpu.memory_space<vmem>>, vector<1x128x128xbf16>
    %111 = vector.shape_cast %110 : vector<1x128x128xbf16> to vector<128x128xbf16>
    %cst_99 = arith.constant dense<0.000000e+00> : vector<128x128xf32>
    %112 = tpu.matmul %109, %111, %cst_99 {dimension_numbers = #tpu.dot_dimension_numbers<[1], [0], [0], [1], [0, 0, 1, 1], [], []>} : vector<128x128xbf16>, vector<128x128xbf16>, vector<128x128xf32> -> vector<128x128xf32>
    %c2_100 = arith.constant 2 : index
    %c0_101 = arith.constant 0 : index
    %c0_102 = arith.constant 0 : index
    %113 = vector.load %arg8[%c2_100, %c0_101, %c0_102] : memref<4x1x128xf32, #tpu.memory_space<vmem>>, vector<1x1x128xf32>
    %114 = vector.shape_cast %113 : vector<1x1x128xf32> to vector<1x128xf32>
    %115 = vector.broadcast %114 : vector<1x128xf32> to vector<128x128xf32>
    %116 = arith.addf %112, %115 : vector<128x128xf32>
    %117 = arith.addf %78, %116 : vector<128x128xf32>
    %118 = arith.truncf %117 : vector<128x128xf32> to vector<128x128xbf16>
    %c3 = arith.constant 3 : index
    %c0_103 = arith.constant 0 : index
    %c0_104 = arith.constant 0 : index
    %119 = vector.load %arg3[%c3, %c0_103, %c0_104] : memref<4x128x128xbf16, #tpu.memory_space<vmem>>, vector<1x128x128xbf16>
    %120 = vector.shape_cast %119 : vector<1x128x128xbf16> to vector<128x128xbf16>
    %cst_105 = arith.constant dense<0.000000e+00> : vector<128x128xf32>
    %121 = tpu.matmul %118, %120, %cst_105 {dimension_numbers = #tpu.dot_dimension_numbers<[1], [0], [0], [1], [0, 0, 1, 1], [], []>} : vector<128x128xbf16>, vector<128x128xbf16>, vector<128x128xf32> -> vector<128x128xf32>
    %c3_106 = arith.constant 3 : index
    %c0_107 = arith.constant 0 : index
    %c0_108 = arith.constant 0 : index
    %122 = vector.load %arg4[%c3_106, %c0_107, %c0_108] : memref<4x1x128xf32, #tpu.memory_space<vmem>>, vector<1x1x128xf32>
    %123 = vector.shape_cast %122 : vector<1x1x128xf32> to vector<1x128xf32>
    %124 = vector.broadcast %123 : vector<1x128xf32> to vector<128x128xf32>
    %125 = arith.addf %121, %124 : vector<128x128xf32>
    %cst_109 = arith.constant 0.000000e+00 : f32
    %126 = vector.broadcast %cst_109 : f32 to vector<128x128xf32>
    %127 = arith.maximumf %125, %126 : vector<128x128xf32>
    %128 = arith.truncf %127 : vector<128x128xf32> to vector<128x128xbf16>
    %c3_110 = arith.constant 3 : index
    %c0_111 = arith.constant 0 : index
    %c0_112 = arith.constant 0 : index
    %c0_113 = arith.constant 0 : index
    %129 = vector.load %arg5[%c3_110, %c0_111, %c0_112, %c0_113] : memref<4x2x128x128xbf16, #tpu.memory_space<vmem>>, vector<1x1x128x128xbf16>
    %130 = vector.shape_cast %129 : vector<1x1x128x128xbf16> to vector<128x128xbf16>
    %cst_114 = arith.constant dense<0.000000e+00> : vector<128x128xf32>
    %131 = tpu.matmul %128, %130, %cst_114 {dimension_numbers = #tpu.dot_dimension_numbers<[1], [0], [0], [1], [0, 0, 1, 1], [], []>} : vector<128x128xbf16>, vector<128x128xbf16>, vector<128x128xf32> -> vector<128x128xf32>
    %c3_115 = arith.constant 3 : index
    %c0_116 = arith.constant 0 : index
    %c0_117 = arith.constant 0 : index
    %c0_118 = arith.constant 0 : index
    %132 = vector.load %arg6[%c3_115, %c0_116, %c0_117, %c0_118] : memref<4x2x1x128xf32, #tpu.memory_space<vmem>>, vector<1x1x1x128xf32>
    %133 = vector.shape_cast %132 : vector<1x1x1x128xf32> to vector<1x128xf32>
    %134 = vector.broadcast %133 : vector<1x128xf32> to vector<128x128xf32>
    %135 = arith.addf %131, %134 : vector<128x128xf32>
    %cst_119 = arith.constant 0.000000e+00 : f32
    %136 = vector.broadcast %cst_119 : f32 to vector<128x128xf32>
    %137 = arith.maximumf %135, %136 : vector<128x128xf32>
    %138 = arith.truncf %137 : vector<128x128xf32> to vector<128x128xbf16>
    %c3_120 = arith.constant 3 : index
    %c1_121 = arith.constant 1 : index
    %c0_122 = arith.constant 0 : index
    %c0_123 = arith.constant 0 : index
    %139 = vector.load %arg5[%c3_120, %c1_121, %c0_122, %c0_123] : memref<4x2x128x128xbf16, #tpu.memory_space<vmem>>, vector<1x1x128x128xbf16>
    %140 = vector.shape_cast %139 : vector<1x1x128x128xbf16> to vector<128x128xbf16>
    %cst_124 = arith.constant dense<0.000000e+00> : vector<128x128xf32>
    %141 = tpu.matmul %138, %140, %cst_124 {dimension_numbers = #tpu.dot_dimension_numbers<[1], [0], [0], [1], [0, 0, 1, 1], [], []>} : vector<128x128xbf16>, vector<128x128xbf16>, vector<128x128xf32> -> vector<128x128xf32>
    %c3_125 = arith.constant 3 : index
    %c1_126 = arith.constant 1 : index
    %c0_127 = arith.constant 0 : index
    %c0_128 = arith.constant 0 : index
    %142 = vector.load %arg6[%c3_125, %c1_126, %c0_127, %c0_128] : memref<4x2x1x128xf32, #tpu.memory_space<vmem>>, vector<1x1x1x128xf32>
    %143 = vector.shape_cast %142 : vector<1x1x1x128xf32> to vector<1x128xf32>
    %144 = vector.broadcast %143 : vector<1x128xf32> to vector<128x128xf32>
    %145 = arith.addf %141, %144 : vector<128x128xf32>
    %cst_129 = arith.constant 0.000000e+00 : f32
    %146 = vector.broadcast %cst_129 : f32 to vector<128x128xf32>
    %147 = arith.maximumf %145, %146 : vector<128x128xf32>
    %148 = arith.truncf %147 : vector<128x128xf32> to vector<128x128xbf16>
    %c3_130 = arith.constant 3 : index
    %c0_131 = arith.constant 0 : index
    %c0_132 = arith.constant 0 : index
    %149 = vector.load %arg7[%c3_130, %c0_131, %c0_132] : memref<4x128x128xbf16, #tpu.memory_space<vmem>>, vector<1x128x128xbf16>
    %150 = vector.shape_cast %149 : vector<1x128x128xbf16> to vector<128x128xbf16>
    %cst_133 = arith.constant dense<0.000000e+00> : vector<128x128xf32>
    %151 = tpu.matmul %148, %150, %cst_133 {dimension_numbers = #tpu.dot_dimension_numbers<[1], [0], [0], [1], [0, 0, 1, 1], [], []>} : vector<128x128xbf16>, vector<128x128xbf16>, vector<128x128xf32> -> vector<128x128xf32>
    %c3_134 = arith.constant 3 : index
    %c0_135 = arith.constant 0 : index
    %c0_136 = arith.constant 0 : index
    %152 = vector.load %arg8[%c3_134, %c0_135, %c0_136] : memref<4x1x128xf32, #tpu.memory_space<vmem>>, vector<1x1x128xf32>
    %153 = vector.shape_cast %152 : vector<1x1x128xf32> to vector<1x128xf32>
    %154 = vector.broadcast %153 : vector<1x128xf32> to vector<128x128xf32>
    %155 = arith.addf %151, %154 : vector<128x128xf32>
    %156 = arith.addf %117, %155 : vector<128x128xf32>
    %c0_137 = arith.constant 0 : index
    %c0_138 = arith.constant 0 : index
    %157 = vector.load %arg9[%c0_137, %c0_138] : memref<1x128xf32, #tpu.memory_space<vmem>>, vector<1x128xf32>
    %158 = vector.broadcast %157 : vector<1x128xf32> to vector<128x128xf32>
    %159 = arith.mulf %156, %158 : vector<128x128xf32>
    %160 = math.absf %159 : vector<128x128xf32>
    %cst_139 = arith.constant 0.000000e+00 : f32
    %161 = vector.broadcast %cst_139 : f32 to vector<128x128xf32>
    %162 = arith.subf %161, %160 : vector<128x128xf32>
    %163 = math.exp %162 : vector<128x128xf32>
    %164 = math.log1p %163 : vector<128x128xf32>
    %cst_140 = arith.constant 2.000000e+00 : f32
    %165 = vector.broadcast %cst_140 : f32 to vector<128x128xf32>
    %166 = arith.mulf %165, %164 : vector<128x128xf32>
    %167 = arith.addf %160, %166 : vector<128x128xf32>
    %cst_141 = arith.constant 0.000000e+00 : f32
    %168 = vector.broadcast %cst_141 : f32 to vector<128x128xf32>
    %169 = arith.subf %168, %167 : vector<128x128xf32>
    %cst_142 = arith.constant dense<0.000000e+00> : vector<128xf32>
    %170 = vector.multi_reduction <add>, %169, %cst_142 [1] : vector<128x128xf32> to vector<128xf32>
    %171 = vector.shape_cast %170 : vector<128xf32> to vector<128x1xf32>
    %c0_143 = arith.constant 0 : index
    %c0_144 = arith.constant 0 : index
    %172 = memref.load %arg1[%c0_143, %c0_144] : memref<1x1xf32, #tpu.memory_space<smem>>
    %173 = vector.broadcast %172 : f32 to vector<128x1xf32>
    %174 = arith.addf %171, %173 : vector<128x1xf32>
    %c0_145 = arith.constant 0 : index
    %c0_146 = arith.constant 0 : index
    %175 = vector.load %arg10[%c0_145, %c0_146] : memref<128x1xf32, #tpu.memory_space<vmem>>, vector<128x1xf32>
    tpu.vector_store %arg10[%c0_145, %c0_146], %174 {strides = array<i32>} : memref<128x1xf32, #tpu.memory_space<vmem>>, vector<128x1xf32>,
    return
  }
  func.func @transform_0(%arg0: i32) -> (i32, i32) {
    %c0_i32 = arith.constant 0 : i32
    %c0_i32_0 = arith.constant 0 : i32
    %c0_i32_1 = arith.constant 0 : i32
    return %c0_i32, %c0_i32_0 : i32, i32
  }
  func.func @transform_1(%arg0: i32) -> (i32, i32) {
    %c0_i32 = arith.constant 0 : i32
    %c0_i32_0 = arith.constant 0 : i32
    return %arg0, %c0_i32 : i32, i32
  }
  func.func @transform_2(%arg0: i32) -> (i32, i32, i32) {
    %c0_i32 = arith.constant 0 : i32
    %c0_i32_0 = arith.constant 0 : i32
    %c0_i32_1 = arith.constant 0 : i32
    %c0_i32_2 = arith.constant 0 : i32
    return %c0_i32, %c0_i32_0, %c0_i32_1 : i32, i32, i32
  }
  func.func @transform_3(%arg0: i32) -> (i32, i32, i32) {
    %c0_i32 = arith.constant 0 : i32
    %c0_i32_0 = arith.constant 0 : i32
    %c0_i32_1 = arith.constant 0 : i32
    %c0_i32_2 = arith.constant 0 : i32
    return %c0_i32, %c0_i32_0, %c0_i32_1 : i32, i32, i32
  }
  func.func @transform_4(%arg0: i32) -> (i32, i32, i32, i32) {
    %c0_i32 = arith.constant 0 : i32
    %c0_i32_0 = arith.constant 0 : i32
    %c0_i32_1 = arith.constant 0 : i32
    %c0_i32_2 = arith.constant 0 : i32
    %c0_i32_3 = arith.constant 0 : i32
    return %c0_i32, %c0_i32_0, %c0_i32_1, %c0_i32_2 : i32, i32, i32, i32
  }
  func.func @transform_5(%arg0: i32) -> (i32, i32, i32, i32) {
    %c0_i32 = arith.constant 0 : i32
    %c0_i32_0 = arith.constant 0 : i32
    %c0_i32_1 = arith.constant 0 : i32
    %c0_i32_2 = arith.constant 0 : i32
    %c0_i32_3 = arith.constant 0 : i32
    return %c0_i32, %c0_i32_0, %c0_i32_1, %c0_i32_2 : i32, i32, i32, i32
  }
  func.func @transform_6(%arg0: i32) -> (i32, i32, i32) {
    %c0_i32 = arith.constant 0 : i32
    %c0_i32_0 = arith.constant 0 : i32
    %c0_i32_1 = arith.constant 0 : i32
    %c0_i32_2 = arith.constant 0 : i32
    return %c0_i32, %c0_i32_0, %c0_i32_1 : i32, i32, i32
  }
  func.func @transform_7(%arg0: i32) -> (i32, i32, i32) {
    %c0_i32 = arith.constant 0 : i32
    %c0_i32_0 = arith.constant 0 : i32
    %c0_i32_1 = arith.constant 0 : i32
    %c0_i32_2 = arith.constant 0 : i32
    return %c0_i32, %c0_i32_0, %c0_i32_1 : i32, i32, i32
  }
  func.func @transform_8(%arg0: i32) -> (i32, i32) {
    %c0_i32 = arith.constant 0 : i32
    %c0_i32_0 = arith.constant 0 : i32
    %c0_i32_1 = arith.constant 0 : i32
    return %c0_i32, %c0_i32_0 : i32, i32
  }
  func.func @transform_9(%arg0: i32) -> (i32, i32) {
    %c0_i32 = arith.constant 0 : i32
    %c0_i32_0 = arith.constant 0 : i32
    return %arg0, %c0_i32 : i32, i32
  }
}

</mosaic_0001>

<bundles_post_ra>
// kernel: tpu_custom_call.1
= control target key start
LH: loop header
LB: loop body
LE: loop exit
PB: predicated region body
PF: predicated region fallthrough
CT: control target
= control target key end

     0   :  { %s5174_s0 = inlined_call_operand.<no memory space> [shape: f32[1,1], index: 0, kind: input, shape index: {}]   ;;  %s5175_s1 = inlined_call_operand.hbm [shape: f32[256,128], index: 1, kind: input, shape index: {}]   ;;  %s5176_s2 = inlined_call_operand.hbm [shape: bf16[4,128,128], index: 2, kind: input, shape index: {}]   ;;  %s5177_s3 = inlined_call_operand.hbm [shape: f32[4,1,128], index: 3, kind: input, shape index: {}]   ;;  %s5178_s4 = inlined_call_operand.hbm [shape: bf16[4,2,128,128], index: 4, kind: input, shape index: {}]   ;;  %s5179_s5 = inlined_call_operand.hbm [shape: f32[4,2,1,128], index: 5, kind: input, shape index: {}]   ;;  %s5180_s6 = inlined_call_operand.hbm [shape: bf16[4,128,128], index: 6, kind: input, shape index: {}]   ;;  %s5181_s7 = inlined_call_operand.vmem [shape: f32[4,1,128], index: 7, kind: input, shape index: {}]   ;;  %s5182_s8 = inlined_call_operand.vmem [shape: f32[1,128], index: 8, kind: input, shape index: {}]   ;;  %s5183_s9 = inlined_call_operand.vmem [shape: f32[256,1], index: 9, kind: output, shape index: {}]  }
   0x1   :  { %5185 = sst [smem:[#allocation17_spill]] %s5176_s2 }
   0x2   :  { %14 = sst [smem:[#allocation2]] %s5174_s0 }
   0x3   :  { %15 = vsyncpa [#allocation4], 0 }
   0x4   :  { %17 = vsyncpa [#allocation4 + $0x1], 0 }
   0x5   :  { %18 = vsyncpa [#allocation6], 0 }
   0x6   :  { %19 = vsyncpa [#allocation9], 0 }
   0x7   :  { %20 = vsyncpa [#allocation12], 0  ;;  %s4333_s11 = smov 0   ;;  %s4335_s12 = smov 0  }
   0x8   :  { %s4337_s13 = smov 0   ;;  %s4339_s14 = smov 0  }
   0x9 LB: > { %s5186_s2 = sld [smem:[#allocation17_spill]]  ;;  %s5184_s17 = sadd.s32 4294967295, %s4267_s14   ;;  %s4267_s14 = sphi %s4339_s14, %s5196_s14   ;;  %s4263_s13 = sphi %s4337_s13, %s5195_s13   ;;  %s4259_s12 = sphi %s4335_s12, %s5194_s12   ;;  %s4255_s11 = sphi %s4333_s11, %s5193_s11  }
   0xa   : > { %p3199_p0 = scmp.ge.s32.totalorder %s4267_s14, 1  ;;  %p4360_p1 = scmp.eq.s32.totalorder %s5184_s17, 0 }
   0xb   : > { %p251_p2 = scmp.lt.s32.totalorder %s4267_s14, 3  ;;  %s4269_s20 = smov [#allocation5]  }
   0xc   : > { %s267_s21 = sshll.u32 %s4269_s20, 4  ;;  %s293_s24 = sshll.u32 %s5178_s4, 4  ;;  %s268_s21 = int_to_ptr.vmem [resolvable:$true] %s267_s21  ;;  %s294_s24 = int_to_ptr.hbm [resolvable:$true] %s293_s24 }
   0xd   : > { %p4365_p3 = pnand %p3199_p0, %p251_p2  ;;  %s279_s28 = sshll.u32 %s5177_s3, 4  ;;  %s280_s28 = int_to_ptr.hbm [resolvable:$true] %s279_s28 }
   0xe   : > { %s4270_s29 = smov [#allocation8]   ;;  %s4271_s10 = smov 64  }
   0xf   : > { %s265_s16 = sshll.u32 %s5186_s2, 4  ;;  %p3886_p4 = pneg %p4365_p3  ;;  %s266_s16 = int_to_ptr.hbm [resolvable:$true] %s265_s16 }
  0x10   : > { %s295_s30 = sshll.u32 %s4270_s29, 4  ;;  %s4272_s0 = smov 4   ;;  %s296_s30 = int_to_ptr.vmem [resolvable:$true] %s295_s30 }
  0x11   : > { %p4376_p5 = pnand %p3886_p4, %p4360_p1  ;;  %s4273_s15 = smov [#allocation7]  }
  0x12   : > { %s281_s20 = sshll.u32 %s4273_s15, 4  ;;  %s307_s26 = sshll.u32 %s5179_s5, 4  ;;  %s282_s20 = int_to_ptr.vmem [resolvable:$true] %s281_s20  ;;  %s308_s26 = int_to_ptr.hbm [resolvable:$true] %s307_s26 }
  0x13   : > { %3889 = dma.hbm_to_vmem [thread:$0]  (!%p4376_p5), %s266_s16, 4096, %s268_s21, [#allocation6], %s4271_s10, %s4271_s10, %s4272_s0  }
  0x14   : > { %3895 = dma.hbm_to_vmem [thread:$0]  (!%p4376_p5), %s294_s24, 8192, %s296_s30, [#allocation9], %s4271_s10, %s4271_s10, %s4272_s0  }
  0x15   : > { %s4274_s27 = smov 16   ;;  %s4275_s29 = smov 1  }
  0x16   : > { %3892 = dma.hbm_to_vmem [thread:$0]  (!%p4376_p5), %s280_s28, 64, %s282_s20, [#allocation6], %s4274_s27, %s4274_s27, %s4275_s29  }
  0x17   : > { %s4276_s16 = smov [#allocation10]   ;;  %s321_s15 = sshll.u32 %s5180_s6, 4  ;;  %s322_s15 = int_to_ptr.hbm [resolvable:$true] %s321_s15 }
  0x18   : > { %s309_s21 = sshll.u32 %s4276_s16, 4  ;;  %s4277_s28 = smov [#allocation11]   ;;  %s310_s21 = int_to_ptr.vmem [resolvable:$true] %s309_s21 }
  0x19   : > { %3898 = dma.hbm_to_vmem [thread:$0]  (!%p4376_p5), %s308_s26, 128, %s310_s21, [#allocation9], %s4274_s27, %s4274_s27, %s4275_s29  }
  0x1a   : > { %s323_s20 = sshll.u32 %s4277_s28, 4  ;;  %s4400_s22 = sadd.s32 1, %s4267_s14   ;;  %s324_s20 = int_to_ptr.vmem [resolvable:$true] %s323_s20 }
  0x1b   : > { %3901 = dma.hbm_to_vmem [thread:$0]  (!%p4376_p5), %s322_s15, 4096, %s324_s20, [#allocation12], %s4271_s10, %s4271_s10, %s4272_s0  }
  0x1c   : > { %s51_s23 = ssub.s32 %s4267_s14, %s4400_s22  ;;  %s54_s16 = sadd.s32 1, %s4263_s13 }
  0x1d   : > { %p52_p6 = scmp.eq.s32.totalorder %s51_s23, 0  ;;  %p61_p7 = scmp.ne.s32.totalorder %s4263_s13, %s4259_s12 }
  0x1e   : > { %p62_p8 = scmp.eq.s32.totalorder %s4267_s14, 0  ;;  %p67_p9 = scmp.ne.s32.totalorder %s4259_s12, %s4255_s11 }
  0x1f   : > { %s4411_s24 = scalar_select %p52_p6, %s4263_s13, %s54_s16  }
  0x20   : > { %p63_p10 = por %p62_p8, %p61_p7  ;;  %p4415_p11 = por %p4360_p1, %p67_p9 }
  0x21   : > { %p3911_p12 = scmp.lt.s32.totalorder %s4267_s14, 2  ;;  %s343_s25 = sand.u32 1, %s4263_s13  }
  0x22   : > { %s3206_s10 = sshll.u32 %s343_s25, 7  ;;  %s3735_s0 = sshll.u32 %s4267_s14, 7 }
  0x23   : > { %s352_s21 = scalar_lea.hbm %s5175_s1, %s3735_s0  ;;  %s347_s30 = scalar_lea.vmem [#allocation3], %s3206_s10 }
  0x24   : > { %s355_s15 = sshll.u32 %s347_s30, 4  ;;  %s353_s28 = sshll.u32 %s352_s21, 4  ;;  %s356_s15 = int_to_ptr.vmem [resolvable:$true] %s355_s15  ;;  %s354_s28 = int_to_ptr.hbm [resolvable:$true] %s353_s28 }
  0x25   : > { %p4425_p13 = pnand %p3911_p12, %p63_p10  ;;  %s344_s20 = scalar_lea.sflag [#allocation4], %s343_s25 }
  0x26   : > { %s4191_s23 = sshra.s32 %s354_s28, 4  ;;  %s4198_s27 = scalar_lea.hbm %s5175_s1, 256  ;;  %s4192_s23 = int_to_ptr.hbm [resolvable:$true] %s4191_s23 }
  0x27   : > { %s4193_s16 = scalar_lea.hbm %s4192_s23, 128  ;;  %p4195_p2 = pneg %p4425_p13 }
  0x28   : > { %p4194_p0 = scmp.ne.s32.totalorder %s4192_s23, %s4193_s16  ;;  %p4199_p6 = scmp.lt.s32.totalorder %s4192_s23, %s5175_s1 }
  0x29   : > { %p4200_p7 = scmp.lt.s32.totalorder %s4198_s27, %s4193_s16 }
  0x2a   : > { %p4196_p4 = pnand %p4195_p2, %p4194_p0 }
  0x2b   : > { %p4201_p8 = por %p4200_p7, %p4199_p6 }
  0x2c   : > { %p4197_p5 = pneg %p4196_p4 }
  0x2e   : > { %p4202_p9 = pnand %p4201_p8, %p4197_p5 }
  0x30   : > { %4205 = shalt.err (!%p4202_p9)
}
  0x31   : > { %s4278_s25 = smov 128   ;;  %s4279_s30 = smov 8  }
  0x32   : > { %3905 = dma.hbm_to_vmem [thread:$0]  (!%p4425_p13), %s354_s28, 2048, %s356_s15, %s344_s20, %s4278_s25, %s4278_s25, %s4279_s30  }
  0x33   : > { %367 = sbr.rel (%p4365_p3) target bundleno = 2645 (0xa55), region = 56  ;;  %s369_s0 = sand.u32 (!%p4365_p3), 1, %s4259_s12  }
  0x34   : > { %s3210_s10 = sshll.u32 (!%p4365_p3), %s369_s0, 7  ;;  %s370_s17 = scalar_lea.sflag (!%p4365_p3), [#allocation4], %s369_s0 }
  0x35   : > { %s4442_s2 = scalar_lea.vmem (!%p4365_p3), [#allocation3], %s3210_s10 }
  0x38   : > { %4238 = dma.done.wait (%p4415_p11), %s370_s17, 2048  }
  0x39   : > { %4240 = vsyncadd (%p4415_p11), %s370_s17, 4294965248 }
  0x3a   : > { %4242 = dma.done.wait (%p4360_p1), [#allocation6], 4160  }
  0x3b   : > { %4244 = vsyncadd (%p4360_p1), [#allocation6], 4294963136 }
  0x3c   : > { %4246 = dma.done.wait (%p4360_p1), [#allocation9], 8320  }
  0x3d   : > { %4248 = vsyncadd (%p4360_p1), [#allocation9], 4294958976 }
  0x3e   : > { %4250 = dma.done.wait (%p4360_p1), [#allocation12], 4096  }
  0x3f   : > { %4252 = vsyncadd (%p4360_p1), [#allocation12], 4294963200  ;;  %v3743_v0 = vld [vmem:[#allocation5 + $0x38] sm:$0xff]  ;;  %v3742_v1 = vld [vmem:[#allocation5 + $0x30] sm:$0xff]  ;;  %s5192_s16 = sadd.s32 4294967295, %s4267_s14   ;;  %s3047_s29 = sld [smem:[#allocation2]] }
  0x40   : > { %533 = vmatpush.bf16.msra.mxu0 %v3743_v0  ;;  %v3741_v2 = vld [vmem:[#allocation5 + $0x28] sm:$0xff]  ;;  %v3740_v3 = vld [vmem:[#allocation5 + $0x20] sm:$0xff]  ;;  %v3739_v4 = vld [vmem:[#allocation5 + $0x18] sm:$0xff]  ;;  %s3216_s27 = sshll.u32 %s5192_s16, 4 }
  0x41   : > { %v3738_v5 = vld [vmem:[#allocation5 + $0x10] sm:$0xff]  ;;  %v3737_v6 = vld [vmem:[#allocation5 + $0x8] sm:$0xff]  ;;  %v3736_v7 = vld [vmem:[#allocation5] sm:$0xff]  ;;  %p436_p1 = scmp.lt.s32.totalorder %s3216_s27, 31 }
  0x42   : > { %v4461_v8 = vld [vmem:[%s4442_s2] sm:$0xff]  ;;  %v4464_v9 = vld [vmem:[%s4442_s2 + $0x8] sm:$0xff]  ;;  %v4469_v11 = vld [vmem:[%s4442_s2 + $0x10] sm:$0xff] }
  0x43   : > { %v457_v10 = vpack.c.bf16 %v4464_v9, %v4461_v8  ;;  %v4472_v12 = vld [vmem:[%s4442_s2 + $0x18] sm:$0xff]  ;;  %v4477_v14 = vld [vmem:[%s4442_s2 + $0x20] sm:$0xff]  ;;  %v4480_v15 = vld [vmem:[%s4442_s2 + $0x28] sm:$0xff]  ;;  %s5198_s27 = smov (!%p436_p1, %s3216_s27), 31 }
  0x44   : > { %534 = vmatpush.bf16.msra.mxu0 %v3742_v1  ;;  %v458_v13 = vpack.c.bf16 %v4472_v12, %v4469_v11  ;;  %v459_v16 = vpack.c.bf16 %v4480_v15, %v4477_v14  ;;  %v4485_v17 = vld [vmem:[%s4442_s2 + $0x30] sm:$0xff]  ;;  %v4488_v18 = vld [vmem:[%s4442_s2 + $0x38] sm:$0xff]  ;;  %v4493_v20 = vld [vmem:[%s4442_s2 + $0x40] sm:$0xff]  ;;  %s3217_s14 = sshll.u32 %s5198_s27, 3 }
  0x45   : > { %v460_v19 = vpack.c.bf16 %v4488_v18, %v4485_v17  ;;  %v4496_v21 = vld [vmem:[%s4442_s2 + $0x48] sm:$0xff]  ;;  %v3751_v23 = vld [vmem:[#allocation8 + $0x38] sm:$0xff]  ;;  %v4501_v24 = vld [vmem:[%s4442_s2 + $0x50] sm:$0xff]  ;;  %s5127_s30 = scalar_lea.vmem %s5183_s9, %s3217_s14 }
  0x46   : > { %v461_v22 = vpack.c.bf16 %v4496_v21, %v4493_v20  ;;  %674 = vmatpush.bf16.msra.mxu1 %v3751_v23  ;;  %v4504_v25 = vld [vmem:[%s4442_s2 + $0x58] sm:$0xff]  ;;  %v3749_v28 = vld [vmem:[#allocation8 + $0x28] sm:$0xff]  ;;  %v3748_v29 = vld [vmem:[#allocation8 + $0x20] sm:$0xff] }
  0x47   : > { %v462_v26 = vpack.c.bf16 %v4504_v25, %v4501_v24  ;;  %v3750_v27 = vld [vmem:[#allocation8 + $0x30] sm:$0xff]  ;;  %v4509_v30 = vld [vmem:[%s4442_s2 + $0x60] sm:$0xff]  ;;  %v4512_v31 = vld [vmem:[%s4442_s2 + $0x68] sm:$0xff] }
  0x48   : > { %535 = vmatpush.bf16.msra.mxu0 %v3741_v2  ;;  %v3747_v32 = vld [vmem:[#allocation8 + $0x18] sm:$0xff]  ;;  %v463_v33 = vpack.c.bf16 %v4512_v31, %v4509_v30  ;;  %v3746_v34 = vld [vmem:[#allocation8 + $0x10] sm:$0xff]  ;;  %v3745_v35 = vld [vmem:[#allocation8 + $0x8] sm:$0xff] }
  0x49   : > { %v3744_v36 = vld [vmem:[#allocation8] sm:$0xff]  ;;  %v4517_v37 = vld [vmem:[%s4442_s2 + $0x70] sm:$0xff]  ;;  %v4520_v38 = vld [vmem:[%s4442_s2 + $0x78] sm:$0xff] }
  0x4a   : > { %675 = vmatpush.bf16.msra.mxu1 %v3750_v27  ;;  %v464_v39 = vpack.c.bf16 %v4520_v38, %v4517_v37  ;;  %v4524_v41 = vld [vmem:[#allocation7] ss:$0 sm:$0xff] }
  0x4c   : > { %536 = vmatpush.bf16.msra.mxu0 %v3740_v3 }
  0x4e   : > { %676 = vmatpush.bf16.msra.mxu1 %v3749_v28  ;;  %v3759_v28 = vld [vmem:[#allocation8 + $0x78] sm:$0xff] }
  0x4f   : > { %817 = vmatpush.bf16.msra.mxu2 %v3759_v28 }
  0x50   : > { %537 = vmatpush.bf16.msra.mxu0 %v3739_v4 }
  0x52   : > { %677 = vmatpush.bf16.msra.mxu1 %v3748_v29 }
  0x54   : > { %538 = vmatpush.bf16.msra.mxu0 %v3738_v5 }
  0x56   : > { %678 = vmatpush.bf16.msra.mxu1 %v3747_v32 }
  0x58   : > { %539 = vmatpush.bf16.msra.mxu0 %v3737_v6 }
  0x5a   : > { %679 = vmatpush.bf16.msra.mxu1 %v3746_v34  ;;  %v3758_v34 = vld [vmem:[#allocation8 + $0x70] sm:$0xff] }
  0x5b   : > { %818 = vmatpush.bf16.msra.mxu2 %v3758_v34 }
  0x5c   : > { %540 = vmatpush.bf16.msra.mxu0 %v3736_v7 }
  0x5e   : > { %680 = vmatpush.bf16.msra.mxu1 %v3745_v35 }
  0x5f   : > { %541 = vmatmul.bf16.vlgmr.msra.gmra.mxu0 %v457_v10 }
  0x62   : > { %681 = vmatpush.bf16.msra.mxu1 %v3744_v36  ;;  %v3757_v36 = vld [vmem:[#allocation8 + $0x68] sm:$0xff] }
  0x63   : > { %819 = vmatpush.bf16.msra.mxu2 %v3757_v36 }
  0x6f   : > { %546 = vmatmul.bf16.gmra.mxu0 %v458_v13 }
  0x7f   : > { %551 = vmatmul.bf16.gmra.mxu0 %v459_v16 }
  0x8f   : > { %556 = vmatmul.bf16.gmra.mxu0 %v460_v19 }
  0x9f   : > { %561 = vmatmul.bf16.gmra.mxu0 %v461_v22 }
  0xaf   : > { %566 = vmatmul.bf16.gmra.mxu0 %v462_v26 }
  0xbf   : > { %571 = vmatmul.bf16.gmra.mxu0 %v463_v33 }
  0xcf   : > { %576 = vmatmul.bf16.gmra.mxu0 %v464_v39  ;;  %v3756_v39 = vld [vmem:[#allocation8 + $0x60] sm:$0xff] }
  0xd0   : > { %820 = vmatpush.bf16.msra.mxu2 %v3756_v39 }
  0xdc   : > { %v542_v40 = vpop.f32.mrf.mxu0 }
  0xdd   : > { %v543_v42 = vadd.f32 %v4524_v41, %v542_v40 }
  0xdf   : > { %v582_v45 = vmax.f32 %v543_v42, 0.0 }
  0xe4   : > { %v544_v43 = vpop.f32.mrf.mxu0 }
  0xe5   : > { %v545_v44 = vadd.f32 %v4524_v41, %v544_v43 }
  0xe7   : > { %v583_v46 = vmax.f32 %v545_v44, 0.0  ;;  %v3755_v44 = vld [vmem:[#allocation8 + $0x58] sm:$0xff] }
  0xe8   : > { %821 = vmatpush.bf16.msra.mxu2 %v3755_v44 }
  0xe9   : > { %v598_v47 = vpack.c.bf16 %v583_v46, %v582_v45 }
  0xeb   : > { %682 = vmatmul.bf16.vlgmr.msra.gmra.mxu1 %v598_v47 }
  0xec   : > { %v547_v48 = vpop.f32.mrf.mxu0 }
  0xed   : > { %v548_v49 = vadd.f32 %v4524_v41, %v547_v48  ;;  %v3754_v48 = vld [vmem:[#allocation8 + $0x50] sm:$0xff] }
  0xee   : > { %822 = vmatpush.bf16.msra.mxu2 %v3754_v48 }
  0xef   : > { %v584_v52 = vmax.f32 %v548_v49, 0.0 }
  0xf4   : > { %v549_v50 = vpop.f32.mrf.mxu0 }
  0xf5   : > { %v550_v51 = vadd.f32 %v4524_v41, %v549_v50  ;;  %v3753_v50 = vld [vmem:[#allocation8 + $0x48] sm:$0xff] }
  0xf6   : > { %823 = vmatpush.bf16.msra.mxu2 %v3753_v50 }
  0xf7   : > { %v585_v53 = vmax.f32 %v550_v51, 0.0  ;;  %v3752_v51 = vld [vmem:[#allocation8 + $0x40] sm:$0xff] }
  0xf9   : > { %v599_v54 = vpack.c.bf16 %v585_v53, %v584_v52 }
  0xfa   : > { %824 = vmatpush.bf16.msra.mxu2 %v3752_v51 }
  0xfb   : > { %687 = vmatmul.bf16.gmra.mxu1 %v599_v54 }
  0xfc   : > { %v552_v55 = vpop.f32.mrf.mxu0 }
  0xfd   : > { %v553_v56 = vadd.f32 %v4524_v41, %v552_v55 }
  0xff   : > { %v586_v59 = vmax.f32 %v553_v56, 0.0 }
 0x104   : > { %v554_v57 = vpop.f32.mrf.mxu0 }
 0x105   : > { %v555_v58 = vadd.f32 %v4524_v41, %v554_v57 }
 0x107   : > { %v587_v60 = vmax.f32 %v555_v58, 0.0 }
 0x109   : > { %v600_v61 = vpack.c.bf16 %v587_v60, %v586_v59  ;;  %v4542_v59 = vld [vmem:[#allocation10] ss:$0 sm:$0xff] }
 0x10b   : > { %692 = vmatmul.bf16.gmra.mxu1 %v600_v61 }
 0x10c   : > { %v557_v62 = vpop.f32.mrf.mxu0 }
 0x10d   : > { %v558_v63 = vadd.f32 %v4524_v41, %v557_v62 }
 0x10f   : > { %v588_v2 = vmax.f32 %v558_v63, 0.0 }
 0x114   : > { %v559_v0 = vpop.f32.mrf.mxu0 }
 0x115   : > { %v560_v1 = vadd.f32 %v4524_v41, %v559_v0 }
 0x117   : > { %v589_v3 = vmax.f32 %v560_v1, 0.0 }
 0x119   : > { %v601_v4 = vpack.c.bf16 %v589_v3, %v588_v2 }
 0x11b   : > { %697 = vmatmul.bf16.gmra.mxu1 %v601_v4 }
 0x11c   : > { %v562_v5 = vpop.f32.mrf.mxu0 }
 0x11d   : > { %v563_v6 = vadd.f32 %v4524_v41, %v562_v5 }
 0x11f   : > { %v590_v13 = vmax.f32 %v563_v6, 0.0 }
 0x124   : > { %v564_v7 = vpop.f32.mrf.mxu0 }
 0x125   : > { %v565_v10 = vadd.f32 %v4524_v41, %v564_v7 }
 0x127   : > { %v591_v16 = vmax.f32 %v565_v10, 0.0 }
 0x129   : > { %v602_v19 = vpack.c.bf16 %v591_v16, %v590_v13 }
 0x12b   : > { %702 = vmatmul.bf16.gmra.mxu1 %v602_v19 }
 0x12c   : > { %v567_v22 = vpop.f32.mrf.mxu0 }
 0x12d   : > { %v568_v23 = vadd.f32 %v4524_v41, %v567_v22 }
 0x12f   : > { %v592_v29 = vmax.f32 %v568_v23, 0.0 }
 0x134   : > { %v569_v26 = vpop.f32.mrf.mxu0 }
 0x135   : > { %v570_v27 = vadd.f32 %v4524_v41, %v569_v26 }
 0x137   : > { %v593_v32 = vmax.f32 %v570_v27, 0.0 }
 0x139   : > { %v603_v33 = vpack.c.bf16 %v593_v32, %v592_v29 }
 0x13b   : > { %707 = vmatmul.bf16.gmra.mxu1 %v603_v33 }
 0x13c   : > { %v572_v35 = vpop.f32.mrf.mxu0 }
 0x13d   : > { %v573_v40 = vadd.f32 %v4524_v41, %v572_v35 }
 0x13f   : > { %v594_v45 = vmax.f32 %v573_v40, 0.0 }
 0x144   : > { %v574_v42 = vpop.f32.mrf.mxu0 }
 0x145   : > { %v575_v43 = vadd.f32 %v4524_v41, %v574_v42 }
 0x147   : > { %v595_v46 = vmax.f32 %v575_v43, 0.0 }
 0x149   : > { %v604_v47 = vpack.c.bf16 %v595_v46, %v594_v45 }
 0x14b   : > { %712 = vmatmul.bf16.gmra.mxu1 %v604_v47 }
 0x14c   : > { %v577_v49 = vpop.f32.mrf.mxu0 }
 0x14d   : > { %v578_v52 = vadd.f32 %v4524_v41, %v577_v49 }
 0x14f   : > { %v596_v55 = vmax.f32 %v578_v52, 0.0 }
 0x154   : > { %v579_v53 = vpop.f32.mrf.mxu0 }
 0x155   : > { %v580_v54 = vadd.f32 %v4524_v41, %v579_v53  ;;  %v3767_v53 = vld [vmem:[#allocation11 + $0x38] sm:$0xff] }
 0x156   : > { %958 = vmatpush.bf16.msra.mxu3 %v3767_v53  ;;  %v3772_v53 = vld [vmem:[#allocation5 + $0x60] sm:$0xff] }
 0x157   : > { %v597_v56 = vmax.f32 %v580_v54, 0.0 }
 0x159   : > { %v605_v57 = vpack.c.bf16 %v597_v56, %v596_v55  ;;  %v3766_v55 = vld [vmem:[#allocation11 + $0x30] sm:$0xff]  ;;  %v3765_v56 = vld [vmem:[#allocation11 + $0x28] sm:$0xff] }
 0x15a   : > { %959 = vmatpush.bf16.msra.mxu3 %v3766_v55 }
 0x15b   : > { %717 = vmatmul.bf16.gmra.mxu1 %v605_v57 }
 0x15e   : > { %960 = vmatpush.bf16.msra.mxu3 %v3765_v56 }
 0x168   : > { %v683_v58 = vpop.f32.mrf.mxu1 }
 0x169   : > { %v684_v60 = vadd.f32 %v4542_v59, %v683_v58 }
 0x16b   : > { %v723_v63 = vmax.f32 %v684_v60, 0.0 }
 0x170   : > { %v685_v61 = vpop.f32.mrf.mxu1 }
 0x171   : > { %v686_v62 = vadd.f32 %v4542_v59, %v685_v61  ;;  %v3764_v61 = vld [vmem:[#allocation11 + $0x20] sm:$0xff] }
 0x172   : > { %961 = vmatpush.bf16.msra.mxu3 %v3764_v61 }
 0x173   : > { %v724_v0 = vmax.f32 %v686_v62, 0.0 }
 0x175   : > { %v739_v1 = vpack.c.bf16 %v724_v0, %v723_v63 }
 0x177   : > { %825 = vmatmul.bf16.vlgmr.msra.gmra.mxu2 %v739_v1 }
 0x178   : > { %v688_v2 = vpop.f32.mrf.mxu1 }
 0x179   : > { %v689_v3 = vadd.f32 %v4542_v59, %v688_v2  ;;  %v3763_v2 = vld [vmem:[#allocation11 + $0x18] sm:$0xff] }
 0x17a   : > { %962 = vmatpush.bf16.msra.mxu3 %v3763_v2 }
 0x17b   : > { %v725_v5 = vmax.f32 %v689_v3, 0.0  ;;  %v3762_v3 = vld [vmem:[#allocation11 + $0x10] sm:$0xff] }
 0x17e   : > { %963 = vmatpush.bf16.msra.mxu3 %v3762_v3 }
 0x180   : > { %v690_v41 = vpop.f32.mrf.mxu1 }
 0x181   : > { %v691_v4 = vadd.f32 %v4542_v59, %v690_v41 }
 0x183   : > { %v726_v6 = vmax.f32 %v691_v4, 0.0 }
 0x185   : > { %v740_v7 = vpack.c.bf16 %v726_v6, %v725_v5  ;;  %v3761_v5 = vld [vmem:[#allocation11 + $0x8] sm:$0xff] }
 0x186   : > { %964 = vmatpush.bf16.msra.mxu3 %v3761_v5  ;;  %v3770_v5 = vld [vmem:[#allocation5 + $0x50] sm:$0xff] }
 0x187   : > { %830 = vmatmul.bf16.gmra.mxu2 %v740_v7 }
 0x188   : > { %v693_v10 = vpop.f32.mrf.mxu1 }
 0x189   : > { %v694_v13 = vadd.f32 %v4542_v59, %v693_v10 }
 0x18b   : > { %v727_v22 = vmax.f32 %v694_v13, 0.0  ;;  %v3760_v13 = vld [vmem:[#allocation11] sm:$0xff] }
 0x18c   : > { %965 = vmatpush.bf16.msra.mxu3 %v3760_v13 }
 0x190   : > { %v695_v16 = vpop.f32.mrf.mxu1 }
 0x191   : > { %v696_v19 = vadd.f32 %v4542_v59, %v695_v16 }
 0x193   : > { %v728_v23 = vmax.f32 %v696_v19, 0.0 }
 0x195   : > { %v741_v26 = vpack.c.bf16 %v728_v23, %v727_v22  ;;  %v4560_v22 = vld [vmem:[#allocation10 + $0x1] ss:$0 sm:$0xff]  ;;  %v3775_v23 = vld [vmem:[#allocation5 + $0x78] sm:$0xff] }
 0x196   : > { %1101 = vmatpush.bf16.msrb.mxu0 %v3775_v23  ;;  %v3769_v23 = vld [vmem:[#allocation5 + $0x48] sm:$0xff] }
 0x197   : > { %835 = vmatmul.bf16.gmra.mxu2 %v741_v26 }
 0x198   : > { %v698_v27 = vpop.f32.mrf.mxu1 }
 0x199   : > { %v699_v28 = vadd.f32 %v4542_v59, %v698_v27 }
 0x19b   : > { %v729_v33 = vmax.f32 %v699_v28, 0.0 }
 0x1a0   : > { %v700_v29 = vpop.f32.mrf.mxu1 }
 0x1a1   : > { %v701_v32 = vadd.f32 %v4542_v59, %v700_v29 }
 0x1a3   : > { %v730_v34 = vmax.f32 %v701_v32, 0.0 }
 0x1a5   : > { %v742_v35 = vpack.c.bf16 %v730_v34, %v729_v33  ;;  %v3774_v34 = vld [vmem:[#allocation5 + $0x70] sm:$0xff] }
 0x1a6   : > { %1102 = vmatpush.bf16.msrb.mxu0 %v3774_v34 }
 0x1a7   : > { %840 = vmatmul.bf16.gmra.mxu2 %v742_v35 }
 0x1a8   : > { %v703_v36 = vpop.f32.mrf.mxu1 }
 0x1a9   : > { %v704_v39 = vadd.f32 %v4542_v59, %v703_v36 }
 0x1ab   : > { %v731_v43 = vmax.f32 %v704_v39, 0.0 }
 0x1b0   : > { %v705_v40 = vpop.f32.mrf.mxu1 }
 0x1b1   : > { %v706_v42 = vadd.f32 %v4542_v59, %v705_v40 }
 0x1b3   : > { %v732_v44 = vmax.f32 %v706_v42, 0.0 }
 0x1b5   : > { %v743_v45 = vpack.c.bf16 %v732_v44, %v731_v43 }
 0x1b7   : > { %845 = vmatmul.bf16.gmra.mxu2 %v743_v45  ;;  %v3773_v45 = vld [vmem:[#allocation5 + $0x68] sm:$0xff] }
 0x1b8   : > { %v708_v46 = vpop.f32.mrf.mxu1  ;;  %1103 = vmatpush.bf16.msrb.mxu0 %v3773_v45  ;;  %v3783_v45 = vld [vmem:[#allocation8 + $0xb8] sm:$0xff] }
 0x1b9   : > { %v709_v47 = vadd.f32 %v4542_v59, %v708_v46  ;;  %1244 = vmatpush.bf16.msrb.mxu1 %v3783_v45 }
 0x1bb   : > { %v733_v50 = vmax.f32 %v709_v47, 0.0 }
 0x1bc   : > { %1104 = vmatpush.bf16.msrb.mxu0 %v3772_v53 }
 0x1c0   : > { %v710_v48 = vpop.f32.mrf.mxu1 }
 0x1c1   : > { %v711_v49 = vadd.f32 %v4542_v59, %v710_v48 }
 0x1c3   : > { %v734_v51 = vmax.f32 %v711_v49, 0.0 }
 0x1c5   : > { %v744_v52 = vpack.c.bf16 %v734_v51, %v733_v50 }
 0x1c7   : > { %850 = vmatmul.bf16.gmra.mxu2 %v744_v52 }
 0x1c8   : > { %v713_v54 = vpop.f32.mrf.mxu1 }
 0x1c9   : > { %v714_v57 = vadd.f32 %v4542_v59, %v713_v54 }
 0x1cb   : > { %v735_v62 = vmax.f32 %v714_v57, 0.0 }
 0x1d0   : > { %v715_v58 = vpop.f32.mrf.mxu1 }
 0x1d1   : > { %v716_v60 = vadd.f32 %v4542_v59, %v715_v58 }
 0x1d3   : > { %v736_v63 = vmax.f32 %v716_v60, 0.0 }
 0x1d5   : > { %v745_v0 = vpack.c.bf16 %v736_v63, %v735_v62  ;;  %v3771_v62 = vld [vmem:[#allocation5 + $0x58] sm:$0xff] }
 0x1d6   : > { %1105 = vmatpush.bf16.msrb.mxu0 %v3771_v62 }
 0x1d7   : > { %855 = vmatmul.bf16.gmra.mxu2 %v745_v0 }
 0x1d8   : > { %v718_v1 = vpop.f32.mrf.mxu1 }
 0x1d9   : > { %v719_v41 = vadd.f32 %v4542_v59, %v718_v1 }
 0x1da   : > { %1106 = vmatpush.bf16.msrb.mxu0 %v3770_v5 }
 0x1db   : > { %v737_v7 = vmax.f32 %v719_v41, 0.0 }
 0x1de   : > { %1107 = vmatpush.bf16.msrb.mxu0 %v3769_v23 }
 0x1e0   : > { %v720_v4 = vpop.f32.mrf.mxu1 }
 0x1e1   : > { %v721_v6 = vadd.f32 %v4542_v59, %v720_v4 }
 0x1e3   : > { %v738_v10 = vmax.f32 %v721_v6, 0.0 }
 0x1e5   : > { %v746_v16 = vpack.c.bf16 %v738_v10, %v737_v7 }
 0x1e7   : > { %860 = vmatmul.bf16.gmra.mxu2 %v746_v16 }
 0x1fa   : > { %v826_v19 = vpop.f32.mrf.mxu2 }
 0x1fb   : > { %v827_v26 = vadd.f32 %v4560_v22, %v826_v19 }
 0x1fd   : > { %v866_v29 = vmax.f32 %v827_v26, 0.0 }
 0x202   : > { %v828_v27 = vpop.f32.mrf.mxu2 }
 0x203   : > { %v829_v28 = vadd.f32 %v4560_v22, %v828_v27  ;;  %v3768_v27 = vld [vmem:[#allocation5 + $0x40] sm:$0xff] }
 0x204   : > { %1108 = vmatpush.bf16.msrb.mxu0 %v3768_v27 }
 0x205   : > { %v867_v32 = vmax.f32 %v829_v28, 0.0 }
 0x207   : > { %v882_v59 = vpack.c.bf16 %v867_v32, %v866_v29 }
 0x209   : > { %966 = vmatmul.bf16.vlgmr.msra.gmra.mxu3 %v882_v59 }
 0x20a   : > { %v831_v33 = vpop.f32.mrf.mxu2 }
 0x20b   : > { %v832_v35 = vadd.f32 %v4560_v22, %v831_v33 }
 0x20d   : > { %v868_v40 = vmax.f32 %v832_v35, 0.0 }
 0x212   : > { %v833_v36 = vpop.f32.mrf.mxu2 }
 0x213   : > { %v834_v39 = vadd.f32 %v4560_v22, %v833_v36 }
 0x215   : > { %v869_v42 = vmax.f32 %v834_v39, 0.0 }
 0x217   : > { %v883_v43 = vpack.c.bf16 %v869_v42, %v868_v40 }
 0x219   : > { %971 = vmatmul.bf16.gmra.mxu3 %v883_v43 }
 0x21a   : > { %v836_v44 = vpop.f32.mrf.mxu2 }
 0x21b   : > { %v837_v46 = vadd.f32 %v4560_v22, %v836_v44 }
 0x21d   : > { %v870_v49 = vmax.f32 %v837_v46, 0.0 }
 0x222   : > { %v838_v47 = vpop.f32.mrf.mxu2 }
 0x223   : > { %v839_v48 = vadd.f32 %v4560_v22, %v838_v47  ;;  %v4581_v47 = vld [vmem:[%s5181_s7] ss:$0 sm:$0xff] }
 0x225   : > { %v871_v50 = vmax.f32 %v839_v48, 0.0 }
 0x227   : > { %v884_v51 = vpack.c.bf16 %v871_v50, %v870_v49 }
 0x229   : > { %976 = vmatmul.bf16.gmra.mxu3 %v884_v51  ;;  %v3782_v51 = vld [vmem:[#allocation8 + $0xb0] sm:$0xff] }
 0x22a   : > { %v841_v52 = vpop.f32.mrf.mxu2  ;;  %1245 = vmatpush.bf16.msrb.mxu1 %v3782_v51  ;;  %v4663_v51 = vld [vmem:[#allocation7 + $0x1] ss:$0 sm:$0xff] }
 0x22b   : > { %v842_v54 = vadd.f32 %v4560_v22, %v841_v52 }
 0x22d   : > { %v872_v57 = vmax.f32 %v842_v54, 0.0 }
 0x232   : > { %v843_v55 = vpop.f32.mrf.mxu2 }
 0x233   : > { %v844_v56 = vadd.f32 %v4560_v22, %v843_v55 }
 0x235   : > { %v873_v58 = vmax.f32 %v844_v56, 0.0 }
 0x237   : > { %v885_v60 = vpack.c.bf16 %v873_v58, %v872_v57  ;;  %v3781_v58 = vld [vmem:[#allocation8 + $0xa8] sm:$0xff] }
 0x238   : > { %1246 = vmatpush.bf16.msrb.mxu1 %v3781_v58 }
 0x239   : > { %981 = vmatmul.bf16.gmra.mxu3 %v885_v60 }
 0x23a   : > { %v846_v61 = vpop.f32.mrf.mxu2 }
 0x23b   : > { %v847_v63 = vadd.f32 %v4560_v22, %v846_v61 }
 0x23d   : > { %v874_v2 = vmax.f32 %v847_v63, 0.0 }
 0x242   : > { %v848_v0 = vpop.f32.mrf.mxu2 }
 0x243   : > { %v849_v1 = vadd.f32 %v4560_v22, %v848_v0 }
 0x245   : > { %v875_v3 = vmax.f32 %v849_v1, 0.0 }
 0x247   : > { %v886_v41 = vpack.c.bf16 %v875_v3, %v874_v2  ;;  %v3780_v2 = vld [vmem:[#allocation8 + $0xa0] sm:$0xff] }
 0x248   : > { %1247 = vmatpush.bf16.msrb.mxu1 %v3780_v2 }
 0x249   : > { %986 = vmatmul.bf16.gmra.mxu3 %v886_v41 }
 0x24a   : > { %v851_v4 = vpop.f32.mrf.mxu2 }
 0x24b   : > { %v852_v6 = vadd.f32 %v4560_v22, %v851_v4 }
 0x24d   : > { %v876_v13 = vmax.f32 %v852_v6, 0.0 }
 0x252   : > { %v853_v7 = vpop.f32.mrf.mxu2 }
 0x253   : > { %v854_v10 = vadd.f32 %v4560_v22, %v853_v7 }
 0x255   : > { %v877_v16 = vmax.f32 %v854_v10, 0.0 }
 0x257   : > { %v887_v19 = vpack.c.bf16 %v877_v16, %v876_v13 }
 0x259   : > { %991 = vmatmul.bf16.gmra.mxu3 %v887_v19 }
 0x25a   : > { %v856_v26 = vpop.f32.mrf.mxu2 }
 0x25b   : > { %v857_v28 = vadd.f32 %v4560_v22, %v856_v26 }
 0x25d   : > { %v878_v59 = vmax.f32 %v857_v28, 0.0 }
 0x262   : > { %v858_v29 = vpop.f32.mrf.mxu2 }
 0x263   : > { %v859_v32 = vadd.f32 %v4560_v22, %v858_v29 }
 0x265   : > { %v879_v33 = vmax.f32 %v859_v32, 0.0 }
 0x267   : > { %v888_v34 = vpack.c.bf16 %v879_v33, %v878_v59 }
 0x269   : > { %996 = vmatmul.bf16.gmra.mxu3 %v888_v34  ;;  %v3776_v34 = vld [vmem:[#allocation8 + $0x80] sm:$0xff] }
 0x26a   : > { %v861_v35 = vpop.f32.mrf.mxu2 }
 0x26b   : > { %v862_v36 = vadd.f32 %v4560_v22, %v861_v35 }
 0x26d   : > { %v880_v42 = vmax.f32 %v862_v36, 0.0 }
 0x272   : > { %v863_v39 = vpop.f32.mrf.mxu2 }
 0x273   : > { %v864_v40 = vadd.f32 %v4560_v22, %v863_v39 }
 0x275   : > { %v881_v43 = vmax.f32 %v864_v40, 0.0 }
 0x277   : > { %v889_v44 = vpack.c.bf16 %v881_v43, %v880_v42 }
 0x279   : > { %1001 = vmatmul.bf16.gmra.mxu3 %v889_v44 }
 0x28c   : > { %v967_v46 = vpop.f32.mrf.mxu3 }
 0x28d   : > { %v968_v48 = vadd.f32 %v4581_v47, %v967_v46 }
 0x28f   : > { %v4586_v22 = vadd.f32 %v968_v48, %v4461_v8 }
 0x294   : > { %v969_v49 = vpop.f32.mrf.mxu3 }
 0x295   : > { %v970_v50 = vadd.f32 %v4581_v47, %v969_v49 }
 0x297   : > { %v4589_v52 = vadd.f32 %v970_v50, %v4464_v9 }
 0x299   : > { %v1023_v53 = vpack.c.bf16 %v4589_v52, %v4586_v22 }
 0x29b   : > { %1109 = vmatmul.bf16.vlgmr.msrb.gmra.mxu0 %v1023_v53 }
 0x29c   : > { %v972_v54 = vpop.f32.mrf.mxu3 }
 0x29d   : > { %v973_v55 = vadd.f32 %v4581_v47, %v972_v54 }
 0x29f   : > { %v4596_v60 = vadd.f32 %v973_v55, %v4469_v11 }
 0x2a4   : > { %v974_v56 = vpop.f32.mrf.mxu3 }
 0x2a5   : > { %v975_v57 = vadd.f32 %v4581_v47, %v974_v56  ;;  %v3790_v56 = vld [vmem:[#allocation8 + $0xf0] sm:$0xff] }
 0x2a7   : > { %v4599_v8 = vadd.f32 %v975_v57, %v4472_v12 }
 0x2a9   : > { %v1024_v9 = vpack.c.bf16 %v4599_v8, %v4596_v60 }
 0x2ab   : > { %1114 = vmatmul.bf16.gmra.mxu0 %v1024_v9 }
 0x2ac   : > { %v977_v61 = vpop.f32.mrf.mxu3 }
 0x2ad   : > { %v978_v62 = vadd.f32 %v4581_v47, %v977_v61 }
 0x2af   : > { %v4606_v1 = vadd.f32 %v978_v62, %v4477_v14 }
 0x2b4   : > { %v979_v63 = vpop.f32.mrf.mxu3 }
 0x2b5   : > { %v980_v0 = vadd.f32 %v4581_v47, %v979_v63 }
 0x2b7   : > { %v4609_v11 = vadd.f32 %v980_v0, %v4480_v15  ;;  %v3779_v15 = vld [vmem:[#allocation8 + $0x98] sm:$0xff]  ;;  %v3789_v0 = vld [vmem:[#allocation8 + $0xe8] sm:$0xff] }
 0x2b8   : > { %1248 = vmatpush.bf16.msrb.mxu1 %v3779_v15 }
 0x2b9   : > { %v1025_v12 = vpack.c.bf16 %v4609_v11, %v4606_v1 }
 0x2bb   : > { %1119 = vmatmul.bf16.gmra.mxu0 %v1025_v12 }
 0x2bc   : > { %v982_v3 = vpop.f32.mrf.mxu3 }
 0x2bd   : > { %v983_v41 = vadd.f32 %v4581_v47, %v982_v3 }
 0x2bf   : > { %v4616_v6 = vadd.f32 %v983_v41, %v4485_v17 }
 0x2c4   : > { %v984_v4 = vpop.f32.mrf.mxu3 }
 0x2c5   : > { %v985_v5 = vadd.f32 %v4581_v47, %v984_v4 }
 0x2c7   : > { %v4619_v14 = vadd.f32 %v985_v5, %v4488_v18  ;;  %v3778_v18 = vld [vmem:[#allocation8 + $0x90] sm:$0xff] }
 0x2c8   : > { %1249 = vmatpush.bf16.msrb.mxu1 %v3778_v18 }
 0x2c9   : > { %v1026_v7 = vpack.c.bf16 %v4619_v14, %v4616_v6 }
 0x2cb   : > { %1124 = vmatmul.bf16.gmra.mxu0 %v1026_v7  ;;  %v3788_v7 = vld [vmem:[#allocation8 + $0xe0] sm:$0xff] }
 0x2cc   : > { %v987_v10 = vpop.f32.mrf.mxu3 }
 0x2cd   : > { %v988_v13 = vadd.f32 %v4581_v47, %v987_v10 }
 0x2cf   : > { %v4626_v23 = vadd.f32 %v988_v13, %v4493_v20 }
 0x2d4   : > { %v989_v16 = vpop.f32.mrf.mxu3 }
 0x2d5   : > { %v990_v19 = vadd.f32 %v4581_v47, %v989_v16 }
 0x2d7   : > { %v4629_v17 = vadd.f32 %v990_v19, %v4496_v21  ;;  %v3777_v21 = vld [vmem:[#allocation8 + $0x88] sm:$0xff] }
 0x2d8   : > { %1250 = vmatpush.bf16.msrb.mxu1 %v3777_v21 }
 0x2d9   : > { %v1027_v26 = vpack.c.bf16 %v4629_v17, %v4626_v23 }
 0x2db   : > { %1129 = vmatmul.bf16.gmra.mxu0 %v1027_v26 }
 0x2dc   : > { %v992_v27 = vpop.f32.mrf.mxu3  ;;  %1251 = vmatpush.bf16.msrb.mxu1 %v3776_v34 }
 0x2dd   : > { %v993_v28 = vadd.f32 %v4581_v47, %v992_v27 }
 0x2df   : > { %v4636_v59 = vadd.f32 %v993_v28, %v4501_v24  ;;  %v3787_v28 = vld [vmem:[#allocation8 + $0xd8] sm:$0xff] }
 0x2e4   : > { %v994_v29 = vpop.f32.mrf.mxu3 }
 0x2e5   : > { %v995_v32 = vadd.f32 %v4581_v47, %v994_v29 }
 0x2e7   : > { %v4639_v20 = vadd.f32 %v995_v32, %v4504_v25 }
 0x2e9   : > { %v1028_v33 = vpack.c.bf16 %v4639_v20, %v4636_v59 }
 0x2eb   : > { %1134 = vmatmul.bf16.gmra.mxu0 %v1028_v33 }
 0x2ec   : > { %v997_v35 = vpop.f32.mrf.mxu3 }
 0x2ed   : > { %v998_v36 = vadd.f32 %v4581_v47, %v997_v35 }
 0x2ef   : > { %v4646_v24 = vadd.f32 %v998_v36, %v4509_v30 }
 0x2f4   : > { %v999_v39 = vpop.f32.mrf.mxu3 }
 0x2f5   : > { %v1000_v40 = vadd.f32 %v4581_v47, %v999_v39  ;;  %v3786_v39 = vld [vmem:[#allocation8 + $0xd0] sm:$0xff] }
 0x2f7   : > { %v4649_v25 = vadd.f32 %v1000_v40, %v4512_v31  ;;  %v3791_v31 = vld [vmem:[#allocation8 + $0xf8] sm:$0xff] }
 0x2f8   : > { %1387 = vmatpush.bf16.msrb.mxu2 %v3791_v31  ;;  %v3785_v31 = vld [vmem:[#allocation8 + $0xc8] sm:$0xff] }
 0x2f9   : > { %v1029_v42 = vpack.c.bf16 %v4649_v25, %v4646_v24 }
 0x2fb   : > { %1139 = vmatmul.bf16.gmra.mxu0 %v1029_v42 }
 0x2fc   : > { %v1002_v43 = vpop.f32.mrf.mxu3  ;;  %1388 = vmatpush.bf16.msrb.mxu2 %v3790_v56 }
 0x2fd   : > { %v1003_v44 = vadd.f32 %v4581_v47, %v1002_v43 }
 0x2ff   : > { %v4656_v48 = vadd.f32 %v1003_v44, %v4517_v37 }
 0x300   : > { %1389 = vmatpush.bf16.msrb.mxu2 %v3789_v0 }
 0x304   : > { %v1004_v45 = vpop.f32.mrf.mxu3  ;;  %1390 = vmatpush.bf16.msrb.mxu2 %v3788_v7 }
 0x305   : > { %v1005_v46 = vadd.f32 %v4581_v47, %v1004_v45 }
 0x307   : > { %v4659_v49 = vadd.f32 %v1005_v46, %v4520_v38 }
 0x308   : > { %1391 = vmatpush.bf16.msrb.mxu2 %v3787_v28 }
 0x309   : > { %v1030_v30 = vpack.c.bf16 %v4659_v49, %v4656_v48 }
 0x30b   : > { %1144 = vmatmul.bf16.gmra.mxu0 %v1030_v30 }
 0x30c   : > { %1392 = vmatpush.bf16.msrb.mxu2 %v3786_v39 }
 0x310   : > { %1393 = vmatpush.bf16.msrb.mxu2 %v3785_v31 }
 0x318   : > { %v1110_v50 = vpop.f32.mrf.mxu0 }
 0x319   : > { %v1111_v53 = vadd.f32 %v4663_v51, %v1110_v50 }
 0x31b   : > { %v1150_v55 = vmax.f32 %v1111_v53, 0.0  ;;  %v3784_v53 = vld [vmem:[#allocation8 + $0xc0] sm:$0xff] }
 0x31c   : > { %1394 = vmatpush.bf16.msrb.mxu2 %v3784_v53 }
 0x320   : > { %v1112_v54 = vpop.f32.mrf.mxu0 }
 0x321   : > { %v1113_v47 = vadd.f32 %v4663_v51, %v1112_v54 }
 0x323   : > { %v1151_v37 = vmax.f32 %v1113_v47, 0.0 }
 0x325   : > { %v1166_v57 = vpack.c.bf16 %v1151_v37, %v1150_v55 }
 0x327   : > { %1252 = vmatmul.bf16.vlgmr.msrb.gmra.mxu1 %v1166_v57 }
 0x328   : > { %v1115_v38 = vpop.f32.mrf.mxu0 }
 0x329   : > { %v1116_v58 = vadd.f32 %v4663_v51, %v1115_v38 }
 0x32b   : > { %v1152_v62 = vmax.f32 %v1116_v58, 0.0 }
 0x330   : > { %v1117_v9 = vpop.f32.mrf.mxu0 }
 0x331   : > { %v1118_v61 = vadd.f32 %v4663_v51, %v1117_v9 }
 0x333   : > { %v1153_v63 = vmax.f32 %v1118_v61, 0.0 }
 0x335   : > { %v1167_v2 = vpack.c.bf16 %v1153_v63, %v1152_v62 }
 0x337   : > { %1257 = vmatmul.bf16.gmra.mxu1 %v1167_v2 }
 0x338   : > { %v1120_v12 = vpop.f32.mrf.mxu0 }
 0x339   : > { %v1121_v3 = vadd.f32 %v4663_v51, %v1120_v12 }
 0x33b   : > { %v1154_v5 = vmax.f32 %v1121_v3, 0.0  ;;  %v4681_v3 = vld [vmem:[#allocation10 + $0x2] ss:$0 sm:$0xff] }
 0x340   : > { %v1122_v41 = vpop.f32.mrf.mxu0 }
 0x341   : > { %v1123_v4 = vadd.f32 %v4663_v51, %v1122_v41  ;;  %v3799_v41 = vld [vmem:[#allocation11 + $0x78] sm:$0xff] }
 0x342   : > { %1530 = vmatpush.bf16.msrb.mxu3 %v3799_v41  ;;  %v3793_v41 = vld [vmem:[#allocation11 + $0x48] sm:$0xff] }
 0x343   : > { %v1155_v15 = vmax.f32 %v1123_v4, 0.0 }
 0x345   : > { %v1168_v10 = vpack.c.bf16 %v1155_v15, %v1154_v5 }
 0x347   : > { %1262 = vmatmul.bf16.gmra.mxu1 %v1168_v10 }
 0x348   : > { %v1125_v13 = vpop.f32.mrf.mxu0 }
 0x349   : > { %v1126_v16 = vadd.f32 %v4663_v51, %v1125_v13 }
 0x34b   : > { %v1156_v26 = vmax.f32 %v1126_v16, 0.0 }
 0x350   : > { %v1127_v19 = vpop.f32.mrf.mxu0 }
 0x351   : > { %v1128_v18 = vadd.f32 %v4663_v51, %v1127_v19 }
 0x353   : > { %v1157_v27 = vmax.f32 %v1128_v18, 0.0 }
 0x355   : > { %v1169_v29 = vpack.c.bf16 %v1157_v27, %v1156_v26 }
 0x357   : > { %1267 = vmatmul.bf16.gmra.mxu1 %v1169_v29 }
 0x358   : > { %v1130_v32 = vpop.f32.mrf.mxu0 }
 0x359   : > { %v1131_v21 = vadd.f32 %v4663_v51, %v1130_v32 }
 0x35b   : > { %v1158_v35 = vmax.f32 %v1131_v21, 0.0  ;;  %v3797_v21 = vld [vmem:[#allocation11 + $0x68] sm:$0xff] }
 0x360   : > { %v1132_v33 = vpop.f32.mrf.mxu0 }
 0x361   : > { %v1133_v34 = vadd.f32 %v4663_v51, %v1132_v33 }
 0x363   : > { %v1159_v36 = vmax.f32 %v1133_v34, 0.0 }
 0x365   : > { %v1170_v40 = vpack.c.bf16 %v1159_v36, %v1158_v35 }
 0x367   : > { %1272 = vmatmul.bf16.gmra.mxu1 %v1170_v40 }
 0x368   : > { %v1135_v42 = vpop.f32.mrf.mxu0 }
 0x369   : > { %v1136_v43 = vadd.f32 %v4663_v51, %v1135_v42 }
 0x36b   : > { %v1160_v46 = vmax.f32 %v1136_v43, 0.0  ;;  %v3796_v43 = vld [vmem:[#allocation11 + $0x60] sm:$0xff] }
 0x370   : > { %v1137_v44 = vpop.f32.mrf.mxu0 }
 0x371   : > { %v1138_v45 = vadd.f32 %v4663_v51, %v1137_v44 }
 0x373   : > { %v1161_v30 = vmax.f32 %v1138_v45, 0.0 }
 0x375   : > { %v1171_v50 = vpack.c.bf16 %v1161_v30, %v1160_v46 }
 0x377   : > { %1277 = vmatmul.bf16.gmra.mxu1 %v1171_v50 }
 0x378   : > { %v1140_v54 = vpop.f32.mrf.mxu0 }
 0x379   : > { %v1141_v47 = vadd.f32 %v4663_v51, %v1140_v54  ;;  %v3795_v54 = vld [vmem:[#allocation11 + $0x58] sm:$0xff] }
 0x37b   : > { %v1162_v56 = vmax.f32 %v1141_v47, 0.0 }
 0x380   : > { %v1142_v55 = vpop.f32.mrf.mxu0 }
 0x381   : > { %v1143_v37 = vadd.f32 %v4663_v51, %v1142_v55 }
 0x383   : > { %v1163_v57 = vmax.f32 %v1143_v37, 0.0 }
 0x385   : > { %v1172_v38 = vpack.c.bf16 %v1163_v57, %v1162_v56 }
 0x387   : > { %1282 = vmatmul.bf16.gmra.mxu1 %v1172_v38 }
 0x388   : > { %v1145_v58 = vpop.f32.mrf.mxu0 }
 0x389   : > { %v1146_v9 = vadd.f32 %v4663_v51, %v1145_v58 }
 0x38b   : > { %v1164_v63 = vmax.f32 %v1146_v9, 0.0  ;;  %v3794_v9 = vld [vmem:[#allocation11 + $0x50] sm:$0xff] }
 0x390   : > { %v1147_v61 = vpop.f32.mrf.mxu0 }
 0x391   : > { %v1148_v62 = vadd.f32 %v4663_v51, %v1147_v61  ;;  %v3798_v51 = vld [vmem:[#allocation11 + $0x70] sm:$0xff] }
 0x392   : > { %1531 = vmatpush.bf16.msrb.mxu3 %v3798_v51 }
 0x393   : > { %v1165_v0 = vmax.f32 %v1148_v62, 0.0 }
 0x395   : > { %v1173_v2 = vpack.c.bf16 %v1165_v0, %v1164_v63 }
 0x396   : > { %1532 = vmatpush.bf16.msrb.mxu3 %v3797_v21 }
 0x397   : > { %1287 = vmatmul.bf16.gmra.mxu1 %v1173_v2 }
 0x39a   : > { %1533 = vmatpush.bf16.msrb.mxu3 %v3796_v43 }
 0x39e   : > { %1534 = vmatpush.bf16.msrb.mxu3 %v3795_v54 }
 0x3a2   : > { %1535 = vmatpush.bf16.msrb.mxu3 %v3794_v9 }
 0x3a4   : > { %v1253_v12 = vpop.f32.mrf.mxu1 }
 0x3a5   : > { %v1254_v4 = vadd.f32 %v4681_v3, %v1253_v12 }
 0x3a6   : > { %1536 = vmatpush.bf16.msrb.mxu3 %v3793_v41 }
 0x3a7   : > { %v1293_v7 = vmax.f32 %v1254_v4, 0.0 }
 0x3ac   : > { %v1255_v5 = vpop.f32.mrf.mxu1 }
 0x3ad   : > { %v1256_v15 = vadd.f32 %v4681_v3, %v1255_v5  ;;  %v3792_v5 = vld [vmem:[#allocation11 + $0x40] sm:$0xff] }
 0x3ae   : > { %1537 = vmatpush.bf16.msrb.mxu3 %v3792_v5  ;;  %v3803_v5 = vld [vmem:[#allocation5 + $0x98] sm:$0xff] }
 0x3af   : > { %v1294_v10 = vmax.f32 %v1256_v15, 0.0 }
 0x3b1   : > { %v1309_v13 = vpack.c.bf16 %v1294_v10, %v1293_v7 }
 0x3b3   : > { %1395 = vmatmul.bf16.vlgmr.msrb.gmra.mxu2 %v1309_v13 }
 0x3b4   : > { %v1258_v16 = vpop.f32.mrf.mxu1 }
 0x3b5   : > { %v1259_v19 = vadd.f32 %v4681_v3, %v1258_v16 }
 0x3b7   : > { %v1295_v27 = vmax.f32 %v1259_v19, 0.0 }
 0x3bc   : > { %v1260_v18 = vpop.f32.mrf.mxu1 }
 0x3bd   : > { %v1261_v26 = vadd.f32 %v4681_v3, %v1260_v18 }
 0x3bf   : > { %v1296_v28 = vmax.f32 %v1261_v26, 0.0 }
 0x3c1   : > { %v1310_v29 = vpack.c.bf16 %v1296_v28, %v1295_v27 }
 0x3c3   : > { %1400 = vmatmul.bf16.gmra.mxu2 %v1310_v29 }
 0x3c4   : > { %v1263_v32 = vpop.f32.mrf.mxu1 }
 0x3c5   : > { %v1264_v33 = vadd.f32 %v4681_v3, %v1263_v32 }
 0x3c7   : > { %v1297_v36 = vmax.f32 %v1264_v33, 0.0  ;;  %v4699_v33 = vld [vmem:[#allocation10 + $0x3] ss:$0 sm:$0xff] }
 0x3cc   : > { %v1265_v34 = vpop.f32.mrf.mxu1 }
 0x3cd   : > { %v1266_v35 = vadd.f32 %v4681_v3, %v1265_v34  ;;  %v3807_v34 = vld [vmem:[#allocation5 + $0xb8] sm:$0xff] }
 0x3ce   : > { %1673 = vmatpush.bf16.msra.mxu0 %v3807_v34  ;;  %v3801_v34 = vld [vmem:[#allocation5 + $0x88] sm:$0xff] }
 0x3cf   : > { %v1298_v39 = vmax.f32 %v1266_v35, 0.0 }
 0x3d1   : > { %v1311_v40 = vpack.c.bf16 %v1298_v39, %v1297_v36 }
 0x3d3   : > { %1405 = vmatmul.bf16.gmra.mxu2 %v1311_v40 }
 0x3d4   : > { %v1268_v42 = vpop.f32.mrf.mxu1 }
 0x3d5   : > { %v1269_v44 = vadd.f32 %v4681_v3, %v1268_v42 }
 0x3d7   : > { %v1299_v30 = vmax.f32 %v1269_v44, 0.0 }
 0x3dc   : > { %v1270_v45 = vpop.f32.mrf.mxu1 }
 0x3dd   : > { %v1271_v46 = vadd.f32 %v4681_v3, %v1270_v45 }
 0x3df   : > { %v1300_v31 = vmax.f32 %v1271_v46, 0.0 }
 0x3e1   : > { %v1312_v50 = vpack.c.bf16 %v1300_v31, %v1299_v30 }
 0x3e3   : > { %1410 = vmatmul.bf16.gmra.mxu2 %v1312_v50 }
 0x3e4   : > { %v1273_v53 = vpop.f32.mrf.mxu1 }
 0x3e5   : > { %v1274_v47 = vadd.f32 %v4681_v3, %v1273_v53 }
 0x3e7   : > { %v1301_v56 = vmax.f32 %v1274_v47, 0.0  ;;  %v3805_v47 = vld [vmem:[#allocation5 + $0xa8] sm:$0xff] }
 0x3ec   : > { %v1275_v55 = vpop.f32.mrf.mxu1 }
 0x3ed   : > { %v1276_v37 = vadd.f32 %v4681_v3, %v1275_v55 }
 0x3ef   : > { %v1302_v57 = vmax.f32 %v1276_v37, 0.0 }
 0x3f1   : > { %v1313_v38 = vpack.c.bf16 %v1302_v57, %v1301_v56 }
 0x3f3   : > { %1415 = vmatmul.bf16.gmra.mxu2 %v1313_v38 }
 0x3f4   : > { %v1278_v58 = vpop.f32.mrf.mxu1 }
 0x3f5   : > { %v1279_v61 = vadd.f32 %v4681_v3, %v1278_v58 }
 0x3f7   : > { %v1303_v0 = vmax.f32 %v1279_v61, 0.0  ;;  %v3804_v61 = vld [vmem:[#allocation5 + $0xa0] sm:$0xff] }
 0x3fc   : > { %v1280_v62 = vpop.f32.mrf.mxu1 }
 0x3fd   : > { %v1281_v63 = vadd.f32 %v4681_v3, %v1280_v62 }
 0x3ff   : > { %v1304_v2 = vmax.f32 %v1281_v63, 0.0 }
 0x401   : > { %v1314_v12 = vpack.c.bf16 %v1304_v2, %v1303_v0 }
 0x403   : > { %1420 = vmatmul.bf16.gmra.mxu2 %v1314_v12 }
 0x404   : > { %v1283_v4 = vpop.f32.mrf.mxu1 }
 0x405   : > { %v1284_v15 = vadd.f32 %v4681_v3, %v1283_v4 }
 0x407   : > { %v1305_v13 = vmax.f32 %v1284_v15, 0.0 }
 0x40c   : > { %v1285_v7 = vpop.f32.mrf.mxu1 }
 0x40d   : > { %v1286_v10 = vadd.f32 %v4681_v3, %v1285_v7 }
 0x40f   : > { %v1306_v16 = vmax.f32 %v1286_v10, 0.0 }
 0x411   : > { %v1315_v51 = vpack.c.bf16 %v1306_v16, %v1305_v13 }
 0x413   : > { %1425 = vmatmul.bf16.gmra.mxu2 %v1315_v51 }
 0x414   : > { %v1288_v19 = vpop.f32.mrf.mxu1 }
 0x415   : > { %v1289_v18 = vadd.f32 %v4681_v3, %v1288_v19 }
 0x417   : > { %v1307_v28 = vmax.f32 %v1289_v18, 0.0  ;;  %v3802_v18 = vld [vmem:[#allocation5 + $0x90] sm:$0xff] }
 0x41c   : > { %v1290_v26 = vpop.f32.mrf.mxu1 }
 0x41d   : > { %v1291_v27 = vadd.f32 %v4681_v3, %v1290_v26  ;;  %v3806_v3 = vld [vmem:[#allocation5 + $0xb0] sm:$0xff] }
 0x41e   : > { %1674 = vmatpush.bf16.msra.mxu0 %v3806_v3 }
 0x41f   : > { %v1308_v29 = vmax.f32 %v1291_v27, 0.0 }
 0x421   : > { %v1316_v32 = vpack.c.bf16 %v1308_v29, %v1307_v28 }
 0x422   : > { %1675 = vmatpush.bf16.msra.mxu0 %v3805_v47  ;;  %v3815_v47 = vld [vmem:[#allocation8 + $0x138] sm:$0xff] }
 0x423   : > { %1430 = vmatmul.bf16.gmra.mxu2 %v1316_v32  ;;  %1816 = vmatpush.bf16.msra.mxu1 %v3815_v47 }
 0x426   : > { %1676 = vmatpush.bf16.msra.mxu0 %v3804_v61 }
 0x42a   : > { %1677 = vmatpush.bf16.msra.mxu0 %v3803_v5 }
 0x42e   : > { %1678 = vmatpush.bf16.msra.mxu0 %v3802_v18 }
 0x432   : > { %1679 = vmatpush.bf16.msra.mxu0 %v3801_v34 }
 0x436   : > { %v1396_v21 = vpop.f32.mrf.mxu2 }
 0x437   : > { %v1397_v35 = vadd.f32 %v4699_v33, %v1396_v21 }
 0x439   : > { %v1436_v40 = vmax.f32 %v1397_v35, 0.0 }
 0x43e   : > { %v1398_v36 = vpop.f32.mrf.mxu2 }
 0x43f   : > { %v1399_v39 = vadd.f32 %v4699_v33, %v1398_v36  ;;  %v3800_v36 = vld [vmem:[#allocation5 + $0x80] sm:$0xff] }
 0x440   : > { %1680 = vmatpush.bf16.msra.mxu0 %v3800_v36 }
 0x441   : > { %v1437_v42 = vmax.f32 %v1399_v39, 0.0 }
 0x443   : > { %v1452_v43 = vpack.c.bf16 %v1437_v42, %v1436_v40 }
 0x445   : > { %1538 = vmatmul.bf16.vlgmr.msrb.gmra.mxu3 %v1452_v43 }
 0x446   : > { %v1401_v44 = vpop.f32.mrf.mxu2 }
 0x447   : > { %v1402_v45 = vadd.f32 %v4699_v33, %v1401_v44 }
 0x449   : > { %v1438_v31 = vmax.f32 %v1402_v45, 0.0 }
 0x44e   : > { %v1403_v46 = vpop.f32.mrf.mxu2 }
 0x44f   : > { %v1404_v30 = vadd.f32 %v4699_v33, %v1403_v46 }
 0x451   : > { %v1439_v50 = vmax.f32 %v1404_v30, 0.0 }
 0x453   : > { %v1453_v53 = vpack.c.bf16 %v1439_v50, %v1438_v31 }
 0x455   : > { %1543 = vmatmul.bf16.gmra.mxu3 %v1453_v53 }
 0x456   : > { %v1406_v54 = vpop.f32.mrf.mxu2 }
 0x457   : > { %v1407_v55 = vadd.f32 %v4699_v33, %v1406_v54 }
 0x459   : > { %v1440_v57 = vmax.f32 %v1407_v55, 0.0 }
 0x45e   : > { %v1408_v37 = vpop.f32.mrf.mxu2 }
 0x45f   : > { %v1409_v56 = vadd.f32 %v4699_v33, %v1408_v37  ;;  %v4720_v37 = vld [vmem:[%s5181_s7 + $0x1] ss:$0 sm:$0xff] }
 0x461   : > { %v1441_v38 = vmax.f32 %v1409_v56, 0.0 }
 0x463   : > { %v1454_v58 = vpack.c.bf16 %v1441_v38, %v1440_v57 }
 0x465   : > { %1548 = vmatmul.bf16.gmra.mxu3 %v1454_v58 }
 0x466   : > { %v1411_v9 = vpop.f32.mrf.mxu2 }
 0x467   : > { %v1412_v62 = vadd.f32 %v4699_v33, %v1411_v9  ;;  %v3814_v9 = vld [vmem:[#allocation8 + $0x130] sm:$0xff] }
 0x468   : > { %1817 = vmatpush.bf16.msra.mxu1 %v3814_v9  ;;  %v4802_v9 = vld [vmem:[#allocation7 + $0x2] ss:$0 sm:$0xff] }
 0x469   : > { %v1442_v2 = vmax.f32 %v1412_v62, 0.0 }
 0x46e   : > { %v1413_v63 = vpop.f32.mrf.mxu2 }
 0x46f   : > { %v1414_v0 = vadd.f32 %v4699_v33, %v1413_v63 }
 0x471   : > { %v1443_v12 = vmax.f32 %v1414_v0, 0.0 }
 0x473   : > { %v1455_v41 = vpack.c.bf16 %v1443_v12, %v1442_v2 }
 0x475   : > { %1553 = vmatmul.bf16.gmra.mxu3 %v1455_v41 }
 0x476   : > { %v1416_v4 = vpop.f32.mrf.mxu2 }
 0x477   : > { %v1417_v15 = vadd.f32 %v4699_v33, %v1416_v4 }
 0x479   : > { %v1444_v13 = vmax.f32 %v1417_v15, 0.0 }
 0x47e   : > { %v1418_v7 = vpop.f32.mrf.mxu2 }
 0x47f   : > { %v1419_v10 = vadd.f32 %v4699_v33, %v1418_v7 }
 0x481   : > { %v1445_v16 = vmax.f32 %v1419_v10, 0.0 }
 0x483   : > { %v1456_v51 = vpack.c.bf16 %v1445_v16, %v1444_v13 }
 0x485   : > { %1558 = vmatmul.bf16.gmra.mxu3 %v1456_v51 }
 0x486   : > { %v1421_v19 = vpop.f32.mrf.mxu2 }
 0x487   : > { %v1422_v26 = vadd.f32 %v4699_v33, %v1421_v19 }
 0x489   : > { %v1446_v29 = vmax.f32 %v1422_v26, 0.0 }
 0x48e   : > { %v1423_v27 = vpop.f32.mrf.mxu2 }
 0x48f   : > { %v1424_v28 = vadd.f32 %v4699_v33, %v1423_v27 }
 0x491   : > { %v1447_v32 = vmax.f32 %v1424_v28, 0.0 }
 0x493   : > { %v1457_v21 = vpack.c.bf16 %v1447_v32, %v1446_v29 }
 0x495   : > { %1563 = vmatmul.bf16.gmra.mxu3 %v1457_v21 }
 0x496   : > { %v1426_v35 = vpop.f32.mrf.mxu2 }
 0x497   : > { %v1427_v39 = vadd.f32 %v4699_v33, %v1426_v35 }
 0x499   : > { %v1448_v43 = vmax.f32 %v1427_v39, 0.0 }
 0x49e   : > { %v1428_v40 = vpop.f32.mrf.mxu2 }
 0x49f   : > { %v1429_v42 = vadd.f32 %v4699_v33, %v1428_v40 }
 0x4a1   : > { %v1449_v44 = vmax.f32 %v1429_v42, 0.0 }
 0x4a3   : > { %v1458_v3 = vpack.c.bf16 %v1449_v44, %v1448_v43 }
 0x4a5   : > { %1568 = vmatmul.bf16.gmra.mxu3 %v1458_v3  ;;  %v3808_v3 = vld [vmem:[#allocation8 + $0x100] sm:$0xff] }
 0x4a6   : > { %v1431_v45 = vpop.f32.mrf.mxu2 }
 0x4a7   : > { %v1432_v46 = vadd.f32 %v4699_v33, %v1431_v45 }
 0x4a9   : > { %v1450_v50 = vmax.f32 %v1432_v46, 0.0 }
 0x4ae   : > { %v1433_v30 = vpop.f32.mrf.mxu2 }
 0x4af   : > { %v1434_v31 = vadd.f32 %v4699_v33, %v1433_v30 }
 0x4b1   : > { %v1451_v53 = vmax.f32 %v1434_v31, 0.0 }
 0x4b3   : > { %v1459_v54 = vpack.c.bf16 %v1451_v53, %v1450_v50 }
 0x4b5   : > { %1573 = vmatmul.bf16.gmra.mxu3 %v1459_v54 }
 0x4c8   : > { %v1539_v55 = vpop.f32.mrf.mxu3 }
 0x4c9   : > { %v1540_v56 = vadd.f32 %v4720_v37, %v1539_v55 }
 0x4cb   : > { %v4725_v58 = vadd.f32 %v1540_v56, %v4586_v22 }
 0x4d0   : > { %v1541_v57 = vpop.f32.mrf.mxu3 }
 0x4d1   : > { %v1542_v38 = vadd.f32 %v4720_v37, %v1541_v57 }
 0x4d3   : > { %v4728_v33 = vadd.f32 %v1542_v38, %v4589_v52  ;;  %v3813_v52 = vld [vmem:[#allocation8 + $0x128] sm:$0xff] }
 0x4d4   : > { %1818 = vmatpush.bf16.msra.mxu1 %v3813_v52 }
 0x4d5   : > { %v1595_v61 = vpack.c.bf16 %v4728_v33, %v4725_v58 }
 0x4d7   : > { %1681 = vmatmul.bf16.vlgmr.msra.gmra.mxu0 %v1595_v61 }
 0x4d8   : > { %v1544_v62 = vpop.f32.mrf.mxu3 }
 0x4d9   : > { %v1545_v63 = vadd.f32 %v4720_v37, %v1544_v62 }
 0x4db   : > { %v4735_v12 = vadd.f32 %v1545_v63, %v4596_v60 }
 0x4e0   : > { %v1546_v0 = vpop.f32.mrf.mxu3 }
 0x4e1   : > { %v1547_v2 = vadd.f32 %v4720_v37, %v1546_v0  ;;  %v3822_v0 = vld [vmem:[#allocation8 + $0x170] sm:$0xff] }
 0x4e3   : > { %v4738_v22 = vadd.f32 %v1547_v2, %v4599_v8  ;;  %v3812_v8 = vld [vmem:[#allocation8 + $0x120] sm:$0xff] }
 0x4e4   : > { %1819 = vmatpush.bf16.msra.mxu1 %v3812_v8 }
 0x4e5   : > { %v1596_v41 = vpack.c.bf16 %v4738_v22, %v4735_v12 }
 0x4e7   : > { %1686 = vmatmul.bf16.gmra.mxu0 %v1596_v41 }
 0x4e8   : > { %v1549_v4 = vpop.f32.mrf.mxu3 }
 0x4e9   : > { %v1550_v5 = vadd.f32 %v4720_v37, %v1549_v4 }
 0x4eb   : > { %v4745_v10 = vadd.f32 %v1550_v5, %v4606_v1 }
 0x4f0   : > { %v1551_v15 = vpop.f32.mrf.mxu3 }
 0x4f1   : > { %v1552_v7 = vadd.f32 %v4720_v37, %v1551_v15 }
 0x4f3   : > { %v4748_v60 = vadd.f32 %v1552_v7, %v4609_v11  ;;  %v3811_v11 = vld [vmem:[#allocation8 + $0x118] sm:$0xff]  ;;  %v3821_v7 = vld [vmem:[#allocation8 + $0x168] sm:$0xff] }
 0x4f4   : > { %1820 = vmatpush.bf16.msra.mxu1 %v3811_v11 }
 0x4f5   : > { %v1597_v13 = vpack.c.bf16 %v4748_v60, %v4745_v10 }
 0x4f7   : > { %1691 = vmatmul.bf16.gmra.mxu0 %v1597_v13 }
 0x4f8   : > { %v1554_v16 = vpop.f32.mrf.mxu3 }
 0x4f9   : > { %v1555_v51 = vadd.f32 %v4720_v37, %v1554_v16 }
 0x4fb   : > { %v4755_v26 = vadd.f32 %v1555_v51, %v4616_v6 }
 0x500   : > { %v1556_v19 = vpop.f32.mrf.mxu3 }
 0x501   : > { %v1557_v18 = vadd.f32 %v4720_v37, %v1556_v19 }
 0x503   : > { %v4758_v1 = vadd.f32 %v1557_v18, %v4619_v14  ;;  %v3810_v14 = vld [vmem:[#allocation8 + $0x110] sm:$0xff] }
 0x504   : > { %1821 = vmatpush.bf16.msra.mxu1 %v3810_v14 }
 0x505   : > { %v1598_v27 = vpack.c.bf16 %v4758_v1, %v4755_v26 }
 0x507   : > { %1696 = vmatmul.bf16.gmra.mxu0 %v1598_v27 }
 0x508   : > { %v1559_v28 = vpop.f32.mrf.mxu3 }
 0x509   : > { %v1560_v29 = vadd.f32 %v4720_v37, %v1559_v28  ;;  %v3820_v28 = vld [vmem:[#allocation8 + $0x160] sm:$0xff] }
 0x50b   : > { %v4765_v34 = vadd.f32 %v1560_v29, %v4626_v23 }
 0x510   : > { %v1561_v32 = vpop.f32.mrf.mxu3 }
 0x511   : > { %v1562_v21 = vadd.f32 %v4720_v37, %v1561_v32 }
 0x513   : > { %v4768_v6 = vadd.f32 %v1562_v21, %v4629_v17  ;;  %v3809_v17 = vld [vmem:[#allocation8 + $0x108] sm:$0xff] }
 0x514   : > { %1822 = vmatpush.bf16.msra.mxu1 %v3809_v17 }
 0x515   : > { %v1599_v35 = vpack.c.bf16 %v4768_v6, %v4765_v34 }
 0x517   : > { %1701 = vmatmul.bf16.gmra.mxu0 %v1599_v35 }
 0x518   : > { %v1564_v36 = vpop.f32.mrf.mxu3  ;;  %1823 = vmatpush.bf16.msra.mxu1 %v3808_v3 }
 0x519   : > { %v1565_v39 = vadd.f32 %v4720_v37, %v1564_v36 }
 0x51b   : > { %v4775_v43 = vadd.f32 %v1565_v39, %v4636_v59 }
 0x520   : > { %v1566_v40 = vpop.f32.mrf.mxu3 }
 0x521   : > { %v1567_v42 = vadd.f32 %v4720_v37, %v1566_v40  ;;  %v3819_v40 = vld [vmem:[#allocation8 + $0x158] sm:$0xff] }
 0x523   : > { %v4778_v23 = vadd.f32 %v1567_v42, %v4639_v20 }
 0x525   : > { %v1600_v44 = vpack.c.bf16 %v4778_v23, %v4775_v43 }
 0x527   : > { %1706 = vmatmul.bf16.gmra.mxu0 %v1600_v44 }
 0x528   : > { %v1569_v45 = vpop.f32.mrf.mxu3 }
 0x529   : > { %v1570_v46 = vadd.f32 %v4720_v37, %v1569_v45 }
 0x52b   : > { %v4785_v59 = vadd.f32 %v1570_v46, %v4646_v24 }
 0x530   : > { %v1571_v30 = vpop.f32.mrf.mxu3 }
 0x531   : > { %v1572_v31 = vadd.f32 %v4720_v37, %v1571_v30 }
 0x533   : > { %v4788_v20 = vadd.f32 %v1572_v31, %v4649_v25  ;;  %v3823_v25 = vld [vmem:[#allocation8 + $0x178] sm:$0xff]  ;;  %v3818_v31 = vld [vmem:[#allocation8 + $0x150] sm:$0xff] }
 0x534   : > { %1959 = vmatpush.bf16.msra.mxu2 %v3823_v25 }
 0x535   : > { %v1601_v50 = vpack.c.bf16 %v4788_v20, %v4785_v59 }
 0x537   : > { %1711 = vmatmul.bf16.gmra.mxu0 %v1601_v50 }
 0x538   : > { %v1574_v53 = vpop.f32.mrf.mxu3  ;;  %1960 = vmatpush.bf16.msra.mxu2 %v3822_v0 }
 0x539   : > { %v1575_v54 = vadd.f32 %v4720_v37, %v1574_v53 }
 0x53b   : > { %v4795_v56 = vadd.f32 %v1575_v54, %v4656_v48 }
 0x53c   : > { %1961 = vmatpush.bf16.msra.mxu2 %v3821_v7 }
 0x540   : > { %v1576_v47 = vpop.f32.mrf.mxu3  ;;  %1962 = vmatpush.bf16.msra.mxu2 %v3820_v28 }
 0x541   : > { %v1577_v55 = vadd.f32 %v4720_v37, %v1576_v47 }
 0x543   : > { %v4798_v57 = vadd.f32 %v1577_v55, %v4659_v49 }
 0x544   : > { %1963 = vmatpush.bf16.msra.mxu2 %v3819_v40 }
 0x545   : > { %v1602_v24 = vpack.c.bf16 %v4798_v57, %v4795_v56 }
 0x547   : > { %1716 = vmatmul.bf16.gmra.mxu0 %v1602_v24 }
 0x548   : > { %1964 = vmatpush.bf16.msra.mxu2 %v3818_v31 }
 0x554   : > { %v1682_v38 = vpop.f32.mrf.mxu0 }
 0x555   : > { %v1683_v61 = vadd.f32 %v4802_v9, %v1682_v38  ;;  %v3817_v38 = vld [vmem:[#allocation8 + $0x148] sm:$0xff] }
 0x556   : > { %1965 = vmatpush.bf16.msra.mxu2 %v3817_v38 }
 0x557   : > { %v1722_v63 = vmax.f32 %v1683_v61, 0.0  ;;  %v3816_v61 = vld [vmem:[#allocation8 + $0x140] sm:$0xff] }
 0x55a   : > { %1966 = vmatpush.bf16.msra.mxu2 %v3816_v61 }
 0x55c   : > { %v1684_v62 = vpop.f32.mrf.mxu0 }
 0x55d   : > { %v1685_v37 = vadd.f32 %v4802_v9, %v1684_v62 }
 0x55f   : > { %v1723_v48 = vmax.f32 %v1685_v37, 0.0 }
 0x561   : > { %v1738_v2 = vpack.c.bf16 %v1723_v48, %v1722_v63 }
 0x563   : > { %1824 = vmatmul.bf16.vlgmr.msra.gmra.mxu1 %v1738_v2 }
 0x564   : > { %v1687_v49 = vpop.f32.mrf.mxu0 }
 0x565   : > { %v1688_v52 = vadd.f32 %v4802_v9, %v1687_v49 }
 0x567   : > { %v1724_v5 = vmax.f32 %v1688_v52, 0.0 }
 0x56c   : > { %v1689_v41 = vpop.f32.mrf.mxu0 }
 0x56d   : > { %v1690_v4 = vadd.f32 %v4802_v9, %v1689_v41 }
 0x56f   : > { %v1725_v15 = vmax.f32 %v1690_v4, 0.0 }
 0x571   : > { %v1739_v8 = vpack.c.bf16 %v1725_v15, %v1724_v5 }
 0x573   : > { %1829 = vmatmul.bf16.gmra.mxu1 %v1739_v8 }
 0x574   : > { %v1692_v13 = vpop.f32.mrf.mxu0 }
 0x575   : > { %v1693_v16 = vadd.f32 %v4802_v9, %v1692_v13 }
 0x577   : > { %v1726_v18 = vmax.f32 %v1693_v16, 0.0  ;;  %v4820_v16 = vld [vmem:[#allocation10 + $0x4] ss:$0 sm:$0xff] }
 0x57c   : > { %v1694_v51 = vpop.f32.mrf.mxu0 }
 0x57d   : > { %v1695_v19 = vadd.f32 %v4802_v9, %v1694_v51  ;;  %v3831_v51 = vld [vmem:[#allocation11 + $0xb8] sm:$0xff] }
 0x57e   : > { %2102 = vmatpush.bf16.msra.mxu3 %v3831_v51  ;;  %v3825_v51 = vld [vmem:[#allocation11 + $0x88] sm:$0xff] }
 0x57f   : > { %v1727_v11 = vmax.f32 %v1695_v19, 0.0 }
 0x581   : > { %v1740_v27 = vpack.c.bf16 %v1727_v11, %v1726_v18 }
 0x583   : > { %1834 = vmatmul.bf16.gmra.mxu1 %v1740_v27 }
 0x584   : > { %v1697_v29 = vpop.f32.mrf.mxu0 }
 0x585   : > { %v1698_v32 = vadd.f32 %v4802_v9, %v1697_v29 }
 0x587   : > { %v1728_v35 = vmax.f32 %v1698_v32, 0.0 }
 0x58c   : > { %v1699_v21 = vpop.f32.mrf.mxu0 }
 0x58d   : > { %v1700_v14 = vadd.f32 %v4802_v9, %v1699_v21 }
 0x58f   : > { %v1729_v36 = vmax.f32 %v1700_v14, 0.0 }
 0x591   : > { %v1741_v39 = vpack.c.bf16 %v1729_v36, %v1728_v35 }
 0x593   : > { %1839 = vmatmul.bf16.gmra.mxu1 %v1741_v39 }
 0x594   : > { %v1702_v42 = vpop.f32.mrf.mxu0 }
 0x595   : > { %v1703_v17 = vadd.f32 %v4802_v9, %v1702_v42 }
 0x597   : > { %v1730_v45 = vmax.f32 %v1703_v17, 0.0  ;;  %v3829_v17 = vld [vmem:[#allocation11 + $0xa8] sm:$0xff] }
 0x59c   : > { %v1704_v44 = vpop.f32.mrf.mxu0 }
 0x59d   : > { %v1705_v3 = vadd.f32 %v4802_v9, %v1704_v44 }
 0x59f   : > { %v1731_v46 = vmax.f32 %v1705_v3, 0.0 }
 0x5a1   : > { %v1742_v30 = vpack.c.bf16 %v1731_v46, %v1730_v45 }
 0x5a3   : > { %1844 = vmatmul.bf16.gmra.mxu1 %v1742_v30 }
 0x5a4   : > { %v1707_v50 = vpop.f32.mrf.mxu0 }
 0x5a5   : > { %v1708_v53 = vadd.f32 %v4802_v9, %v1707_v50 }
 0x5a7   : > { %v1732_v55 = vmax.f32 %v1708_v53, 0.0  ;;  %v3828_v53 = vld [vmem:[#allocation11 + $0xa0] sm:$0xff] }
 0x5ac   : > { %v1709_v54 = vpop.f32.mrf.mxu0 }
 0x5ad   : > { %v1710_v47 = vadd.f32 %v4802_v9, %v1709_v54 }
 0x5af   : > { %v1733_v24 = vmax.f32 %v1710_v47, 0.0 }
 0x5b1   : > { %v1743_v25 = vpack.c.bf16 %v1733_v24, %v1732_v55 }
 0x5b3   : > { %1849 = vmatmul.bf16.gmra.mxu1 %v1743_v25 }
 0x5b4   : > { %v1712_v62 = vpop.f32.mrf.mxu0 }
 0x5b5   : > { %v1713_v37 = vadd.f32 %v4802_v9, %v1712_v62  ;;  %v3827_v62 = vld [vmem:[#allocation11 + $0x98] sm:$0xff] }
 0x5b7   : > { %v1734_v0 = vmax.f32 %v1713_v37, 0.0 }
 0x5bc   : > { %v1714_v63 = vpop.f32.mrf.mxu0 }
 0x5bd   : > { %v1715_v48 = vadd.f32 %v4802_v9, %v1714_v63 }
 0x5bf   : > { %v1735_v2 = vmax.f32 %v1715_v48, 0.0 }
 0x5c1   : > { %v1744_v49 = vpack.c.bf16 %v1735_v2, %v1734_v0 }
 0x5c3   : > { %1854 = vmatmul.bf16.gmra.mxu1 %v1744_v49 }
 0x5c4   : > { %v1717_v52 = vpop.f32.mrf.mxu0 }
 0x5c5   : > { %v1718_v41 = vadd.f32 %v4802_v9, %v1717_v52 }
 0x5c7   : > { %v1736_v15 = vmax.f32 %v1718_v41, 0.0  ;;  %v3826_v41 = vld [vmem:[#allocation11 + $0x90] sm:$0xff] }
 0x5cc   : > { %v1719_v4 = vpop.f32.mrf.mxu0 }
 0x5cd   : > { %v1720_v5 = vadd.f32 %v4802_v9, %v1719_v4  ;;  %v3830_v9 = vld [vmem:[#allocation11 + $0xb0] sm:$0xff] }
 0x5ce   : > { %2103 = vmatpush.bf16.msra.mxu3 %v3830_v9 }
 0x5cf   : > { %v1737_v7 = vmax.f32 %v1720_v5, 0.0 }
 0x5d1   : > { %v1745_v8 = vpack.c.bf16 %v1737_v7, %v1736_v15 }
 0x5d2   : > { %2104 = vmatpush.bf16.msra.mxu3 %v3829_v17 }
 0x5d3   : > { %1859 = vmatmul.bf16.gmra.mxu1 %v1745_v8 }
 0x5d6   : > { %2105 = vmatpush.bf16.msra.mxu3 %v3828_v53 }
 0x5da   : > { %2106 = vmatpush.bf16.msra.mxu3 %v3827_v62 }
 0x5de   : > { %2107 = vmatpush.bf16.msra.mxu3 %v3826_v41 }
 0x5e0   : > { %v1825_v13 = vpop.f32.mrf.mxu1 }
 0x5e1   : > { %v1826_v19 = vadd.f32 %v4820_v16, %v1825_v13 }
 0x5e2   : > { %2108 = vmatpush.bf16.msra.mxu3 %v3825_v51 }
 0x5e3   : > { %v1865_v27 = vmax.f32 %v1826_v19, 0.0 }
 0x5e8   : > { %v1827_v18 = vpop.f32.mrf.mxu1 }
 0x5e9   : > { %v1828_v11 = vadd.f32 %v4820_v16, %v1827_v18  ;;  %v3824_v18 = vld [vmem:[#allocation11 + $0x80] sm:$0xff] }
 0x5ea   : > { %2109 = vmatpush.bf16.msra.mxu3 %v3824_v18  ;;  %v3835_v18 = vld [vmem:[#allocation5 + $0xd8] sm:$0xff] }
 0x5eb   : > { %v1866_v28 = vmax.f32 %v1828_v11, 0.0 }
 0x5ed   : > { %v1881_v29 = vpack.c.bf16 %v1866_v28, %v1865_v27 }
 0x5ef   : > { %1967 = vmatmul.bf16.vlgmr.msra.gmra.mxu2 %v1881_v29 }
 0x5f0   : > { %v1830_v32 = vpop.f32.mrf.mxu1 }
 0x5f1   : > { %v1831_v21 = vadd.f32 %v4820_v16, %v1830_v32 }
 0x5f3   : > { %v1867_v36 = vmax.f32 %v1831_v21, 0.0 }
 0x5f8   : > { %v1832_v14 = vpop.f32.mrf.mxu1 }
 0x5f9   : > { %v1833_v35 = vadd.f32 %v4820_v16, %v1832_v14 }
 0x5fb   : > { %v1868_v39 = vmax.f32 %v1833_v35, 0.0 }
 0x5fd   : > { %v1882_v40 = vpack.c.bf16 %v1868_v39, %v1867_v36 }
 0x5ff   : > { %1972 = vmatmul.bf16.gmra.mxu2 %v1882_v40 }
 0x600   : > { %v1835_v42 = vpop.f32.mrf.mxu1 }
 0x601   : > { %v1836_v44 = vadd.f32 %v4820_v16, %v1835_v42 }
 0x603   : > { %v1869_v46 = vmax.f32 %v1836_v44, 0.0  ;;  %v4838_v44 = vld [vmem:[#allocation10 + $0x5] ss:$0 sm:$0xff] }
 0x608   : > { %v1837_v3 = vpop.f32.mrf.mxu1 }
 0x609   : > { %v1838_v45 = vadd.f32 %v4820_v16, %v1837_v3  ;;  %v3839_v3 = vld [vmem:[#allocation5 + $0xf8] sm:$0xff] }
 0x60a   : > { %2245 = vmatpush.bf16.msrb.mxu0 %v3839_v3  ;;  %v3833_v3 = vld [vmem:[#allocation5 + $0xc8] sm:$0xff] }
 0x60b   : > { %v1870_v30 = vmax.f32 %v1838_v45, 0.0 }
 0x60d   : > { %v1883_v31 = vpack.c.bf16 %v1870_v30, %v1869_v46 }
 0x60f   : > { %1977 = vmatmul.bf16.gmra.mxu2 %v1883_v31 }
 0x610   : > { %v1840_v50 = vpop.f32.mrf.mxu1 }
 0x611   : > { %v1841_v54 = vadd.f32 %v4820_v16, %v1840_v50 }
 0x613   : > { %v1871_v24 = vmax.f32 %v1841_v54, 0.0 }
 0x618   : > { %v1842_v47 = vpop.f32.mrf.mxu1 }
 0x619   : > { %v1843_v55 = vadd.f32 %v4820_v16, %v1842_v47 }
 0x61b   : > { %v1872_v25 = vmax.f32 %v1843_v55, 0.0 }
 0x61d   : > { %v1884_v38 = vpack.c.bf16 %v1872_v25, %v1871_v24 }
 0x61f   : > { %1982 = vmatmul.bf16.gmra.mxu2 %v1884_v38 }
 0x620   : > { %v1845_v61 = vpop.f32.mrf.mxu1 }
 0x621   : > { %v1846_v37 = vadd.f32 %v4820_v16, %v1845_v61 }
 0x623   : > { %v1873_v0 = vmax.f32 %v1846_v37, 0.0  ;;  %v3837_v37 = vld [vmem:[#allocation5 + $0xe8] sm:$0xff] }
 0x628   : > { %v1847_v63 = vpop.f32.mrf.mxu1 }
 0x629   : > { %v1848_v48 = vadd.f32 %v4820_v16, %v1847_v63 }
 0x62b   : > { %v1874_v2 = vmax.f32 %v1848_v48, 0.0 }
 0x62d   : > { %v1885_v49 = vpack.c.bf16 %v1874_v2, %v1873_v0 }
 0x62f   : > { %1987 = vmatmul.bf16.gmra.mxu2 %v1885_v49 }
 0x630   : > { %v1850_v52 = vpop.f32.mrf.mxu1 }
 0x631   : > { %v1851_v4 = vadd.f32 %v4820_v16, %v1850_v52 }
 0x633   : > { %v1875_v7 = vmax.f32 %v1851_v4, 0.0  ;;  %v3836_v4 = vld [vmem:[#allocation5 + $0xe0] sm:$0xff] }
 0x638   : > { %v1852_v5 = vpop.f32.mrf.mxu1 }
 0x639   : > { %v1853_v15 = vadd.f32 %v4820_v16, %v1852_v5 }
 0x63b   : > { %v1876_v8 = vmax.f32 %v1853_v15, 0.0 }
 0x63d   : > { %v1886_v13 = vpack.c.bf16 %v1876_v8, %v1875_v7 }
 0x63f   : > { %1992 = vmatmul.bf16.gmra.mxu2 %v1886_v13 }
 0x640   : > { %v1855_v19 = vpop.f32.mrf.mxu1 }
 0x641   : > { %v1856_v11 = vadd.f32 %v4820_v16, %v1855_v19 }
 0x643   : > { %v1877_v29 = vmax.f32 %v1856_v11, 0.0 }
 0x648   : > { %v1857_v27 = vpop.f32.mrf.mxu1 }
 0x649   : > { %v1858_v28 = vadd.f32 %v4820_v16, %v1857_v27 }
 0x64b   : > { %v1878_v32 = vmax.f32 %v1858_v28, 0.0 }
 0x64d   : > { %v1887_v9 = vpack.c.bf16 %v1878_v32, %v1877_v29 }
 0x64f   : > { %1997 = vmatmul.bf16.gmra.mxu2 %v1887_v9 }
 0x650   : > { %v1860_v21 = vpop.f32.mrf.mxu1 }
 0x651   : > { %v1861_v14 = vadd.f32 %v4820_v16, %v1860_v21 }
 0x653   : > { %v1879_v39 = vmax.f32 %v1861_v14, 0.0  ;;  %v3834_v14 = vld [vmem:[#allocation5 + $0xd0] sm:$0xff] }
 0x658   : > { %v1862_v35 = vpop.f32.mrf.mxu1 }
 0x659   : > { %v1863_v36 = vadd.f32 %v4820_v16, %v1862_v35  ;;  %v3838_v16 = vld [vmem:[#allocation5 + $0xf0] sm:$0xff] }
 0x65a   : > { %2246 = vmatpush.bf16.msrb.mxu0 %v3838_v16 }
 0x65b   : > { %v1880_v40 = vmax.f32 %v1863_v36, 0.0 }
 0x65d   : > { %v1888_v42 = vpack.c.bf16 %v1880_v40, %v1879_v39 }
 0x65e   : > { %2247 = vmatpush.bf16.msrb.mxu0 %v3837_v37  ;;  %v3847_v37 = vld [vmem:[#allocation8 + $0x1b8] sm:$0xff] }
 0x65f   : > { %2002 = vmatmul.bf16.gmra.mxu2 %v1888_v42  ;;  %2388 = vmatpush.bf16.msrb.mxu1 %v3847_v37 }
 0x662   : > { %2248 = vmatpush.bf16.msrb.mxu0 %v3836_v4 }
 0x666   : > { %2249 = vmatpush.bf16.msrb.mxu0 %v3835_v18 }
 0x66a   : > { %2250 = vmatpush.bf16.msrb.mxu0 %v3834_v14 }
 0x66e   : > { %2251 = vmatpush.bf16.msrb.mxu0 %v3833_v3 }
 0x672   : > { %v1968_v17 = vpop.f32.mrf.mxu2 }
 0x673   : > { %v1969_v45 = vadd.f32 %v4838_v44, %v1968_v17 }
 0x675   : > { %v2008_v31 = vmax.f32 %v1969_v45, 0.0 }
 0x67a   : > { %v1970_v46 = vpop.f32.mrf.mxu2 }
 0x67b   : > { %v1971_v30 = vadd.f32 %v4838_v44, %v1970_v46  ;;  %v3832_v46 = vld [vmem:[#allocation5 + $0xc0] sm:$0xff] }
 0x67c   : > { %2252 = vmatpush.bf16.msrb.mxu0 %v3832_v46 }
 0x67d   : > { %v2009_v50 = vmax.f32 %v1971_v30, 0.0 }
 0x67f   : > { %v2024_v53 = vpack.c.bf16 %v2009_v50, %v2008_v31 }
 0x681   : > { %2110 = vmatmul.bf16.vlgmr.msra.gmra.mxu3 %v2024_v53 }
 0x682   : > { %v1973_v54 = vpop.f32.mrf.mxu2 }
 0x683   : > { %v1974_v47 = vadd.f32 %v4838_v44, %v1973_v54 }
 0x685   : > { %v2010_v25 = vmax.f32 %v1974_v47, 0.0 }
 0x68a   : > { %v1975_v55 = vpop.f32.mrf.mxu2 }
 0x68b   : > { %v1976_v24 = vadd.f32 %v4838_v44, %v1975_v55 }
 0x68d   : > { %v2011_v38 = vmax.f32 %v1976_v24, 0.0 }
 0x68f   : > { %v2025_v61 = vpack.c.bf16 %v2011_v38, %v2010_v25 }
 0x691   : > { %2115 = vmatmul.bf16.gmra.mxu3 %v2025_v61 }
 0x692   : > { %v1978_v62 = vpop.f32.mrf.mxu2 }
 0x693   : > { %v1979_v63 = vadd.f32 %v4838_v44, %v1978_v62 }
 0x695   : > { %v2012_v2 = vmax.f32 %v1979_v63, 0.0 }
 0x69a   : > { %v1980_v48 = vpop.f32.mrf.mxu2 }
 0x69b   : > { %v1981_v0 = vadd.f32 %v4838_v44, %v1980_v48  ;;  %v4859_v48 = vld [vmem:[%s5181_s7 + $0x2] ss:$0 sm:$0xff] }
 0x69d   : > { %v2013_v49 = vmax.f32 %v1981_v0, 0.0 }
 0x69f   : > { %v2026_v52 = vpack.c.bf16 %v2013_v49, %v2012_v2 }
 0x6a1   : > { %2120 = vmatmul.bf16.gmra.mxu3 %v2026_v52 }
 0x6a2   : > { %v1983_v41 = vpop.f32.mrf.mxu2 }
 0x6a3   : > { %v1984_v5 = vadd.f32 %v4838_v44, %v1983_v41  ;;  %v3846_v41 = vld [vmem:[#allocation8 + $0x1b0] sm:$0xff] }
 0x6a4   : > { %2389 = vmatpush.bf16.msrb.mxu1 %v3846_v41  ;;  %v4941_v41 = vld [vmem:[#allocation7 + $0x3] ss:$0 sm:$0xff] }
 0x6a5   : > { %v2014_v8 = vmax.f32 %v1984_v5, 0.0 }
 0x6aa   : > { %v1985_v15 = vpop.f32.mrf.mxu2 }
 0x6ab   : > { %v1986_v7 = vadd.f32 %v4838_v44, %v1985_v15 }
 0x6ad   : > { %v2015_v13 = vmax.f32 %v1986_v7, 0.0 }
 0x6af   : > { %v2027_v51 = vpack.c.bf16 %v2015_v13, %v2014_v8 }
 0x6b1   : > { %2125 = vmatmul.bf16.gmra.mxu3 %v2027_v51 }
 0x6b2   : > { %v1988_v19 = vpop.f32.mrf.mxu2 }
 0x6b3   : > { %v1989_v11 = vadd.f32 %v4838_v44, %v1988_v19 }
 0x6b5   : > { %v2016_v29 = vmax.f32 %v1989_v11, 0.0 }
 0x6ba   : > { %v1990_v27 = vpop.f32.mrf.mxu2 }
 0x6bb   : > { %v1991_v28 = vadd.f32 %v4838_v44, %v1990_v27 }
 0x6bd   : > { %v2017_v32 = vmax.f32 %v1991_v28, 0.0 }
 0x6bf   : > { %v2028_v9 = vpack.c.bf16 %v2017_v32, %v2016_v29 }
 0x6c1   : > { %2130 = vmatmul.bf16.gmra.mxu3 %v2028_v9 }
 0x6c2   : > { %v1993_v21 = vpop.f32.mrf.mxu2 }
 0x6c3   : > { %v1994_v35 = vadd.f32 %v4838_v44, %v1993_v21 }
 0x6c5   : > { %v2018_v40 = vmax.f32 %v1994_v35, 0.0 }
 0x6ca   : > { %v1995_v36 = vpop.f32.mrf.mxu2 }
 0x6cb   : > { %v1996_v39 = vadd.f32 %v4838_v44, %v1995_v36 }
 0x6cd   : > { %v2019_v42 = vmax.f32 %v1996_v39, 0.0 }
 0x6cf   : > { %v2029_v17 = vpack.c.bf16 %v2019_v42, %v2018_v40 }
 0x6d1   : > { %2135 = vmatmul.bf16.gmra.mxu3 %v2029_v17 }
 0x6d2   : > { %v1998_v45 = vpop.f32.mrf.mxu2 }
 0x6d3   : > { %v1999_v30 = vadd.f32 %v4838_v44, %v1998_v45 }
 0x6d5   : > { %v2020_v53 = vmax.f32 %v1999_v30, 0.0 }
 0x6da   : > { %v2000_v31 = vpop.f32.mrf.mxu2 }
 0x6db   : > { %v2001_v50 = vadd.f32 %v4838_v44, %v2000_v31 }
 0x6dd   : > { %v2021_v54 = vmax.f32 %v2001_v50, 0.0 }
 0x6df   : > { %v2030_v16 = vpack.c.bf16 %v2021_v54, %v2020_v53 }
 0x6e1   : > { %2140 = vmatmul.bf16.gmra.mxu3 %v2030_v16  ;;  %v3840_v16 = vld [vmem:[#allocation8 + $0x180] sm:$0xff] }
 0x6e2   : > { %v2003_v47 = vpop.f32.mrf.mxu2 }
 0x6e3   : > { %v2004_v55 = vadd.f32 %v4838_v44, %v2003_v47 }
 0x6e5   : > { %v2022_v38 = vmax.f32 %v2004_v55, 0.0 }
 0x6ea   : > { %v2005_v24 = vpop.f32.mrf.mxu2 }
 0x6eb   : > { %v2006_v25 = vadd.f32 %v4838_v44, %v2005_v24 }
 0x6ed   : > { %v2023_v61 = vmax.f32 %v2006_v25, 0.0 }
 0x6ef   : > { %v2031_v62 = vpack.c.bf16 %v2023_v61, %v2022_v38 }
 0x6f1   : > { %2145 = vmatmul.bf16.gmra.mxu3 %v2031_v62 }
 0x704   : > { %v2111_v63 = vpop.f32.mrf.mxu3 }
 0x705   : > { %v2112_v0 = vadd.f32 %v4859_v48, %v2111_v63 }
 0x707   : > { %v4864_v52 = vadd.f32 %v2112_v0, %v4725_v58 }
 0x70c   : > { %v2113_v2 = vpop.f32.mrf.mxu3 }
 0x70d   : > { %v2114_v49 = vadd.f32 %v4859_v48, %v2113_v2 }
 0x70f   : > { %v4867_v44 = vadd.f32 %v2114_v49, %v4728_v33  ;;  %v3845_v33 = vld [vmem:[#allocation8 + $0x1a8] sm:$0xff] }
 0x710   : > { %2390 = vmatpush.bf16.msrb.mxu1 %v3845_v33 }
 0x711   : > { %v2167_v4 = vpack.c.bf16 %v4867_v44, %v4864_v52 }
 0x713   : > { %2253 = vmatmul.bf16.vlgmr.msrb.gmra.mxu0 %v2167_v4 }
 0x714   : > { %v2116_v5 = vpop.f32.mrf.mxu3 }
 0x715   : > { %v2117_v15 = vadd.f32 %v4859_v48, %v2116_v5 }
 0x717   : > { %v4874_v13 = vadd.f32 %v2117_v15, %v4735_v12 }
 0x71c   : > { %v2118_v7 = vpop.f32.mrf.mxu3 }
 0x71d   : > { %v2119_v8 = vadd.f32 %v4859_v48, %v2118_v7 }
 0x71f   : > { %v4877_v58 = vadd.f32 %v2119_v8, %v4738_v22  ;;  %v3844_v22 = vld [vmem:[#allocation8 + $0x1a0] sm:$0xff]  ;;  %v3854_v8 = vld [vmem:[#allocation8 + $0x1f0] sm:$0xff] }
 0x720   : > { %2391 = vmatpush.bf16.msrb.mxu1 %v3844_v22  ;;  %v3853_v22 = vld [vmem:[#allocation8 + $0x1e8] sm:$0xff] }
 0x721   : > { %v2168_v51 = vpack.c.bf16 %v4877_v58, %v4874_v13 }
 0x723   : > { %2258 = vmatmul.bf16.gmra.mxu0 %v2168_v51 }
 0x724   : > { %v2121_v19 = vpop.f32.mrf.mxu3 }
 0x725   : > { %v2122_v18 = vadd.f32 %v4859_v48, %v2121_v19 }
 0x727   : > { %v4884_v28 = vadd.f32 %v2122_v18, %v4745_v10 }
 0x72c   : > { %v2123_v11 = vpop.f32.mrf.mxu3 }
 0x72d   : > { %v2124_v27 = vadd.f32 %v4859_v48, %v2123_v11 }
 0x72f   : > { %v4887_v12 = vadd.f32 %v2124_v27, %v4748_v60  ;;  %v3843_v60 = vld [vmem:[#allocation8 + $0x198] sm:$0xff] }
 0x730   : > { %2392 = vmatpush.bf16.msrb.mxu1 %v3843_v60 }
 0x731   : > { %v2169_v29 = vpack.c.bf16 %v4887_v12, %v4884_v28 }
 0x733   : > { %2263 = vmatmul.bf16.gmra.mxu0 %v2169_v29 }
 0x734   : > { %v2126_v32 = vpop.f32.mrf.mxu3 }
 0x735   : > { %v2127_v9 = vadd.f32 %v4859_v48, %v2126_v32 }
 0x737   : > { %v4894_v35 = vadd.f32 %v2127_v9, %v4755_v26 }
 0x73c   : > { %v2128_v21 = vpop.f32.mrf.mxu3 }
 0x73d   : > { %v2129_v14 = vadd.f32 %v4859_v48, %v2128_v21 }
 0x73f   : > { %v4897_v10 = vadd.f32 %v2129_v14, %v4758_v1  ;;  %v3842_v1 = vld [vmem:[#allocation8 + $0x190] sm:$0xff] }
 0x740   : > { %2393 = vmatpush.bf16.msrb.mxu1 %v3842_v1 }
 0x741   : > { %v2170_v36 = vpack.c.bf16 %v4897_v10, %v4894_v35 }
 0x743   : > { %2268 = vmatmul.bf16.gmra.mxu0 %v2170_v36 }
 0x744   : > { %v2131_v39 = vpop.f32.mrf.mxu3 }
 0x745   : > { %v2132_v40 = vadd.f32 %v4859_v48, %v2131_v39  ;;  %v3852_v39 = vld [vmem:[#allocation8 + $0x1e0] sm:$0xff] }
 0x747   : > { %v4904_v3 = vadd.f32 %v2132_v40, %v4765_v34 }
 0x74c   : > { %v2133_v42 = vpop.f32.mrf.mxu3 }
 0x74d   : > { %v2134_v17 = vadd.f32 %v4859_v48, %v2133_v42 }
 0x74f   : > { %v4907_v26 = vadd.f32 %v2134_v17, %v4768_v6  ;;  %v3841_v6 = vld [vmem:[#allocation8 + $0x188] sm:$0xff] }
 0x750   : > { %2394 = vmatpush.bf16.msrb.mxu1 %v3841_v6 }
 0x751   : > { %v2171_v45 = vpack.c.bf16 %v4907_v26, %v4904_v3 }
 0x753   : > { %2273 = vmatmul.bf16.gmra.mxu0 %v2171_v45 }
 0x754   : > { %v2136_v46 = vpop.f32.mrf.mxu3  ;;  %2395 = vmatpush.bf16.msrb.mxu1 %v3840_v16 }
 0x755   : > { %v2137_v30 = vadd.f32 %v4859_v48, %v2136_v46 }
 0x757   : > { %v4914_v53 = vadd.f32 %v2137_v30, %v4775_v43 }
 0x75c   : > { %v2138_v31 = vpop.f32.mrf.mxu3 }
 0x75d   : > { %v2139_v50 = vadd.f32 %v4859_v48, %v2138_v31  ;;  %v3851_v31 = vld [vmem:[#allocation8 + $0x1d8] sm:$0xff] }
 0x75f   : > { %v4917_v34 = vadd.f32 %v2139_v50, %v4778_v23 }
 0x761   : > { %v2172_v54 = vpack.c.bf16 %v4917_v34, %v4914_v53 }
 0x763   : > { %2278 = vmatmul.bf16.gmra.mxu0 %v2172_v54 }
 0x764   : > { %v2141_v47 = vpop.f32.mrf.mxu3 }
 0x765   : > { %v2142_v55 = vadd.f32 %v4859_v48, %v2141_v47 }
 0x767   : > { %v4924_v43 = vadd.f32 %v2142_v55, %v4785_v59 }
 0x76c   : > { %v2143_v24 = vpop.f32.mrf.mxu3 }
 0x76d   : > { %v2144_v25 = vadd.f32 %v4859_v48, %v2143_v24 }
 0x76f   : > { %v4927_v23 = vadd.f32 %v2144_v25, %v4788_v20  ;;  %v3855_v20 = vld [vmem:[#allocation8 + $0x1f8] sm:$0xff]  ;;  %v3850_v25 = vld [vmem:[#allocation8 + $0x1d0] sm:$0xff] }
 0x770   : > { %2531 = vmatpush.bf16.msrb.mxu2 %v3855_v20 }
 0x771   : > { %v2173_v38 = vpack.c.bf16 %v4927_v23, %v4924_v43 }
 0x773   : > { %2283 = vmatmul.bf16.gmra.mxu0 %v2173_v38 }
 0x774   : > { %v2146_v61 = vpop.f32.mrf.mxu3  ;;  %2532 = vmatpush.bf16.msrb.mxu2 %v3854_v8 }
 0x775   : > { %v2147_v62 = vadd.f32 %v4859_v48, %v2146_v61 }
 0x777   : > { %v4934_v0 = vadd.f32 %v2147_v62, %v4795_v56 }
 0x778   : > { %2533 = vmatpush.bf16.msrb.mxu2 %v3853_v22 }
 0x77c   : > { %v2148_v37 = vpop.f32.mrf.mxu3  ;;  %2534 = vmatpush.bf16.msrb.mxu2 %v3852_v39 }
 0x77d   : > { %v2149_v63 = vadd.f32 %v4859_v48, %v2148_v37 }
 0x77f   : > { %v4937_v2 = vadd.f32 %v2149_v63, %v4798_v57 }
 0x780   : > { %2535 = vmatpush.bf16.msrb.mxu2 %v3851_v31 }
 0x781   : > { %v2174_v59 = vpack.c.bf16 %v4937_v2, %v4934_v0 }
 0x783   : > { %2288 = vmatmul.bf16.gmra.mxu0 %v2174_v59 }
 0x784   : > { %2536 = vmatpush.bf16.msrb.mxu2 %v3850_v25 }
 0x790   : > { %v2254_v49 = vpop.f32.mrf.mxu0 }
 0x791   : > { %v2255_v4 = vadd.f32 %v4941_v41, %v2254_v49  ;;  %v3849_v49 = vld [vmem:[#allocation8 + $0x1c8] sm:$0xff] }
 0x792   : > { %2537 = vmatpush.bf16.msrb.mxu2 %v3849_v49 }
 0x793   : > { %v2294_v15 = vmax.f32 %v2255_v4, 0.0  ;;  %v3848_v4 = vld [vmem:[#allocation8 + $0x1c0] sm:$0xff] }
 0x796   : > { %2538 = vmatpush.bf16.msrb.mxu2 %v3848_v4 }
 0x798   : > { %v2256_v5 = vpop.f32.mrf.mxu0 }
 0x799   : > { %v2257_v48 = vadd.f32 %v4941_v41, %v2256_v5 }
 0x79b   : > { %v2295_v56 = vmax.f32 %v2257_v48, 0.0 }
 0x79d   : > { %v2310_v7 = vpack.c.bf16 %v2295_v56, %v2294_v15 }
 0x79f   : > { %2396 = vmatmul.bf16.vlgmr.msrb.gmra.mxu1 %v2310_v7 }
 0x7a0   : > { %v2259_v57 = vpop.f32.mrf.mxu0 }
 0x7a1   : > { %v2260_v33 = vadd.f32 %v4941_v41, %v2259_v57 }
 0x7a3   : > { %v2296_v18 = vmax.f32 %v2260_v33, 0.0 }
 0x7a8   : > { %v2261_v51 = vpop.f32.mrf.mxu0 }
 0x7a9   : > { %v2262_v19 = vadd.f32 %v4941_v41, %v2261_v51 }
 0x7ab   : > { %v2297_v11 = vmax.f32 %v2262_v19, 0.0 }
 0x7ad   : > { %v2311_v27 = vpack.c.bf16 %v2297_v11, %v2296_v18 }
 0x7af   : > { %2401 = vmatmul.bf16.gmra.mxu1 %v2311_v27 }
 0x7b0   : > { %v2264_v29 = vpop.f32.mrf.mxu0 }
 0x7b1   : > { %v2265_v32 = vadd.f32 %v4941_v41, %v2264_v29 }
 0x7b3   : > { %v2298_v14 = vmax.f32 %v2265_v32, 0.0  ;;  %v4959_v32 = vld [vmem:[#allocation10 + $0x6] ss:$0 sm:$0xff] }
 0x7b8   : > { %v2266_v9 = vpop.f32.mrf.mxu0 }
 0x7b9   : > { %v2267_v21 = vadd.f32 %v4941_v41, %v2266_v9  ;;  %v3863_v9 = vld [vmem:[#allocation11 + $0xf8] sm:$0xff] }
 0x7ba   : > { %2674 = vmatpush.bf16.msrb.mxu3 %v3863_v9  ;;  %v3857_v9 = vld [vmem:[#allocation11 + $0xc8] sm:$0xff] }
 0x7bb   : > { %v2299_v60 = vmax.f32 %v2267_v21, 0.0 }
 0x7bd   : > { %v2312_v36 = vpack.c.bf16 %v2299_v60, %v2298_v14 }
 0x7bf   : > { %2406 = vmatmul.bf16.gmra.mxu1 %v2312_v36 }
 0x7c0   : > { %v2269_v40 = vpop.f32.mrf.mxu0 }
 0x7c1   : > { %v2270_v42 = vadd.f32 %v4941_v41, %v2269_v40 }
 0x7c3   : > { %v2300_v45 = vmax.f32 %v2270_v42, 0.0 }
 0x7c8   : > { %v2271_v17 = vpop.f32.mrf.mxu0 }
 0x7c9   : > { %v2272_v1 = vadd.f32 %v4941_v41, %v2271_v17 }
 0x7cb   : > { %v2301_v46 = vmax.f32 %v2272_v1, 0.0 }
 0x7cd   : > { %v2313_v30 = vpack.c.bf16 %v2301_v46, %v2300_v45 }
 0x7cf   : > { %2411 = vmatmul.bf16.gmra.mxu1 %v2313_v30 }
 0x7d0   : > { %v2274_v50 = vpop.f32.mrf.mxu0 }
 0x7d1   : > { %v2275_v6 = vadd.f32 %v4941_v41, %v2274_v50 }
 0x7d3   : > { %v2302_v47 = vmax.f32 %v2275_v6, 0.0  ;;  %v3861_v6 = vld [vmem:[#allocation11 + $0xe8] sm:$0xff] }
 0x7d8   : > { %v2276_v54 = vpop.f32.mrf.mxu0 }
 0x7d9   : > { %v2277_v16 = vadd.f32 %v4941_v41, %v2276_v54 }
 0x7db   : > { %v2303_v55 = vmax.f32 %v2277_v16, 0.0 }
 0x7dd   : > { %v2314_v24 = vpack.c.bf16 %v2303_v55, %v2302_v47 }
 0x7df   : > { %2416 = vmatmul.bf16.gmra.mxu1 %v2314_v24 }
 0x7e0   : > { %v2279_v38 = vpop.f32.mrf.mxu0 }
 0x7e1   : > { %v2280_v61 = vadd.f32 %v4941_v41, %v2279_v38 }
 0x7e3   : > { %v2304_v63 = vmax.f32 %v2280_v61, 0.0  ;;  %v3860_v61 = vld [vmem:[#allocation11 + $0xe0] sm:$0xff] }
 0x7e8   : > { %v2281_v62 = vpop.f32.mrf.mxu0 }
 0x7e9   : > { %v2282_v37 = vadd.f32 %v4941_v41, %v2281_v62 }
 0x7eb   : > { %v2305_v59 = vmax.f32 %v2282_v37, 0.0 }
 0x7ed   : > { %v2315_v20 = vpack.c.bf16 %v2305_v59, %v2304_v63 }
 0x7ef   : > { %2421 = vmatmul.bf16.gmra.mxu1 %v2315_v20 }
 0x7f0   : > { %v2284_v5 = vpop.f32.mrf.mxu0 }
 0x7f1   : > { %v2285_v48 = vadd.f32 %v4941_v41, %v2284_v5  ;;  %v3859_v5 = vld [vmem:[#allocation11 + $0xd8] sm:$0xff] }
 0x7f3   : > { %v2306_v7 = vmax.f32 %v2285_v48, 0.0 }
 0x7f8   : > { %v2286_v15 = vpop.f32.mrf.mxu0 }
 0x7f9   : > { %v2287_v56 = vadd.f32 %v4941_v41, %v2286_v15 }
 0x7fb   : > { %v2307_v8 = vmax.f32 %v2287_v56, 0.0 }
 0x7fd   : > { %v2316_v57 = vpack.c.bf16 %v2307_v8, %v2306_v7 }
 0x7ff   : > { %2426 = vmatmul.bf16.gmra.mxu1 %v2316_v57 }
 0x800   : > { %v2289_v33 = vpop.f32.mrf.mxu0 }
 0x801   : > { %v2290_v51 = vadd.f32 %v4941_v41, %v2289_v33 }
 0x803   : > { %v2308_v11 = vmax.f32 %v2290_v51, 0.0  ;;  %v3858_v51 = vld [vmem:[#allocation11 + $0xd0] sm:$0xff] }
 0x808   : > { %v2291_v19 = vpop.f32.mrf.mxu0 }
 0x809   : > { %v2292_v18 = vadd.f32 %v4941_v41, %v2291_v19  ;;  %v3862_v41 = vld [vmem:[#allocation11 + $0xf0] sm:$0xff] }
 0x80a   : > { %2675 = vmatpush.bf16.msrb.mxu3 %v3862_v41 }
 0x80b   : > { %v2309_v27 = vmax.f32 %v2292_v18, 0.0 }
 0x80d   : > { %v2317_v22 = vpack.c.bf16 %v2309_v27, %v2308_v11 }
 0x80e   : > { %2676 = vmatpush.bf16.msrb.mxu3 %v3861_v6 }
 0x80f   : > { %2431 = vmatmul.bf16.gmra.mxu1 %v2317_v22 }
 0x812   : > { %2677 = vmatpush.bf16.msrb.mxu3 %v3860_v61 }
 0x816   : > { %2678 = vmatpush.bf16.msrb.mxu3 %v3859_v5 }
 0x81a   : > { %2679 = vmatpush.bf16.msrb.mxu3 %v3858_v51 }
 0x81c   : > { %v2397_v29 = vpop.f32.mrf.mxu1 }
 0x81d   : > { %v2398_v21 = vadd.f32 %v4959_v32, %v2397_v29 }
 0x81e   : > { %2680 = vmatpush.bf16.msrb.mxu3 %v3857_v9 }
 0x81f   : > { %v2437_v36 = vmax.f32 %v2398_v21, 0.0 }
 0x824   : > { %v2399_v14 = vpop.f32.mrf.mxu1 }
 0x825   : > { %v2400_v60 = vadd.f32 %v4959_v32, %v2399_v14  ;;  %v3856_v14 = vld [vmem:[#allocation11 + $0xc0] sm:$0xff] }
 0x826   : > { %2681 = vmatpush.bf16.msrb.mxu3 %v3856_v14 }
 0x827   : > { %v2438_v39 = vmax.f32 %v2400_v60, 0.0 }
 0x829   : > { %v2453_v40 = vpack.c.bf16 %v2438_v39, %v2437_v36 }
 0x82b   : > { %2539 = vmatmul.bf16.vlgmr.msrb.gmra.mxu2 %v2453_v40 }
 0x82c   : > { %v2402_v42 = vpop.f32.mrf.mxu1 }
 0x82d   : > { %v2403_v17 = vadd.f32 %v4959_v32, %v2402_v42 }
 0x82f   : > { %v2439_v46 = vmax.f32 %v2403_v17, 0.0 }
 0x834   : > { %v2404_v1 = vpop.f32.mrf.mxu1 }
 0x835   : > { %v2405_v45 = vadd.f32 %v4959_v32, %v2404_v1 }
 0x837   : > { %v2440_v30 = vmax.f32 %v2405_v45, 0.0 }
 0x839   : > { %v2454_v31 = vpack.c.bf16 %v2440_v30, %v2439_v46 }
 0x83b   : > { %2544 = vmatmul.bf16.gmra.mxu2 %v2454_v31 }
 0x83c   : > { %v2407_v50 = vpop.f32.mrf.mxu1 }
 0x83d   : > { %v2408_v54 = vadd.f32 %v4959_v32, %v2407_v50 }
 0x83f   : > { %v2441_v55 = vmax.f32 %v2408_v54, 0.0  ;;  %v3974_v54 = vld [vmem:[#allocation10 + $0x7] ss:$0 sm:$0xff] }
 0x844   : > { %v2409_v16 = vpop.f32.mrf.mxu1 }
 0x845   : > { %v2410_v47 = vadd.f32 %v4959_v32, %v2409_v16 }
 0x847   : > { %v2442_v24 = vmax.f32 %v2410_v47, 0.0 }
 0x849   : > { %v2455_v25 = vpack.c.bf16 %v2442_v24, %v2441_v55 }
 0x84b   : > { %2549 = vmatmul.bf16.gmra.mxu2 %v2455_v25 }
 0x84c   : > { %v2412_v38 = vpop.f32.mrf.mxu1 }
 0x84d   : > { %v2413_v62 = vadd.f32 %v4959_v32, %v2412_v38 }
 0x84f   : > { %v2443_v59 = vmax.f32 %v2413_v62, 0.0 }
 0x854   : > { %v2414_v37 = vpop.f32.mrf.mxu1 }
 0x855   : > { %v2415_v63 = vadd.f32 %v4959_v32, %v2414_v37 }
 0x857   : > { %v2444_v20 = vmax.f32 %v2415_v63, 0.0 }
 0x859   : > { %v2456_v49 = vpack.c.bf16 %v2444_v20, %v2443_v59 }
 0x85b   : > { %2554 = vmatmul.bf16.gmra.mxu2 %v2456_v49 }
 0x85c   : > { %v2417_v4 = vpop.f32.mrf.mxu1 }
 0x85d   : > { %v2418_v48 = vadd.f32 %v4959_v32, %v2417_v4 }
 0x85f   : > { %v2445_v7 = vmax.f32 %v2418_v48, 0.0 }
 0x864   : > { %v2419_v15 = vpop.f32.mrf.mxu1 }
 0x865   : > { %v2420_v56 = vadd.f32 %v4959_v32, %v2419_v15 }
 0x867   : > { %v2446_v8 = vmax.f32 %v2420_v56, 0.0 }
 0x869   : > { %v2457_v57 = vpack.c.bf16 %v2446_v8, %v2445_v7 }
 0x86b   : > { %2559 = vmatmul.bf16.gmra.mxu2 %v2457_v57 }
 0x86c   : > { %v2422_v33 = vpop.f32.mrf.mxu1 }
 0x86d   : > { %v2423_v19 = vadd.f32 %v4959_v32, %v2422_v33 }
 0x86f   : > { %v2447_v27 = vmax.f32 %v2423_v19, 0.0 }
 0x874   : > { %v2424_v18 = vpop.f32.mrf.mxu1 }
 0x875   : > { %v2425_v11 = vadd.f32 %v4959_v32, %v2424_v18 }
 0x877   : > { %v2448_v22 = vmax.f32 %v2425_v11, 0.0 }
 0x879   : > { %v2458_v29 = vpack.c.bf16 %v2448_v22, %v2447_v27 }
 0x87b   : > { %2564 = vmatmul.bf16.gmra.mxu2 %v2458_v29 }
 0x87c   : > { %v2427_v21 = vpop.f32.mrf.mxu1 }
 0x87d   : > { %v2428_v60 = vadd.f32 %v4959_v32, %v2427_v21 }
 0x87f   : > { %v2449_v40 = vmax.f32 %v2428_v60, 0.0 }
 0x884   : > { %v2429_v36 = vpop.f32.mrf.mxu1 }
 0x885   : > { %v2430_v39 = vadd.f32 %v4959_v32, %v2429_v36 }
 0x887   : > { %v2450_v42 = vmax.f32 %v2430_v39, 0.0 }
 0x889   : > { %v2459_v41 = vpack.c.bf16 %v2450_v42, %v2449_v40 }
 0x88b   : > { %2569 = vmatmul.bf16.gmra.mxu2 %v2459_v41 }
 0x88c   : > { %v2432_v17 = vpop.f32.mrf.mxu1 }
 0x88d   : > { %v2433_v1 = vadd.f32 %v4959_v32, %v2432_v17 }
 0x88f   : > { %v2451_v30 = vmax.f32 %v2433_v1, 0.0 }
 0x894   : > { %v2434_v45 = vpop.f32.mrf.mxu1 }
 0x895   : > { %v2435_v46 = vadd.f32 %v4959_v32, %v2434_v45 }
 0x897   : > { %v2452_v31 = vmax.f32 %v2435_v46, 0.0 }
 0x899   : > { %v2460_v50 = vpack.c.bf16 %v2452_v31, %v2451_v30 }
 0x89b   : > { %2574 = vmatmul.bf16.gmra.mxu2 %v2460_v50 }
 0x8ae   : > { %v2540_v6 = vpop.f32.mrf.mxu2 }
 0x8af   : > { %v2541_v16 = vadd.f32 %v3974_v54, %v2540_v6 }
 0x8b1   : > { %v2580_v24 = vmax.f32 %v2541_v16, 0.0 }
 0x8b6   : > { %v2542_v47 = vpop.f32.mrf.mxu2 }
 0x8b7   : > { %v2543_v55 = vadd.f32 %v3974_v54, %v2542_v47 }
 0x8b9   : > { %v2581_v25 = vmax.f32 %v2543_v55, 0.0 }
 0x8bb   : > { %v2596_v38 = vpack.c.bf16 %v2581_v25, %v2580_v24 }
 0x8bd   : > { %2682 = vmatmul.bf16.vlgmr.msrb.gmra.mxu3 %v2596_v38 }
 0x8be   : > { %v2545_v61 = vpop.f32.mrf.mxu2 }
 0x8bf   : > { %v2546_v62 = vadd.f32 %v3974_v54, %v2545_v61 }
 0x8c1   : > { %v2582_v59 = vmax.f32 %v2546_v62, 0.0 }
 0x8c6   : > { %v2547_v37 = vpop.f32.mrf.mxu2 }
 0x8c7   : > { %v2548_v63 = vadd.f32 %v3974_v54, %v2547_v37  ;;  %v4980_v37 = vld [vmem:[%s5181_s7 + $0x3] ss:$0 sm:$0xff] }
 0x8c9   : > { %v2583_v20 = vmax.f32 %v2548_v63, 0.0 }
 0x8cb   : > { %v2597_v32 = vpack.c.bf16 %v2583_v20, %v2582_v59  ;;  %v4986_v20 = vld [vmem:[%s5182_s8] ss:$0 sm:$0xff] }
 0x8cd   : > { %2687 = vmatmul.bf16.gmra.mxu3 %v2597_v32 }
 0x8ce   : > { %v2550_v49 = vpop.f32.mrf.mxu2 }
 0x8cf   : > { %v2551_v4 = vadd.f32 %v3974_v54, %v2550_v49 }
 0x8d1   : > { %v2584_v15 = vmax.f32 %v2551_v4, 0.0 }
 0x8d6   : > { %v2552_v5 = vpop.f32.mrf.mxu2 }
 0x8d7   : > { %v2553_v48 = vadd.f32 %v3974_v54, %v2552_v5 }
 0x8d9   : > { %v2585_v56 = vmax.f32 %v2553_v48, 0.0 }
 0x8db   : > { %v2598_v7 = vpack.c.bf16 %v2585_v56, %v2584_v15 }
 0x8dd   : > { %2692 = vmatmul.bf16.gmra.mxu3 %v2598_v7 }
 0x8de   : > { %v2555_v8 = vpop.f32.mrf.mxu2 }
 0x8df   : > { %v2556_v57 = vadd.f32 %v3974_v54, %v2555_v8 }
 0x8e1   : > { %v2586_v19 = vmax.f32 %v2556_v57, 0.0 }
 0x8e6   : > { %v2557_v33 = vpop.f32.mrf.mxu2 }
 0x8e7   : > { %v2558_v51 = vadd.f32 %v3974_v54, %v2557_v33 }
 0x8e9   : > { %v2587_v18 = vmax.f32 %v2558_v51, 0.0 }
 0x8eb   : > { %v2599_v11 = vpack.c.bf16 %v2587_v18, %v2586_v19 }
 0x8ed   : > { %2697 = vmatmul.bf16.gmra.mxu3 %v2599_v11 }
 0x8ee   : > { %v2560_v27 = vpop.f32.mrf.mxu2 }
 0x8ef   : > { %v2561_v22 = vadd.f32 %v3974_v54, %v2560_v27 }
 0x8f1   : > { %v2588_v21 = vmax.f32 %v2561_v22, 0.0 }
 0x8f6   : > { %v2562_v29 = vpop.f32.mrf.mxu2 }
 0x8f7   : > { %v2563_v9 = vadd.f32 %v3974_v54, %v2562_v29 }
 0x8f9   : > { %v2589_v14 = vmax.f32 %v2563_v9, 0.0 }
 0x8fb   : > { %v2600_v60 = vpack.c.bf16 %v2589_v14, %v2588_v21 }
 0x8fd   : > { %2702 = vmatmul.bf16.gmra.mxu3 %v2600_v60 }
 0x8fe   : > { %v2565_v36 = vpop.f32.mrf.mxu2 }
 0x8ff   : > { %v2566_v39 = vadd.f32 %v3974_v54, %v2565_v36 }
 0x901   : > { %v2590_v41 = vmax.f32 %v2566_v39, 0.0 }
 0x906   : > { %v2567_v40 = vpop.f32.mrf.mxu2 }
 0x907   : > { %v2568_v42 = vadd.f32 %v3974_v54, %v2567_v40 }
 0x909   : > { %v2591_v17 = vmax.f32 %v2568_v42, 0.0 }
 0x90b   : > { %v2601_v1 = vpack.c.bf16 %v2591_v17, %v2590_v41 }
 0x90d   : > { %2707 = vmatmul.bf16.gmra.mxu3 %v2601_v1 }
 0x90e   : > { %v2570_v45 = vpop.f32.mrf.mxu2 }
 0x90f   : > { %v2571_v46 = vadd.f32 %v3974_v54, %v2570_v45 }
 0x911   : > { %v2592_v50 = vmax.f32 %v2571_v46, 0.0 }
 0x916   : > { %v2572_v30 = vpop.f32.mrf.mxu2 }
 0x917   : > { %v2573_v31 = vadd.f32 %v3974_v54, %v2572_v30 }
 0x919   : > { %v2593_v6 = vmax.f32 %v2573_v31, 0.0 }
 0x91b   : > { %v2602_v16 = vpack.c.bf16 %v2593_v6, %v2592_v50 }
 0x91d   : > { %2712 = vmatmul.bf16.gmra.mxu3 %v2602_v16 }
 0x91e   : > { %v2575_v47 = vpop.f32.mrf.mxu2 }
 0x91f   : > { %v2576_v55 = vadd.f32 %v3974_v54, %v2575_v47 }
 0x921   : > { %v2594_v38 = vmax.f32 %v2576_v55, 0.0 }
 0x926   : > { %v2577_v24 = vpop.f32.mrf.mxu2 }
 0x927   : > { %v2578_v25 = vadd.f32 %v3974_v54, %v2577_v24 }
 0x929   : > { %v2595_v61 = vmax.f32 %v2578_v25, 0.0 }
 0x92b   : > { %v2603_v62 = vpack.c.bf16 %v2595_v61, %v2594_v38 }
 0x92d   : > { %2717 = vmatmul.bf16.gmra.mxu3 %v2603_v62 }
 0x940   : > { %v2683_v63 = vpop.f32.mrf.mxu3 }
 0x941   : > { %v2684_v59 = vadd.f32 %v4980_v37, %v2683_v63 }
 0x943   : > { %v2723_v32 = vadd.f32 %v2684_v59, %v4864_v52 }
 0x945   : > { %v2743_v54 = vmul.f32 %v4986_v20, %v2723_v32 }
 0x947   : > { %v2759_v49 = vand.u32 2147483647, %v2743_v54 }
 0x948   : > { %v2685_v4 = vpop.f32.mrf.mxu3 }
 0x949   : > { %v2686_v5 = vadd.f32 %v4980_v37, %v2685_v4  ;;  %v2775_v48 = vsub.f32 0.0, %v2759_v49 }
 0x94b   : > { %v2724_v15 = vadd.f32 %v2686_v5, %v4867_v44  ;;  %v2791_v56 = vmul.f32 1.442695, %v2775_v48 }
 0x94d   : > { %3977 = vpow2.f32 %v2791_v56  ;;  %v2744_v7 = vmul.f32 %v4986_v20, %v2724_v15 }
 0x94f   : > { %v2760_v8 = vand.u32 2147483647, %v2744_v7 }
 0x950   : > { %v2688_v57 = vpop.f32.mrf.mxu3 }
 0x951   : > { %v2689_v33 = vadd.f32 %v4980_v37, %v2688_v57  ;;  %v2776_v51 = vsub.f32 0.0, %v2760_v8 }
 0x953   : > { %v3978_v19 = vpop.eup %3977  ;;  %v2725_v52 = vadd.f32 %v2689_v33, %v4874_v13  ;;  %v2793_v18 = vmul.f32 1.442695, %v2776_v51 }
 0x954   : > { %v2823_v11 = vadd.f32 1.0, %v3978_v19  ;;  %v2826_v27 = vmul.f32 -0.5, %v3978_v19  ;;  %v2829_v60 = vand.u32 2147483647, %v3978_v19 }
 0x955   : > { %3979 = vpow2.f32 %v2793_v18  ;;  %v4996_v22 = vmul.f32 %v4986_v20, %v2725_v52 }
 0x956   : > { %3981 = vlog2.f32 %v2823_v11  ;;  %v2827_v9 = vadd.f32 1.0, %v2826_v27  ;;  %vm2830_vm0 = vcmp.lt.f32.partialorder %v2829_v60, 0.0004427343 }
 0x957   : > { %v2761_v44 = vand.u32 2147483647, %v4996_v22 }
 0x958   : > { %v2690_v29 = vpop.f32.mrf.mxu3  ;;  %v2828_v42 = vmul.f32 %v3978_v19, %v2827_v9 }
 0x959   : > { %v2691_v21 = vadd.f32 %v4980_v37, %v2690_v29  ;;  %v2777_v14 = vsub.f32 0.0, %v2761_v44 }
 0x95b   : > { %v3980_v36 = vpop.eup %3979  ;;  %v2726_v13 = vadd.f32 %v2691_v21, %v4877_v58  ;;  %v2795_v39 = vmul.f32 1.442695, %v2777_v14 }
 0x95c   : > { %v3982_v40 = vpop.eup %3981  ;;  %v2832_v41 = vadd.f32 1.0, %v3980_v36  ;;  %v2835_v1 = vmul.f32 -0.5, %v3980_v36  ;;  %v2838_v55 = vand.u32 2147483647, %v3980_v36 }
 0x95d   : > { %v2825_v17 = vmul.f32 0.6931472, %v3982_v40  ;;  %3983 = vpow2.f32 %v2795_v39  ;;  %v5004_v45 = vmul.f32 %v4986_v20, %v2726_v13 }
 0x95e   : > { %3985 = vlog2.f32 %v2832_v41  ;;  %v2836_v58 = vadd.f32 1.0, %v2835_v1  ;;  %vm2839_vm1 = vcmp.lt.f32.partialorder %v2838_v55, 0.0004427343 }
 0x95f   : > { %v2831_v46 = vsel %vm2830_vm0, %v2828_v42, %v2825_v17  ;;  %v2762_v30 = vand.u32 2147483647, %v5004_v45  ;;  %vm3065_vm0 = vcmask 7168  }
 0x960   : > { %v2693_v31 = vpop.f32.mrf.mxu3  ;;  %v2967_v50 = vmul.f32 2.0, %v2831_v46  ;;  %v2837_v54 = vmul.f32 %v3980_v36, %v2836_v58 }
 0x961   : > { %v2694_v6 = vadd.f32 %v4980_v37, %v2693_v31  ;;  %v2778_v16 = vsub.f32 0.0, %v2762_v30 }
 0x962   : > { %v2983_v47 = vadd.f32 %v2967_v50, %v2759_v49 }
 0x963   : > { %v3984_v24 = vpop.eup %3983  ;;  %v2727_v25 = vadd.f32 %v2694_v6, %v4884_v28  ;;  %v2797_v38 = vmul.f32 1.442695, %v2778_v16 }
 0x964   : > { %v3986_v61 = vpop.eup %3985  ;;  %v2999_v62 = vsub.f32 0.0, %v2983_v47  ;;  %v2841_v63 = vadd.f32 1.0, %v3984_v24  ;;  %v2844_v59 = vmul.f32 -0.5, %v3984_v24  ;;  %v2847_v33 = vand.u32 2147483647, %v3984_v24 }
 0x965   : > { %v2834_v32 = vmul.f32 0.6931472, %v3986_v61  ;;  %3987 = vpow2.f32 %v2797_v38  ;;  %v5012_v4 = vmul.f32 %v4986_v20, %v2727_v25 }
 0x966   : > { %3015 = vadd.xlane.f32.xlu0 %v2999_v62  ;;  %3989 = vlog2.f32 %v2841_v63  ;;  %v2845_v28 = vadd.f32 1.0, %v2844_v59  ;;  %vm2848_vm2 = vcmp.lt.f32.partialorder %v2847_v33, 0.0004427343 }
 0x967   : > { %v2840_v5 = vsel %vm2839_vm1, %v2837_v54, %v2834_v32  ;;  %v2763_v49 = vand.u32 2147483647, %v5012_v4 }
 0x968   : > { %v2695_v48 = vpop.f32.mrf.mxu3  ;;  %v2968_v15 = vmul.f32 2.0, %v2840_v5  ;;  %v2846_v27 = vmul.f32 %v3984_v24, %v2845_v28 }
 0x969   : > { %v2696_v56 = vadd.f32 %v4980_v37, %v2695_v48  ;;  %v2779_v7 = vsub.f32 0.0, %v2763_v49 }
 0x96a   : > { %v2984_v57 = vadd.f32 %v2968_v15, %v2760_v8 }
 0x96b   : > { %v3988_v51 = vpop.eup %3987  ;;  %v2728_v19 = vadd.f32 %v2696_v56, %v4887_v12  ;;  %v2799_v52 = vmul.f32 1.442695, %v2779_v7 }
 0x96c   : > { %v3990_v18 = vpop.eup %3989  ;;  %v3000_v11 = vsub.f32 0.0, %v2984_v57  ;;  %v2850_v29 = vadd.f32 1.0, %v3988_v51  ;;  %v2853_v21 = vmul.f32 -0.5, %v3988_v51  ;;  %v2856_v41 = vand.u32 2147483647, %v3988_v51 }
 0x96d   : > { %v2843_v9 = vmul.f32 0.6931472, %v3990_v18  ;;  %3991 = vpow2.f32 %v2799_v52  ;;  %v5020_v14 = vmul.f32 %v4986_v20, %v2728_v19 }
 0x96e   : > { %3017 = vadd.xlane.f32.xlu0 %v3000_v11  ;;  %3993 = vlog2.f32 %v2850_v29  ;;  %v2854_v39 = vadd.f32 1.0, %v2853_v21  ;;  %vm2857_vm3 = vcmp.lt.f32.partialorder %v2856_v41, 0.0004427343 }
 0x96f   : > { %v2849_v60 = vsel %vm2848_vm2, %v2846_v27, %v2843_v9  ;;  %v2764_v8 = vand.u32 2147483647, %v5020_v14 }
 0x970   : > { %v2698_v36 = vpop.f32.mrf.mxu3  ;;  %v2969_v13 = vmul.f32 2.0, %v2849_v60  ;;  %v2855_v47 = vmul.f32 %v3988_v51, %v2854_v39 }
 0x971   : > { %v2699_v12 = vadd.f32 %v4980_v37, %v2698_v36  ;;  %v2780_v40 = vsub.f32 0.0, %v2764_v8 }
 0x972   : > { %v2985_v42 = vadd.f32 %v2969_v13, %v2761_v44 }
 0x973   : > { %v3992_v17 = vpop.eup %3991  ;;  %v2729_v1 = vadd.f32 %v2699_v12, %v4894_v35  ;;  %v2801_v46 = vmul.f32 1.442695, %v2780_v40 }
 0x974   : > { %v3994_v31 = vpop.eup %3993  ;;  %v3001_v50 = vsub.f32 0.0, %v2985_v42  ;;  %v2859_v6 = vadd.f32 1.0, %v3992_v17  ;;  %v2862_v58 = vmul.f32 -0.5, %v3992_v17  ;;  %v2865_v63 = vand.u32 2147483647, %v3992_v17 }
 0x975   : > { %v2852_v16 = vmul.f32 0.6931472, %v3994_v31  ;;  %3995 = vpow2.f32 %v2801_v46  ;;  %v5030_v55 = vmul.f32 %v4986_v20, %v2729_v1 }
 0x976   : > { %3019 = vadd.xlane.f32.xlu1 %v3001_v50  ;;  %3997 = vlog2.f32 %v2859_v6  ;;  %v2863_v35 = vadd.f32 1.0, %v2862_v58  ;;  %vm2866_vm4 = vcmp.lt.f32.partialorder %v2865_v63, 0.0004427343 }
 0x977   : > { %v2858_v22 = vsel %vm2857_vm3, %v2855_v47, %v2852_v16  ;;  %v2765_v44 = vand.u32 2147483647, %v5030_v55 }
 0x978   : > { %v2700_v24 = vpop.f32.mrf.mxu3  ;;  %v2970_v25 = vmul.f32 2.0, %v2858_v22  ;;  %v2864_v15 = vmul.f32 %v3992_v17, %v2863_v35 }
 0x979   : > { %v2701_v38 = vadd.f32 %v4980_v37, %v2700_v24  ;;  %v2781_v61 = vsub.f32 0.0, %v2765_v44 }
 0x97a   : > { %v2986_v62 = vadd.f32 %v2970_v25, %v2762_v30 }
 0x97b   : > { %v3996_v59 = vpop.eup %3995  ;;  %v2730_v32 = vadd.f32 %v2701_v38, %v4897_v10  ;;  %v2803_v54 = vmul.f32 1.442695, %v2781_v61 }
 0x97c   : > { %v3998_v5 = vpop.eup %3997  ;;  %v3002_v48 = vsub.f32 0.0, %v2986_v62  ;;  %v2868_v28 = vadd.f32 1.0, %v3996_v59  ;;  %v2871_v7 = vmul.f32 -0.5, %v3996_v59  ;;  %v2874_v11 = vand.u32 2147483647, %v3996_v59 }
 0x97d   : > { %v2861_v56 = vmul.f32 0.6931472, %v3998_v5  ;;  %3999 = vpow2.f32 %v2803_v54  ;;  %v5040_v57 = vmul.f32 %v4986_v20, %v2730_v32 }
 0x97e   : > { %3021 = vadd.xlane.f32.xlu1 %v3002_v48  ;;  %4001 = vlog2.f32 %v2868_v28  ;;  %v2872_v19 = vadd.f32 1.0, %v2871_v7  ;;  %vm2875_vm5 = vcmp.lt.f32.partialorder %v2874_v11, 0.0004427343 }
 0x97f   : > { %v2867_v45 = vsel %vm2866_vm4, %v2864_v15, %v2861_v56  ;;  %v2766_v30 = vand.u32 2147483647, %v5040_v57 }
 0x980   : > { %v2703_v33 = vpop.f32.mrf.mxu3  ;;  %v2971_v51 = vmul.f32 2.0, %v2867_v45  ;;  %v2873_v39 = vmul.f32 %v3996_v59, %v2872_v19 }
 0x981   : > { %v2704_v10 = vadd.f32 %v4980_v37, %v2703_v33  ;;  %v2782_v52 = vsub.f32 0.0, %v2766_v30 }
 0x982   : > { %v2987_v18 = vadd.f32 %v2971_v51, %v2763_v49 }
 0x983   : > { %v4000_v27 = vpop.eup %3999  ;;  %v2731_v29 = vadd.f32 %v2704_v10, %v4904_v3  ;;  %v2805_v9 = vmul.f32 1.442695, %v2782_v52 }
 0x984   : > { %v4002_v21 = vpop.eup %4001  ;;  %v3003_v60 = vsub.f32 0.0, %v2987_v18  ;;  %v2877_v36 = vadd.f32 1.0, %v4000_v27  ;;  %v2880_v13 = vmul.f32 -0.5, %v4000_v27  ;;  %v2883_v31 = vand.u32 2147483647, %v4000_v27 }
 0x985   : > { %v2870_v12 = vmul.f32 0.6931472, %v4002_v21  ;;  %4003 = vpow2.f32 %v2805_v9  ;;  %v5050_v40 = vmul.f32 %v4986_v20, %v2731_v29 }
 0x986   : > { %3023 = vadd.xlane.f32.xlu2 %v3003_v60  ;;  %4005 = vlog2.f32 %v2877_v36  ;;  %v2881_v3 = vadd.f32 1.0, %v2880_v13  ;;  %vm2884_vm6 = vcmp.lt.f32.partialorder %v2883_v31, 0.0004427343 }
 0x987   : > { %v2876_v4 = vsel %vm2875_vm5, %v2873_v39, %v2870_v12  ;;  %v2767_v49 = vand.u32 2147483647, %v5050_v40 }
 0x988   : > { %v2705_v42 = vpop.f32.mrf.mxu3  ;;  %v2972_v41 = vmul.f32 2.0, %v2876_v4  ;;  %v2882_v22 = vmul.f32 %v4000_v27, %v2881_v3 }
 0x989   : > { %v2706_v17 = vadd.f32 %v4980_v37, %v2705_v42  ;;  %v2783_v1 = vsub.f32 0.0, %v2767_v49 }
 0x98a   : > { %v2988_v46 = vadd.f32 %v2972_v41, %v2764_v8 }
 0x98b   : > { %v4004_v50 = vpop.eup %4003  ;;  %v2732_v6 = vadd.f32 %v2706_v17, %v4907_v26  ;;  %v2807_v58 = vmul.f32 1.442695, %v2783_v1 }
 0x98c   : > { %v4006_v16 = vpop.eup %4005  ;;  %v3004_v47 = vsub.f32 0.0, %v2988_v46  ;;  %v2886_v24 = vadd.f32 1.0, %v4004_v50  ;;  %v2889_v35 = vmul.f32 -0.5, %v4004_v50  ;;  %v2892_v54 = vand.u32 2147483647, %v4004_v50 }
 0x98d   : > { %v2879_v25 = vmul.f32 0.6931472, %v4006_v16  ;;  %4007 = vpow2.f32 %v2807_v58  ;;  %v5060_v38 = vmul.f32 %v4986_v20, %v2732_v6 }
 0x98e   : > { %3025 = vadd.xlane.f32.xlu2 %v3004_v47  ;;  %4009 = vlog2.f32 %v2886_v24  ;;  %v2890_v63 = vadd.f32 1.0, %v2889_v35  ;;  %vm2893_vm7 = vcmp.lt.f32.partialorder %v2892_v54, 0.0004427343 }
 0x98f   : > { %v2885_v14 = vsel %vm2884_vm6, %v2882_v22, %v2879_v25  ;;  %v2768_v8 = vand.u32 2147483647, %v5060_v38 }
 0x990   : > { %v2708_v61 = vpop.f32.mrf.mxu3  ;;  %v2973_v62 = vmul.f32 2.0, %v2885_v14  ;;  %v2891_v51 = vmul.f32 %v4004_v50, %v2890_v63 }
 0x991   : > { %v2709_v26 = vadd.f32 %v4980_v37, %v2708_v61  ;;  %v2784_v59 = vsub.f32 0.0, %v2768_v8 }
 0x992   : > { %v2989_v32 = vadd.f32 %v2973_v62, %v2765_v44 }
 0x993   : > { %v4008_v5 = vpop.eup %4007  ;;  %v2733_v48 = vadd.f32 %v2709_v26, %v4914_v53  ;;  %v2809_v15 = vmul.f32 1.442695, %v2784_v59 }
 0x994   : > { %v4010_v28 = vpop.eup %4009  ;;  %v3005_v56 = vsub.f32 0.0, %v2989_v32  ;;  %v2895_v7 = vadd.f32 1.0, %v4008_v5  ;;  %v2898_v45 = vmul.f32 -0.5, %v4008_v5  ;;  %v2901_v29 = vand.u32 2147483647, %v4008_v5 }
 0x995   : > { %v2888_v33 = vmul.f32 0.6931472, %v4010_v28  ;;  %4011 = vpow2.f32 %v2809_v15  ;;  %v5070_v10 = vmul.f32 %v4986_v20, %v2733_v48 }
 0x996   : > { %3027 = vadd.xlane.f32.xlu0 %v3005_v56  ;;  %4013 = vlog2.f32 %v2895_v7  ;;  %v2899_v53 = vadd.f32 1.0, %v2898_v45  ;;  %vm2902_vm8 = vcmp.lt.f32.partialorder %v2901_v29, 0.0004427343 }
 0x997   : > { %v2894_v55 = vsel %vm2893_vm7, %v2891_v51, %v2888_v33  ;;  %v2769_v44 = vand.u32 2147483647, %v5070_v10 }
 0x998   : > { %v2710_v19 = vpop.f32.mrf.mxu3  ;;  %v2974_v52 = vmul.f32 2.0, %v2894_v55  ;;  %v2900_v12 = vmul.f32 %v4008_v5, %v2899_v53 }
 0x999   : > { %v2711_v18 = vadd.f32 %v4980_v37, %v2710_v19  ;;  %v2785_v11 = vsub.f32 0.0, %v2769_v44 }
 0x99a   : > { %v2990_v27 = vadd.f32 %v2974_v52, %v2766_v30 }
 0x99b   : > { %v4012_v9 = vpop.eup %4011  ;;  %v2734_v21 = vadd.f32 %v2711_v18, %v4917_v34  ;;  %v2811_v60 = vmul.f32 1.442695, %v2785_v11 }
 0x99c   : > { %v4014_v36 = vpop.eup %4013  ;;  %v3006_v13 = vsub.f32 0.0, %v2990_v27  ;;  %v2904_v39 = vadd.f32 1.0, %v4012_v9  ;;  %v2907_v42 = vmul.f32 -0.5, %v4012_v9  ;;  %v2910_v50 = vand.u32 2147483647, %v4012_v9 }
 0x99d   : > { %v2897_v4 = vmul.f32 0.6931472, %v4014_v36  ;;  %4015 = vpow2.f32 %v2811_v60  ;;  %v5080_v41 = vmul.f32 %v4986_v20, %v2734_v21 }
 0x99e   : > { %3029 = vadd.xlane.f32.xlu1 %v3006_v13  ;;  %4017 = vlog2.f32 %v2904_v39  ;;  %v2908_v1 = vadd.f32 1.0, %v2907_v42  ;;  %vm2911_vm9 = vcmp.lt.f32.partialorder %v2910_v50, 0.0004427343 }
 0x99f   : > { %v2903_v57 = vsel %vm2902_vm8, %v2900_v12, %v2897_v4  ;;  %v2770_v30 = vand.u32 2147483647, %v5080_v41 }
 0x9a0   : > { %v2713_v3 = vpop.f32.mrf.mxu3  ;;  %v2975_v17 = vmul.f32 2.0, %v2903_v57  ;;  %v2909_v14 = vmul.f32 %v4012_v9, %v2908_v1 }
 0x9a1   : > { %v2714_v34 = vadd.f32 %v4980_v37, %v2713_v3  ;;  %v2786_v46 = vsub.f32 0.0, %v2770_v30 }
 0x9a2   : > { %v2991_v31 = vadd.f32 %v2975_v17, %v2767_v49 }
 0x9a3   : > { %v4016_v6 = vpop.eup %4015  ;;  %v2735_v58 = vadd.f32 %v2714_v34, %v4924_v43  ;;  %v2813_v16 = vmul.f32 1.442695, %v2786_v46 }
 0x9a4   : > { %v4018_v47 = vpop.eup %4017  ;;  %v3007_v22 = vsub.f32 0.0, %v2991_v31  ;;  %v2913_v24 = vadd.f32 1.0, %v4016_v6  ;;  %v2916_v25 = vmul.f32 -0.5, %v4016_v6  ;;  %v2919_v54 = vand.u32 2147483647, %v4016_v6 }
 0x9a5   : > { %v2906_v35 = vmul.f32 0.6931472, %v4018_v47  ;;  %4019 = vpow2.f32 %v2813_v16  ;;  %v5090_v61 = vmul.f32 %v4986_v20, %v2735_v58 }
 0x9a6   : > { %3031 = vadd.xlane.f32.xlu2 %v3007_v22  ;;  %4021 = vlog2.f32 %v2913_v24  ;;  %v2917_v43 = vadd.f32 1.0, %v2916_v25  ;;  %vm2920_vm10 = vcmp.lt.f32.partialorder %v2919_v54, 0.0004427343 }
 0x9a7   : > { %v2912_v40 = vsel %vm2911_vm9, %v2909_v14, %v2906_v35  ;;  %v2771_v49 = vand.u32 2147483647, %v5090_v61 }
 0x9a8   : > { %v2715_v62 = vpop.f32.mrf.mxu3  ;;  %v2976_v26 = vmul.f32 2.0, %v2912_v40  ;;  %v2918_v7 = vmul.f32 %v4016_v6, %v2917_v43 }
 0x9a9   : > { %v2716_v63 = vadd.f32 %v4980_v37, %v2715_v62  ;;  %v2787_v59 = vsub.f32 0.0, %v2771_v49 }
 0x9aa   : > { %v2992_v32 = vadd.f32 %v2976_v26, %v2768_v8 }
 0x9ab   : > { %v4020_v5 = vpop.eup %4019  ;;  %v2736_v48 = vadd.f32 %v2716_v63, %v4927_v23  ;;  %v2815_v15 = vmul.f32 1.442695, %v2787_v59 }
 0x9ac   : > { %v4022_v28 = vpop.eup %4021  ;;  %v3008_v56 = vsub.f32 0.0, %v2992_v32  ;;  %v2922_v45 = vadd.f32 1.0, %v4020_v5  ;;  %v2925_v51 = vmul.f32 -0.5, %v4020_v5  ;;  %v2928_v27 = vand.u32 2147483647, %v4020_v5 }
 0x9ad   : > { %v2915_v33 = vmul.f32 0.6931472, %v4022_v28  ;;  %4023 = vpow2.f32 %v2815_v15  ;;  %v5100_v55 = vmul.f32 %v4986_v20, %v2736_v48 }
 0x9ae   : > { %3033 = vadd.xlane.f32.xlu0 %v3008_v56  ;;  %4025 = vlog2.f32 %v2922_v45  ;;  %v2926_v53 = vadd.f32 1.0, %v2925_v51  ;;  %vm2929_vm11 = vcmp.lt.f32.partialorder %v2928_v27, 0.0004427343 }
 0x9af   : > { %v2921_v38 = vsel %vm2920_vm10, %v2918_v7, %v2915_v33  ;;  %v2772_v8 = vand.u32 2147483647, %v5100_v55 }
 0x9b0   : > { %v2718_v19 = vpop.f32.mrf.mxu3  ;;  %v2977_v52 = vmul.f32 2.0, %v2921_v38  ;;  %v2927_v4 = vmul.f32 %v4020_v5, %v2926_v53 }
 0x9b1   : > { %v2719_v23 = vadd.f32 %v4980_v37, %v2718_v19  ;;  %v2788_v18 = vsub.f32 0.0, %v2772_v8 }
 0x9b2   : > { %v2993_v11 = vadd.f32 %v2977_v52, %v2769_v44 }
 0x9b3   : > { %v4024_v29 = vpop.eup %4023  ;;  %v2737_v9 = vadd.f32 %v2719_v23, %v4934_v0  ;;  %v2817_v21 = vmul.f32 1.442695, %v2788_v18 }
 0x9b4   : > { %v4026_v60 = vpop.eup %4025  ;;  %v3009_v36 = vsub.f32 0.0, %v2993_v11  ;;  %v2931_v13 = vadd.f32 1.0, %v4024_v29  ;;  %v2934_v12 = vmul.f32 -0.5, %v4024_v29  ;;  %v2937_v46 = vand.u32 2147483647, %v4024_v29 }
 0x9b5   : > { %v2924_v39 = vmul.f32 0.6931472, %v4026_v60  ;;  %4027 = vpow2.f32 %v2817_v21  ;;  %v5110_v42 = vmul.f32 %v4986_v20, %v2737_v9  ;;  %v3048_v9 = vstv %s3047_s29 }
 0x9b6   : > { %3035 = vadd.xlane.f32.xlu1 %v3009_v36  ;;  %4029 = vlog2.f32 %v2931_v13  ;;  %v2935_v0 = vadd.f32 1.0, %v2934_v12  ;;  %vm2938_vm12 = vcmp.lt.f32.partialorder %v2937_v46, 0.0004427343 }
 0x9b7   : > { %v2930_v10 = vsel %vm2929_vm11, %v2927_v4, %v2924_v39  ;;  %v2773_v44 = vand.u32 2147483647, %v5110_v42 }
 0x9b8   : > { %v2720_v57 = vpop.f32.mrf.mxu3  ;;  %v2978_v3 = vmul.f32 2.0, %v2930_v10  ;;  %v2936_v47 = vmul.f32 %v4024_v29, %v2935_v0 }
 0x9b9   : > { %v2721_v17 = vadd.f32 %v4980_v37, %v2720_v57  ;;  %v2789_v34 = vsub.f32 0.0, %v2773_v44 }
 0x9ba   : > { %v2994_v1 = vadd.f32 %v2978_v3, %v2770_v30 }
 0x9bb   : > { %v4028_v31 = vpop.eup %4027  ;;  %v2738_v50 = vadd.f32 %v2721_v17, %v4937_v2  ;;  %v2819_v6 = vmul.f32 1.442695, %v2789_v34 }
 0x9bc   : > { %v4030_v58 = vpop.eup %4029  ;;  %v3010_v16 = vsub.f32 0.0, %v2994_v1  ;;  %v2940_v22 = vadd.f32 1.0, %v4028_v31  ;;  %v2943_v25 = vmul.f32 -0.5, %v4028_v31  ;;  %v2946_v62 = vand.u32 2147483647, %v4028_v31 }
 0x9bd   : > { %v2933_v24 = vmul.f32 0.6931472, %v4030_v58  ;;  %4031 = vpow2.f32 %v2819_v6  ;;  %v2758_v35 = vmul.f32 %v4986_v20, %v2738_v50 }
 0x9be   : > { %3037 = vadd.xlane.f32.xlu2 %v3010_v16  ;;  %4033 = vlog2.f32 %v2940_v22  ;;  %v2944_v14 = vadd.f32 1.0, %v2943_v25  ;;  %vm2947_vm13 = vcmp.lt.f32.partialorder %v2946_v62, 0.0004427343 }
 0x9bf   : > { %v2939_v37 = vsel %vm2938_vm12, %v2936_v47, %v2933_v24  ;;  %v2774_v41 = vand.u32 2147483647, %v2758_v35 }
 0x9c0   : > { %v2979_v30 = vmul.f32 2.0, %v2939_v37  ;;  %v2945_v20 = vmul.f32 %v4028_v31, %v2944_v14 }
 0x9c1   : > { %v2790_v40 = vsub.f32 0.0, %v2774_v41 }
 0x9c2   : > { %v2995_v2 = vadd.f32 %v2979_v30, %v2771_v49 }
 0x9c3   : > { %v4032_v26 = vpop.eup %4031  ;;  %v2821_v43 = vmul.f32 1.442695, %v2790_v40 }
 0x9c4   : > { %v4034_v63 = vpop.eup %4033  ;;  %v3011_v59 = vsub.f32 0.0, %v2995_v2  ;;  %v2949_v32 = vadd.f32 1.0, %v4032_v26  ;;  %v2952_v5 = vmul.f32 -0.5, %v4032_v26  ;;  %v2955_v49 = vand.u32 2147483647, %v4032_v26 }
 0x9c5   : > { %v2942_v54 = vmul.f32 0.6931472, %v4034_v63  ;;  %4035 = vpow2.f32 %v2821_v43 }
 0x9c6   : > { %3039 = vadd.xlane.f32.xlu0 %v3011_v59  ;;  %4037 = vlog2.f32 %v2949_v32  ;;  %v2953_v28 = vadd.f32 1.0, %v2952_v5  ;;  %vm2956_vm14 = vcmp.lt.f32.partialorder %v2955_v49, 0.0004427343 }
 0x9c7   : > { %v2948_v48 = vsel %vm2947_vm13, %v2945_v20, %v2942_v54 }
 0x9c8   : > { %v2980_v15 = vmul.f32 2.0, %v2948_v48  ;;  %v2954_v38 = vmul.f32 %v4032_v26, %v2953_v28 }
 0x9ca   : > { %v2996_v61 = vadd.f32 %v2980_v15, %v2772_v8 }
 0x9cb   : > { %v4036_v56 = vpop.eup %4035 }
 0x9cc   : > { %v4038_v7 = vpop.eup %4037  ;;  %v3012_v45 = vsub.f32 0.0, %v2996_v61  ;;  %v2958_v33 = vadd.f32 1.0, %v4036_v56  ;;  %v2961_v19 = vmul.f32 -0.5, %v4036_v56  ;;  %v2964_v8 = vand.u32 2147483647, %v4036_v56 }
 0x9cd   : > { %v2951_v51 = vmul.f32 0.6931472, %v4038_v7 }
 0x9ce   : > { %3041 = vadd.xlane.f32.xlu1 %v3012_v45  ;;  %4039 = vlog2.f32 %v2958_v33  ;;  %v2962_v53 = vadd.f32 1.0, %v2961_v19  ;;  %vm2965_vm15 = vcmp.lt.f32.partialorder %v2964_v8, 0.0004427343 }
 0x9cf   : > { %v2957_v52 = vsel %vm2956_vm14, %v2954_v38, %v2951_v51 }
 0x9d0   : > { %v2981_v23 = vmul.f32 2.0, %v2957_v52  ;;  %v2963_v29 = vmul.f32 %v4036_v56, %v2962_v53 }
 0x9d2   : > { %v2997_v55 = vadd.f32 %v2981_v23, %v2773_v44 }
 0x9d4   : > { %v4040_v18 = vpop.eup %4039  ;;  %v3013_v11 = vsub.f32 0.0, %v2997_v55 }
 0x9d5   : > { %v2960_v27 = vmul.f32 0.6931472, %v4040_v18 }
 0x9d6   : > { %3043 = vadd.xlane.f32.xlu2 %v3013_v11 }
 0x9d7   : > { %v2966_v21 = vsel %vm2965_vm15, %v2963_v29, %v2960_v27 }
 0x9d8   : > { %v2982_v60 = vmul.f32 2.0, %v2966_v21 }
 0x9d9   : > { %v3016_v36 = vpop.xlane.xlu0 %3015 }
 0x9da   : > { %v3049_v13 = vadd.f32 %v3048_v9, %v3016_v36  ;;  %v2998_v12 = vadd.f32 %v2982_v60, %v2774_v41 }
 0x9dc   : > { %3066 = vst.msk [vmem:[%s5127_s30] sm:$0xff] %vm3065_vm0, %v3049_v13  ;;  %v3014_v39 = vsub.f32 0.0, %v2998_v12 }
 0x9de   : > { %3045 = vadd.xlane.f32.xlu0 %v3014_v39 }
 0x9e1   : > { %v3018_v4 = vpop.xlane.xlu0 %3017 }
 0x9e2   : > { %v3050_v42 = vadd.f32 %v3048_v9, %v3018_v4 }
 0x9e4   : > { %3067 = vst.msk [vmem:[%s5127_s30 + $0x8] sm:$0xff] %vm3065_vm0, %v3050_v42 }
 0x9e9   : > { %v3020_v10 = vpop.xlane.xlu1 %3019 }
 0x9ea   : > { %v3051_v44 = vadd.f32 %v3048_v9, %v3020_v10 }
 0x9ec   : > { %3068 = vst.msk [vmem:[%s5127_s30 + $0x10] sm:$0xff] %vm3065_vm0, %v3051_v44 }
 0x9f1   : > { %v3022_v57 = vpop.xlane.xlu1 %3021 }
 0x9f2   : > { %v3052_v3 = vadd.f32 %v3048_v9, %v3022_v57 }
 0x9f4   : > { %3069 = vst.msk [vmem:[%s5127_s30 + $0x18] sm:$0xff] %vm3065_vm0, %v3052_v3 }
 0x9f9   : > { %v3024_v0 = vpop.xlane.xlu2 %3023 }
 0x9fa   : > { %v3053_v17 = vadd.f32 %v3048_v9, %v3024_v0 }
 0x9fc   : > { %3070 = vst.msk [vmem:[%s5127_s30 + $0x20] sm:$0xff] %vm3065_vm0, %v3053_v17 }
 0xa01   : > { %v3026_v34 = vpop.xlane.xlu2 %3025 }
 0xa02   : > { %v3054_v1 = vadd.f32 %v3048_v9, %v3026_v34 }
 0xa04   : > { %3071 = vst.msk [vmem:[%s5127_s30 + $0x28] sm:$0xff] %vm3065_vm0, %v3054_v1 }
 0xa09   : > { %v3028_v46 = vpop.xlane.xlu0 %3027 }
 0xa0a   : > { %v3055_v31 = vadd.f32 %v3048_v9, %v3028_v46 }
 0xa0c   : > { %3072 = vst.msk [vmem:[%s5127_s30 + $0x30] sm:$0xff] %vm3065_vm0, %v3055_v31 }
 0xa11   : > { %v3030_v50 = vpop.xlane.xlu1 %3029 }
 0xa12   : > { %v3056_v6 = vadd.f32 %v3048_v9, %v3030_v50 }
 0xa14   : > { %3073 = vst.msk [vmem:[%s5127_s30 + $0x38] sm:$0xff] %vm3065_vm0, %v3056_v6 }
 0xa19   : > { %v3032_v58 = vpop.xlane.xlu2 %3031 }
 0xa1a   : > { %v3057_v16 = vadd.f32 %v3048_v9, %v3032_v58 }
 0xa1c   : > { %3074 = vst.msk [vmem:[%s5127_s30 + $0x40] sm:$0xff] %vm3065_vm0, %v3057_v16 }
 0xa21   : > { %v3034_v47 = vpop.xlane.xlu0 %3033 }
 0xa22   : > { %v3058_v22 = vadd.f32 %v3048_v9, %v3034_v47 }
 0xa24   : > { %3075 = vst.msk [vmem:[%s5127_s30 + $0x48] sm:$0xff] %vm3065_vm0, %v3058_v22 }
 0xa29   : > { %v3036_v24 = vpop.xlane.xlu1 %3035 }
 0xa2a   : > { %v3059_v25 = vadd.f32 %v3048_v9, %v3036_v24 }
 0xa2c   : > { %3076 = vst.msk [vmem:[%s5127_s30 + $0x50] sm:$0xff] %vm3065_vm0, %v3059_v25 }
 0xa31   : > { %v3038_v35 = vpop.xlane.xlu2 %3037 }
 0xa32   : > { %v3060_v37 = vadd.f32 %v3048_v9, %v3038_v35 }
 0xa34   : > { %3077 = vst.msk [vmem:[%s5127_s30 + $0x58] sm:$0xff] %vm3065_vm0, %v3060_v37 }
 0xa39   : > { %v3040_v41 = vpop.xlane.xlu0 %3039 }
 0xa3a   : > { %v3061_v30 = vadd.f32 %v3048_v9, %v3040_v41 }
 0xa3c   : > { %3078 = vst.msk [vmem:[%s5127_s30 + $0x60] sm:$0xff] %vm3065_vm0, %v3061_v30 }
 0xa41   : > { %v3042_v14 = vpop.xlane.xlu1 %3041 }
 0xa42   : > { %v3062_v40 = vadd.f32 %v3048_v9, %v3042_v14 }
 0xa44   : > { %3079 = vst.msk [vmem:[%s5127_s30 + $0x68] sm:$0xff] %vm3065_vm0, %v3062_v40 }
 0xa49   : > { %v3044_v2 = vpop.xlane.xlu2 %3043 }
 0xa4a   : > { %v3063_v62 = vadd.f32 %v3048_v9, %v3044_v2 }
 0xa4c   : > { %3080 = vst.msk [vmem:[%s5127_s30 + $0x70] sm:$0xff] %vm3065_vm0, %v3063_v62 }
 0xa51   : > { %v3046_v26 = vpop.xlane.xlu0 %3045 }
 0xa52   : > { %v3064_v43 = vadd.f32 %v3048_v9, %v3046_v26 }
 0xa54   : > { %3081 = vst.msk [vmem:[%s5127_s30 + $0x78] sm:$0xff] %vm3065_vm0, %v3064_v43 }
 0xa55 PF: > { %p23_p3 = scmp.ge.s32.totalorder %s4400_s22, 4   ;;  %s5193_s11 = smov %s4259_s12 }
 0xa56   : > { %s5194_s12 = smov %s4263_s13  ;;  %s5195_s13 = smov %s4411_s24 }
 0xa57   : > { %s5196_s14 = smov %s4400_s22  ;;  %25 = sbr.rel (!%p23_p3) target bundleno = 9 (0x9), region = 142 }
 0xa5c   :  { %3104 = vsyncpa [#allocation4], 1 }
 0xa5d   :  { %3106 = vsyncpa [#allocation4 + $0x1], 1 }
 0xa5e   :  { %3107 = vsyncpa [#allocation6], 1 }
 0xa5f   :  { %3108 = vsyncpa [#allocation9], 1 }
 0xa60   :  { %3109 = vsyncpa [#allocation12], 1 }

</bundles_post_ra>
